<compile_context>
chip_gen: v5e
topology: v5e:2x2
jax: 0.10.0
libtpu: 0.0.40
codegen_flags: <defaults>
</compile_context>

<pallas_src>
import functools

import jax
import jax.numpy as jnp
import numpy as np
from jax.experimental import pallas as pl
from jax.experimental.pallas import tpu as pltpu


def _round_up(n, m):
    return ((n + m - 1) // m) * m


def _decoder_kernel(x_ref,
                    w1_ref, b1_ref,
                    w2_ref, b2_ref,
                    w3_ref, b3_ref,
                    w4_ref, b4_ref,
                    o_ref):
    # Weights/biases are VMEM-resident across the whole batch grid (constant
    # index_map, single-buffered); only the x / o tiles stream per grid step, so
    # intermediates never touch HBM.
    x = x_ref[...]  # already bf16; padded lanes are zero

    h = jnp.dot(x, w1_ref[...], preferred_element_type=jnp.float32) + b1_ref[...]
    h = jnp.maximum(h, 0.0).astype(jnp.bfloat16)

    h = jnp.dot(h, w2_ref[...], preferred_element_type=jnp.float32) + b2_ref[...]
    h = jnp.maximum(h, 0.0).astype(jnp.bfloat16)

    h = jnp.dot(h, w3_ref[...], preferred_element_type=jnp.float32) + b3_ref[...]
    h = jnp.maximum(h, 0.0).astype(jnp.bfloat16)

    y = jnp.dot(h, w4_ref[...], preferred_element_type=jnp.float32) + b4_ref[...]
    o_ref[...] = y.astype(o_ref.dtype)


def prepare_decoder_params(params):
    """One-time prep (hoisted out of the per-call forward): zero-pad every feature
    dim to a multiple of 128 (lane-dense) and cast weights to bf16 / biases to f32.

    params: list of 4 tuples (W, b) with W of shape (in, out) and b of shape (1, out).
    Returns a flat tuple (w1, b1, w2, b2, w3, b3, w4, b4) of padded device arrays.
    Zero padding keeps the math exact: padded input lanes are zero and padded output
    lanes stay zero through the (zero-padded) bias and ReLU.
    """
    prepped = []
    for w, b in params:
        pin = _round_up(w.shape[0], 128)
        pout = _round_up(w.shape[1], 128)
        wp = jnp.pad(w, ((0, pin - w.shape[0]), (0, pout - w.shape[1]))).astype(jnp.bfloat16)
        bp = jnp.pad(b, ((0, 0), (0, pout - b.shape[1]))).astype(jnp.float32)
        prepped.append(wp)
        prepped.append(bp)
    return tuple(prepped)


def _choose_batch_tile(batch):
    """Pick the batch tile (multiple of 16 for bf16 sublane packing).

    batch <= 32: one small step (grid=1) — padding a tiny batch to two steps wastes
    more MXU work than a second TensorCore could save.
    batch > 32: at least 2 grid steps (so v7x's two TensorCores both get work via the
    "parallel" grid axis), capped at 256 rows per step (amortizes the ~0.35 us
    per-step overhead and fills the 256-wide MXU on v6e/v7x).
    """
    if batch <= 32:
        tile_m = _round_up(max(batch, 1), 16)
    else:
        tile_m = min(256, _round_up(pl.cdiv(batch, 2), 16))
    batch_pad = _round_up(batch, tile_m)
    return tile_m, batch_pad


@functools.partial(jax.jit, static_argnums=(2,))
def decoder_forward(x, prepped, input_dim):
    """x: (batch, feature_dim) f32.  prepped: output of prepare_decoder_params().
    input_dim: original (unpadded) output width — static."""
    w1, b1, w2, b2, w3, b3, w4, b4 = prepped
    batch, feature_dim = x.shape
    pdims = (w1.shape[0], w1.shape[1], w2.shape[1], w3.shape[1], w4.shape[1])

    tile_m, batch_pad = _choose_batch_tile(batch)
    grid = (batch_pad // tile_m,)

    # Pad + bf16-cast x in the wrapper: the pad pass already touches x, so the cast
    # is free and the per-step x-tile DMA is halved.
    xp = jnp.pad(x, ((0, batch_pad - batch),
                     (0, pdims[0] - feature_dim))).astype(jnp.bfloat16)

    def resident(shape):
        # Constant index_map -> stays in VMEM for the whole grid; single-buffered
        # (no need to double-buffer a block whose index never changes).
        return pl.BlockSpec(shape, lambda m: (0, 0), pipeline_mode=pl.Buffered(1))

    in_specs = [
        pl.BlockSpec((tile_m, pdims[0]), lambda m: (m, 0)),   # x tile streams (bf16)
        resident((pdims[0], pdims[1])), resident((1, pdims[1])),
        resident((pdims[1], pdims[2])), resident((1, pdims[2])),
        resident((pdims[2], pdims[3])), resident((1, pdims[3])),
        resident((pdims[3], pdims[4])), resident((1, pdims[4])),
    ]

    # VMEM budget from the actual footprint: single-buffered weights/biases,
    # double-buffered x/out tiles, f32+bf16 intermediate activations; ~2x headroom,
    # clamped to sane bounds (v7x has only 64 MiB physical VMEM per TC).
    weight_bytes = sum(pdims[i] * pdims[i + 1] * 2 for i in range(4))
    bias_bytes = sum(pdims[i + 1] * 4 for i in range(4))
    io_bytes = 2 * tile_m * (pdims[0] * 2 + pdims[4] * 4)
    act_bytes = tile_m * max(pdims[1:]) * 6
    vmem_limit = int(min(56 << 20,
                         max(24 << 20,
                             2 * (weight_bytes + bias_bytes + io_bytes + act_bytes))))

    flops = 2 * batch_pad * sum(pdims[i] * pdims[i + 1] for i in range(4))
    bytes_accessed = (xp.size * 2 + batch_pad * pdims[4] * 4
                      + weight_bytes + bias_bytes)

    out = pl.pallas_call(
        _decoder_kernel,
        out_shape=jax.ShapeDtypeStruct((batch_pad, pdims[4]), jnp.float32),
        grid=grid,
        in_specs=in_specs,
        out_specs=pl.BlockSpec((tile_m, pdims[4]), lambda m: (m, 0)),
        compiler_params=pltpu.CompilerParams(
            dimension_semantics=("parallel",),
            vmem_limit_bytes=vmem_limit,
        ),
        cost_estimate=pl.CostEstimate(
            flops=flops, transcendentals=0, bytes_accessed=bytes_accessed),
    )(xp, w1, b1, w2, b2, w3, b3, w4, b4)

    return out[:batch, :input_dim]


def init_decoder_params(key, input_dim, feature_dim):
    """Deterministic init mirroring nn.Linear default (U(-1/sqrt(fan_in), 1/sqrt(fan_in)))."""
    dims = [feature_dim, 2000, 500, 500, input_dim]
    params = []
    for i in range(4):
        key, kw, kb = jax.random.split(key, 3)
        fan_in, fan_out = dims[i], dims[i + 1]
        bound = 1.0 / np.sqrt(fan_in)
        w = jax.random.uniform(kw, (fan_in, fan_out), jnp.float32, -bound, bound)
        b = jax.random.uniform(kb, (1, fan_out), jnp.float32, -bound, bound)
        params.append((w, b))
    return params


def decoder_reference(x, params, weight_dtype=jnp.float32):
    """Pure-JAX reference; optionally quantizes weights to weight_dtype (to match the
    bf16 weight storage used by the kernel) but accumulates in f32."""
    h = x
    for i, (w, b) in enumerate(params):
        w = w.astype(weight_dtype).astype(jnp.float32)
        h = h @ w + b
        if i < 3:
            h = jnp.maximum(h, 0.0)
    return h


if __name__ == "__main__":
    batch = 8
    feature_dim = 32
    input_dim = 64

    key = jax.random.PRNGKey(0)
    key, kx = jax.random.split(key)
    x = jax.random.normal(kx, (batch, feature_dim), jnp.float32)

    params = init_decoder_params(key, input_dim, feature_dim)

    # One-time weight padding + bf16 cast, hoisted out of the per-call forward.
    prepped = jax.block_until_ready(prepare_decoder_params(params))

    y = decoder_forward(x, prepped, input_dim)
    y = jax.block_until_ready(y)
    assert y.shape == (batch, input_dim)

    # Compare against an f32 reference that uses the same bf16-stored weights;
    # remaining difference is only bf16 activation rounding inside the kernel.
    y_ref = decoder_reference(x, params, weight_dtype=jnp.bfloat16)
    np.testing.assert_allclose(np.asarray(y), np.asarray(y_ref), rtol=2e-2, atol=2e-2)

    print("KERNEL_OK")
</pallas_src>

<mosaic_0001>
module attributes {stable_mosaic.version = 11 : i64} {
  func.func @_decoder_kernel(%arg0: i32, %arg1: memref<16x128xbf16, #tpu.memory_space<vmem>>, %arg2: memref<128x2048xbf16, #tpu.memory_space<vmem>>, %arg3: memref<1x2048xf32, #tpu.memory_space<vmem>>, %arg4: memref<2048x512xbf16, #tpu.memory_space<vmem>>, %arg5: memref<1x512xf32, #tpu.memory_space<vmem>>, %arg6: memref<512x512xbf16, #tpu.memory_space<vmem>>, %arg7: memref<1x512xf32, #tpu.memory_space<vmem>>, %arg8: memref<512x128xbf16, #tpu.memory_space<vmem>>, %arg9: memref<1x128xf32, #tpu.memory_space<vmem>>, %arg10: memref<16x128xf32, #tpu.memory_space<vmem>>) attributes {dimension_semantics = [#tpu.dimension_semantics<parallel>], iteration_bounds = array<i64: 1>, scalar_prefetch = 0 : i64, scratch_operands = 0 : i64, tpu.core_type = #tpu.core_type<tc>, window_params = [{transform_indices = @transform_0, window_bounds = array<i64: 16, 128>}, {pipeline_mode = #tpu.pipeline_mode<synchronous>, transform_indices = @transform_1, window_bounds = array<i64: 128, 2048>}, {pipeline_mode = #tpu.pipeline_mode<synchronous>, transform_indices = @transform_2, window_bounds = array<i64: 1, 2048>}, {pipeline_mode = #tpu.pipeline_mode<synchronous>, transform_indices = @transform_3, window_bounds = array<i64: 2048, 512>}, {pipeline_mode = #tpu.pipeline_mode<synchronous>, transform_indices = @transform_4, window_bounds = array<i64: 1, 512>}, {pipeline_mode = #tpu.pipeline_mode<synchronous>, transform_indices = @transform_5, window_bounds = array<i64: 512, 512>}, {pipeline_mode = #tpu.pipeline_mode<synchronous>, transform_indices = @transform_6, window_bounds = array<i64: 1, 512>}, {pipeline_mode = #tpu.pipeline_mode<synchronous>, transform_indices = @transform_7, window_bounds = array<i64: 512, 128>}, {pipeline_mode = #tpu.pipeline_mode<synchronous>, transform_indices = @transform_8, window_bounds = array<i64: 1, 128>}, {transform_indices = @transform_9, window_bounds = array<i64: 16, 128>}]} {
    %c0 = arith.constant 0 : index
    %c0_0 = arith.constant 0 : index
    %0 = vector.load %arg1[%c0, %c0_0] : memref<16x128xbf16, #tpu.memory_space<vmem>>, vector<16x128xbf16>
    %c0_1 = arith.constant 0 : index
    %c0_2 = arith.constant 0 : index
    %1 = vector.load %arg2[%c0_1, %c0_2] : memref<128x2048xbf16, #tpu.memory_space<vmem>>, vector<128x2048xbf16>
    %cst = arith.constant dense<0.000000e+00> : vector<16x2048xf32>
    %2 = tpu.matmul %0, %1, %cst {dimension_numbers = #tpu.dot_dimension_numbers<[1], [0], [0], [1], [0, 0, 1, 1], [], []>} : vector<16x128xbf16>, vector<128x2048xbf16>, vector<16x2048xf32> -> vector<16x2048xf32>
    %c0_3 = arith.constant 0 : index
    %c0_4 = arith.constant 0 : index
    %3 = vector.load %arg3[%c0_3, %c0_4] : memref<1x2048xf32, #tpu.memory_space<vmem>>, vector<1x2048xf32>
    %4 = vector.broadcast %3 : vector<1x2048xf32> to vector<16x2048xf32>
    %5 = arith.addf %2, %4 : vector<16x2048xf32>
    %cst_5 = arith.constant 0.000000e+00 : f32
    %6 = vector.broadcast %cst_5 : f32 to vector<16x2048xf32>
    %7 = arith.maximumf %5, %6 : vector<16x2048xf32>
    %8 = arith.truncf %7 : vector<16x2048xf32> to vector<16x2048xbf16>
    %c0_6 = arith.constant 0 : index
    %c0_7 = arith.constant 0 : index
    %9 = vector.load %arg4[%c0_6, %c0_7] : memref<2048x512xbf16, #tpu.memory_space<vmem>>, vector<2048x512xbf16>
    %cst_8 = arith.constant dense<0.000000e+00> : vector<16x512xf32>
    %10 = tpu.matmul %8, %9, %cst_8 {dimension_numbers = #tpu.dot_dimension_numbers<[1], [0], [0], [1], [0, 0, 1, 1], [], []>} : vector<16x2048xbf16>, vector<2048x512xbf16>, vector<16x512xf32> -> vector<16x512xf32>
    %c0_9 = arith.constant 0 : index
    %c0_10 = arith.constant 0 : index
    %11 = vector.load %arg5[%c0_9, %c0_10] : memref<1x512xf32, #tpu.memory_space<vmem>>, vector<1x512xf32>
    %12 = vector.broadcast %11 : vector<1x512xf32> to vector<16x512xf32>
    %13 = arith.addf %10, %12 : vector<16x512xf32>
    %cst_11 = arith.constant 0.000000e+00 : f32
    %14 = vector.broadcast %cst_11 : f32 to vector<16x512xf32>
    %15 = arith.maximumf %13, %14 : vector<16x512xf32>
    %16 = arith.truncf %15 : vector<16x512xf32> to vector<16x512xbf16>
    %c0_12 = arith.constant 0 : index
    %c0_13 = arith.constant 0 : index
    %17 = vector.load %arg6[%c0_12, %c0_13] : memref<512x512xbf16, #tpu.memory_space<vmem>>, vector<512x512xbf16>
    %cst_14 = arith.constant dense<0.000000e+00> : vector<16x512xf32>
    %18 = tpu.matmul %16, %17, %cst_14 {dimension_numbers = #tpu.dot_dimension_numbers<[1], [0], [0], [1], [0, 0, 1, 1], [], []>} : vector<16x512xbf16>, vector<512x512xbf16>, vector<16x512xf32> -> vector<16x512xf32>
    %c0_15 = arith.constant 0 : index
    %c0_16 = arith.constant 0 : index
    %19 = vector.load %arg7[%c0_15, %c0_16] : memref<1x512xf32, #tpu.memory_space<vmem>>, vector<1x512xf32>
    %20 = vector.broadcast %19 : vector<1x512xf32> to vector<16x512xf32>
    %21 = arith.addf %18, %20 : vector<16x512xf32>
    %cst_17 = arith.constant 0.000000e+00 : f32
    %22 = vector.broadcast %cst_17 : f32 to vector<16x512xf32>
    %23 = arith.maximumf %21, %22 : vector<16x512xf32>
    %24 = arith.truncf %23 : vector<16x512xf32> to vector<16x512xbf16>
    %c0_18 = arith.constant 0 : index
    %c0_19 = arith.constant 0 : index
    %25 = vector.load %arg8[%c0_18, %c0_19] : memref<512x128xbf16, #tpu.memory_space<vmem>>, vector<512x128xbf16>
    %cst_20 = arith.constant dense<0.000000e+00> : vector<16x128xf32>
    %26 = tpu.matmul %24, %25, %cst_20 {dimension_numbers = #tpu.dot_dimension_numbers<[1], [0], [0], [1], [0, 0, 1, 1], [], []>} : vector<16x512xbf16>, vector<512x128xbf16>, vector<16x128xf32> -> vector<16x128xf32>
    %c0_21 = arith.constant 0 : index
    %c0_22 = arith.constant 0 : index
    %27 = vector.load %arg9[%c0_21, %c0_22] : memref<1x128xf32, #tpu.memory_space<vmem>>, vector<1x128xf32>
    %28 = vector.broadcast %27 : vector<1x128xf32> to vector<16x128xf32>
    %29 = arith.addf %26, %28 : vector<16x128xf32>
    %c0_23 = arith.constant 0 : index
    %c0_24 = arith.constant 0 : index
    %30 = vector.load %arg10[%c0_23, %c0_24] : memref<16x128xf32, #tpu.memory_space<vmem>>, vector<16x128xf32>
    tpu.vector_store %arg10[%c0_23, %c0_24], %29 {strides = array<i32>} : memref<16x128xf32, #tpu.memory_space<vmem>>, vector<16x128xf32>,
    return
  }
  func.func @transform_0(%arg0: i32) -> (i32, i32) {
    %c0_i32 = arith.constant 0 : i32
    %c0_i32_0 = arith.constant 0 : i32
    return %arg0, %c0_i32 : i32, i32
  }
  func.func @transform_1(%arg0: i32) -> (i32, i32) {
    %c0_i32 = arith.constant 0 : i32
    %c0_i32_0 = arith.constant 0 : i32
    %c0_i32_1 = arith.constant 0 : i32
    return %c0_i32, %c0_i32_0 : i32, i32
  }
  func.func @transform_2(%arg0: i32) -> (i32, i32) {
    %c0_i32 = arith.constant 0 : i32
    %c0_i32_0 = arith.constant 0 : i32
    %c0_i32_1 = arith.constant 0 : i32
    return %c0_i32, %c0_i32_0 : i32, i32
  }
  func.func @transform_3(%arg0: i32) -> (i32, i32) {
    %c0_i32 = arith.constant 0 : i32
    %c0_i32_0 = arith.constant 0 : i32
    %c0_i32_1 = arith.constant 0 : i32
    return %c0_i32, %c0_i32_0 : i32, i32
  }
  func.func @transform_4(%arg0: i32) -> (i32, i32) {
    %c0_i32 = arith.constant 0 : i32
    %c0_i32_0 = arith.constant 0 : i32
    %c0_i32_1 = arith.constant 0 : i32
    return %c0_i32, %c0_i32_0 : i32, i32
  }
  func.func @transform_5(%arg0: i32) -> (i32, i32) {
    %c0_i32 = arith.constant 0 : i32
    %c0_i32_0 = arith.constant 0 : i32
    %c0_i32_1 = arith.constant 0 : i32
    return %c0_i32, %c0_i32_0 : i32, i32
  }
  func.func @transform_6(%arg0: i32) -> (i32, i32) {
    %c0_i32 = arith.constant 0 : i32
    %c0_i32_0 = arith.constant 0 : i32
    %c0_i32_1 = arith.constant 0 : i32
    return %c0_i32, %c0_i32_0 : i32, i32
  }
  func.func @transform_7(%arg0: i32) -> (i32, i32) {
    %c0_i32 = arith.constant 0 : i32
    %c0_i32_0 = arith.constant 0 : i32
    %c0_i32_1 = arith.constant 0 : i32
    return %c0_i32, %c0_i32_0 : i32, i32
  }
  func.func @transform_8(%arg0: i32) -> (i32, i32) {
    %c0_i32 = arith.constant 0 : i32
    %c0_i32_0 = arith.constant 0 : i32
    %c0_i32_1 = arith.constant 0 : i32
    return %c0_i32, %c0_i32_0 : i32, i32
  }
  func.func @transform_9(%arg0: i32) -> (i32, i32) {
    %c0_i32 = arith.constant 0 : i32
    %c0_i32_0 = arith.constant 0 : i32
    return %arg0, %c0_i32 : i32, i32
  }
}

</mosaic_0001>

<bundles_post_ra>
// kernel: decoder_forward.1
= control target key start
LH: loop header
LB: loop body
LE: loop exit
PB: predicated region body
PF: predicated region fallthrough
CT: control target
= control target key end

     0   :  { %14 = vsyncpa [#allocation3], 0  ;;  %s11278_s0 = inlined_call_operand.vmem [shape: bf16[16,128], index: 0, kind: input, shape index: {}]   ;;  %s11279_s1 = inlined_call_operand.hbm [shape: bf16[128,2048], index: 1, kind: input, shape index: {}]   ;;  %s11280_s2 = inlined_call_operand.hbm [shape: f32[1,2048], index: 2, kind: input, shape index: {}]   ;;  %s11281_s3 = inlined_call_operand.hbm [shape: bf16[2048,512], index: 3, kind: input, shape index: {}]   ;;  %s11282_s4 = inlined_call_operand.hbm [shape: f32[1,512], index: 4, kind: input, shape index: {}]   ;;  %s11283_s5 = inlined_call_operand.hbm [shape: bf16[512,512], index: 5, kind: input, shape index: {}]   ;;  %s11284_s6 = inlined_call_operand.hbm [shape: f32[1,512], index: 6, kind: input, shape index: {}]   ;;  %s11285_s7 = inlined_call_operand.hbm [shape: bf16[512,128], index: 7, kind: input, shape index: {}]   ;;  %s11286_s8 = inlined_call_operand.hbm [shape: f32[1,128], index: 8, kind: input, shape index: {}]   ;;  %s11287_s9 = inlined_call_operand.vmem [shape: f32[16,128], index: 9, kind: output, shape index: {}]  }
   0x1   :  { %15 = vsyncpa [#allocation5], 0 }
   0x2   :  { %16 = vsyncpa [#allocation8], 0 }
   0x3   :  { %17 = vsyncpa [#allocation11], 0  ;;  %s39_s11 = sshll.u32 %s11280_s2, 4  ;;  %s40_s11 = int_to_ptr.hbm [resolvable:$true] %s39_s11 }
   0x4   :  { %18 = vsyncpa [#allocation14], 0  ;;  %s10788_s12 = smov [#allocation4]   ;;  %s63_s16 = sshll.u32 %s11282_s4, 4  ;;  %s64_s16 = int_to_ptr.hbm [resolvable:$true] %s63_s16 }
   0x5   :  { %s41_s13 = sshll.u32 %s10788_s12, 4  ;;  %s10789_s17 = smov [#allocation7]   ;;  %s42_s13 = int_to_ptr.vmem [resolvable:$true] %s41_s13 }
   0x6   :  { %44 = dma.hbm_to_vmem [thread:$0]  %s40_s11, 256, %s42_s13, [#allocation5]  }
   0x7   :  { %s65_s18 = sshll.u32 %s10789_s17, 4  ;;  %s87_s21 = sshll.u32 %s11284_s6, 4  ;;  %s66_s18 = int_to_ptr.vmem [resolvable:$true] %s65_s18  ;;  %s88_s21 = int_to_ptr.hbm [resolvable:$true] %s87_s21 }
   0x8   :  { %68 = dma.hbm_to_vmem [thread:$0]  %s64_s16, 64, %s66_s18, [#allocation8]  }
   0x9   :  { %s25_s23 = sshll.u32 %s11279_s1, 4  ;;  %s10790_s24 = smov [#allocation10]   ;;  %s26_s23 = int_to_ptr.hbm [resolvable:$true] %s25_s23 }
   0xa   :  { %s89_s25 = sshll.u32 %s10790_s24, 4  ;;  %s10791_s4 = smov [#allocation2]   ;;  %s90_s25 = int_to_ptr.vmem [resolvable:$true] %s89_s25 }
   0xb   :  { %92 = dma.hbm_to_vmem [thread:$0]  %s88_s21, 64, %s90_s25, [#allocation11]  }
   0xc   :  { %s27_s26 = sshll.u32 %s10791_s4, 4  ;;  %s10792_s27 = smov 1024   ;;  %s28_s26 = int_to_ptr.vmem [resolvable:$true] %s27_s26 }
   0xd   :  { %s10793_s28 = smov 64   ;;  %s49_s30 = sshll.u32 %s11281_s3, 4  ;;  %s50_s30 = int_to_ptr.hbm [resolvable:$true] %s49_s30 }
   0xe   :  { %33 = dma.hbm_to_vmem [thread:$0]  %s26_s23, 16384, %s28_s26, [#allocation3], %s10792_s27, %s10792_s27, %s10793_s28  }
   0xf   :  { %s10794_s10 = smov [#allocation6]   ;;  %s73_s13 = sshll.u32 %s11283_s5, 4  ;;  %s74_s13 = int_to_ptr.hbm [resolvable:$true] %s73_s13 }
  0x10   :  { %s51_s11 = sshll.u32 %s10794_s10, 4  ;;  %s10795_s14 = smov 256   ;;  %s52_s11 = int_to_ptr.vmem [resolvable:$true] %s51_s11 }
  0x11   :  { %s10796_s15 = smov 16   ;;  %s10797_s16 = smov [#allocation9]  }
  0x12   :  { %57 = dma.hbm_to_vmem [thread:$0]  %s50_s30, 65536, %s52_s11, [#allocation5], %s10795_s14, %s10795_s14, %s10796_s15  }
  0x13   :  { %s75_s17 = sshll.u32 %s10797_s16, 4  ;;  %s97_s20 = sshll.u32 %s11285_s7, 4  ;;  %s76_s17 = int_to_ptr.vmem [resolvable:$true] %s75_s17  ;;  %s98_s20 = int_to_ptr.hbm [resolvable:$true] %s97_s20 }
  0x14   :  { %81 = dma.hbm_to_vmem [thread:$0]  %s74_s13, 16384, %s76_s17, [#allocation8], %s10795_s14, %s10795_s14, %s10796_s15  }
  0x15   :  { %s10798_s3 = smov [#allocation12]   ;;  %s111_s23 = sshll.u32 %s11286_s8, 4  ;;  %s112_s23 = int_to_ptr.hbm [resolvable:$true] %s111_s23 }
  0x16   :  { %s99_s21 = sshll.u32 %s10798_s3, 4  ;;  %s10799_s5 = smov 4   ;;  %s100_s21 = int_to_ptr.vmem [resolvable:$true] %s99_s21 }
  0x17   :  { %105 = dma.hbm_to_vmem [thread:$0]  %s98_s20, 4096, %s100_s21, [#allocation11], %s10793_s28, %s10793_s28, %s10799_s5  }
  0x18   :  { %s10800_s24 = smov [#allocation13]  }
  0x19   :  { %s113_s25 = sshll.u32 %s10800_s24, 4  ;;  %s114_s25 = int_to_ptr.vmem [resolvable:$true] %s113_s25 }
  0x1a   :  { %116 = dma.hbm_to_vmem [thread:$0]  %s112_s23, 16, %s114_s25, [#allocation14]  }
  0x1b   :  { %10778 = dma.done.wait [#allocation3], 16384  }
  0x1c   :  { %10779 = vsyncadd [#allocation3], 4294950912 }
  0x1d   :  { %10780 = dma.done.wait [#allocation5], 65792  }
  0x1e   :  { %10781 = vsyncadd [#allocation5], 4294901504 }
  0x1f   :  { %10782 = dma.done.wait [#allocation8], 16448  }
  0x20   :  { %10783 = vsyncadd [#allocation8], 4294950848 }
  0x21   :  { %10784 = dma.done.wait [#allocation11], 4160  }
  0x22   :  { %10785 = vsyncadd [#allocation11], 4294963136 }
  0x23   :  { %10786 = dma.done.wait [#allocation14], 16  }
  0x24   :  { %10787 = vsyncadd [#allocation14], 4294967280  ;;  %v7018_v0 = vld [vmem:[#allocation2 + $0x380] sm:$0xf]  ;;  %v9881_v2 = vld [vmem:[#allocation2 + $0x384] sm:$0xf] }
  0x25   :  { %v9889_v1 = vld [vmem:[#allocation2 + $0x3bc] sm:$0xf0]  ;;  %v7020_v4 = vld [vmem:[#allocation2 + $0x3c0] sm:$0xf0]  ;;  %v7026_v5 = vld [vmem:[#allocation2 + $0x388] sm:$0xf] }
  0x26   :  { %v7019_v3 = vor.u32 %v9889_v1, %v7018_v0  ;;  %v9890_v6 = vld [vmem:[#allocation2 + $0x3c4] sm:$0xf0]  ;;  %v7023_v7 = vor.u32 %v9881_v2, %v7020_v4  ;;  %v9882_v9 = vld [vmem:[#allocation2 + $0x38c] sm:$0xf]  ;;  %v6954_v11 = vld [vmem:[#allocation2 + $0x300] sm:$0xf] }
  0x27   :  { %v7027_v8 = vor.u32 %v9890_v6, %v7026_v5  ;;  %v7028_v10 = vld [vmem:[#allocation2 + $0x3c8] sm:$0xf0]  ;;  %v9873_v13 = vld [vmem:[#allocation2 + $0x33c] sm:$0xf0]  ;;  %v9865_v14 = vld [vmem:[#allocation2 + $0x304] sm:$0xf] }
  0x28   :  { %961 = vmatpush.bf16.msra.mxu0 %v7019_v3  ;;  %v7031_v12 = vor.u32 %v9882_v9, %v7028_v10  ;;  %v6956_v15 = vld [vmem:[#allocation2 + $0x340] sm:$0xf0]  ;;  %975 = vmatpush.bf16.msra.mxu1 %v7023_v7  ;;  %v6955_v16 = vor.u32 %v9873_v13, %v6954_v11  ;;  %v6962_v18 = vld [vmem:[#allocation2 + $0x308] sm:$0xf]  ;;  %v9866_v20 = vld [vmem:[#allocation2 + $0x30c] sm:$0xf] }
  0x29   :  { %989 = vmatpush.bf16.msra.mxu2 %v7027_v8  ;;  %v6959_v17 = vor.u32 %v9865_v14, %v6956_v15  ;;  %v9874_v19 = vld [vmem:[#allocation2 + $0x344] sm:$0xf0]  ;;  %v6964_v22 = vld [vmem:[#allocation2 + $0x348] sm:$0xf0]  ;;  %v6890_v23 = vld [vmem:[#allocation2 + $0x280] sm:$0xf] }
  0x2a   :  { %1003 = vmatpush.bf16.msra.mxu3 %v7031_v12  ;;  %v6963_v21 = vor.u32 %v9874_v19, %v6962_v18  ;;  %v9857_v24 = vld [vmem:[#allocation2 + $0x2bc] sm:$0xf0]  ;;  %v6967_v25 = vor.u32 %v9866_v20, %v6964_v22  ;;  %v9849_v26 = vld [vmem:[#allocation2 + $0x284] sm:$0xf]  ;;  %v6898_v28 = vld [vmem:[#allocation2 + $0x288] sm:$0xf] }
  0x2b   :  { %v6892_v27 = vld [vmem:[#allocation2 + $0x2c0] sm:$0xf0]  ;;  %v6891_v29 = vor.u32 %v9857_v24, %v6890_v23  ;;  %v9858_v30 = vld [vmem:[#allocation2 + $0x2c4] sm:$0xf0]  ;;  %v9850_v31 = vld [vmem:[#allocation2 + $0x28c] sm:$0xf] }
  0x2c   :  { %962 = vmatpush.bf16.msra.mxu0 %v6955_v16  ;;  %v6900_v32 = vld [vmem:[#allocation2 + $0x2c8] sm:$0xf0]  ;;  %976 = vmatpush.bf16.msra.mxu1 %v6959_v17  ;;  %v6895_v33 = vor.u32 %v9849_v26, %v6892_v27  ;;  %v6899_v34 = vor.u32 %v9858_v30, %v6898_v28  ;;  %v6826_v35 = vld [vmem:[#allocation2 + $0x200] sm:$0xf]  ;;  %v9833_v37 = vld [vmem:[#allocation2 + $0x204] sm:$0xf] }
  0x2d   :  { %990 = vmatpush.bf16.msra.mxu2 %v6963_v21  ;;  %v9841_v36 = vld [vmem:[#allocation2 + $0x23c] sm:$0xf0]  ;;  %v6903_v38 = vor.u32 %v9850_v31, %v6900_v32  ;;  %v6828_v39 = vld [vmem:[#allocation2 + $0x240] sm:$0xf0]  ;;  %v6834_v40 = vld [vmem:[#allocation2 + $0x208] sm:$0xf] }
  0x2e   :  { %1004 = vmatpush.bf16.msra.mxu3 %v6967_v25  ;;  %v9842_v41 = vld [vmem:[#allocation2 + $0x244] sm:$0xf0]  ;;  %v9834_v42 = vld [vmem:[#allocation2 + $0x20c] sm:$0xf]  ;;  %v6827_v44 = vor.u32 %v9841_v36, %v6826_v35  ;;  %v6831_v45 = vor.u32 %v9833_v37, %v6828_v39  ;;  %v6762_v47 = vld [vmem:[#allocation2 + $0x180] sm:$0xf] }
  0x2f   :  { %v6836_v43 = vld [vmem:[#allocation2 + $0x248] sm:$0xf0]  ;;  %v6835_v46 = vor.u32 %v9842_v41, %v6834_v40  ;;  %v9825_v48 = vld [vmem:[#allocation2 + $0x1bc] sm:$0xf0]  ;;  %v9817_v49 = vld [vmem:[#allocation2 + $0x184] sm:$0xf] }
  0x30   :  { %963 = vmatpush.bf16.msra.mxu0 %v6891_v29  ;;  %977 = vmatpush.bf16.msra.mxu1 %v6895_v33  ;;  %v6839_v50 = vor.u32 %v9834_v42, %v6836_v43  ;;  %v6764_v51 = vld [vmem:[#allocation2 + $0x1c0] sm:$0xf0]  ;;  %v6770_v52 = vld [vmem:[#allocation2 + $0x188] sm:$0xf]  ;;  %v9818_v54 = vld [vmem:[#allocation2 + $0x18c] sm:$0xf]  ;;  %v6763_v56 = vor.u32 %v9825_v48, %v6762_v47 }
  0x31   :  { %991 = vmatpush.bf16.msra.mxu2 %v6899_v34  ;;  %v9826_v53 = vld [vmem:[#allocation2 + $0x1c4] sm:$0xf0]  ;;  %v6772_v55 = vld [vmem:[#allocation2 + $0x1c8] sm:$0xf0]  ;;  %v6767_v57 = vor.u32 %v9817_v49, %v6764_v51  ;;  %v6698_v59 = vld [vmem:[#allocation2 + $0x100] sm:$0xf] }
  0x32   :  { %1005 = vmatpush.bf16.msra.mxu3 %v6903_v38  ;;  %v6771_v58 = vor.u32 %v9826_v53, %v6770_v52  ;;  %v9809_v60 = vld [vmem:[#allocation2 + $0x13c] sm:$0xf0]  ;;  %v9801_v61 = vld [vmem:[#allocation2 + $0x104] sm:$0xf]  ;;  %v6775_v62 = vor.u32 %v9818_v54, %v6772_v55  ;;  %v6706_v0 = vld [vmem:[#allocation2 + $0x108] sm:$0xf] }
  0x33   :  { %v6700_v63 = vld [vmem:[#allocation2 + $0x140] sm:$0xf0]  ;;  %v9810_v1 = vld [vmem:[#allocation2 + $0x144] sm:$0xf0]  ;;  %v9802_v2 = vld [vmem:[#allocation2 + $0x10c] sm:$0xf]  ;;  %v6699_v4 = vor.u32 %v9809_v60, %v6698_v59 }
  0x34   :  { %964 = vmatpush.bf16.msra.mxu0 %v6827_v44  ;;  %978 = vmatpush.bf16.msra.mxu1 %v6831_v45  ;;  %v6708_v3 = vld [vmem:[#allocation2 + $0x148] sm:$0xf0]  ;;  %v6703_v5 = vor.u32 %v9801_v61, %v6700_v63  ;;  %v6707_v6 = vor.u32 %v9810_v1, %v6706_v0  ;;  %v6634_v7 = vld [vmem:[#allocation2 + $0x80] sm:$0xf]  ;;  %v9785_v9 = vld [vmem:[#allocation2 + $0x84] sm:$0xf] }
  0x35   :  { %992 = vmatpush.bf16.msra.mxu2 %v6835_v46  ;;  %v9793_v8 = vld [vmem:[#allocation2 + $0xbc] sm:$0xf0]  ;;  %v6711_v10 = vor.u32 %v9802_v2, %v6708_v3  ;;  %v6636_v11 = vld [vmem:[#allocation2 + $0xc0] sm:$0xf0]  ;;  %v6642_v12 = vld [vmem:[#allocation2 + $0x88] sm:$0xf] }
  0x36   :  { %1006 = vmatpush.bf16.msra.mxu3 %v6839_v50  ;;  %v9794_v13 = vld [vmem:[#allocation2 + $0xc4] sm:$0xf0]  ;;  %v9786_v14 = vld [vmem:[#allocation2 + $0x8c] sm:$0xf]  ;;  %v6635_v16 = vor.u32 %v9793_v8, %v6634_v7  ;;  %v6570_v17 = vld [vmem:[#allocation2] sm:$0xf]  ;;  %v6639_v19 = vor.u32 %v9785_v9, %v6636_v11 }
  0x37   :  { %v6644_v15 = vld [vmem:[#allocation2 + $0xc8] sm:$0xf0]  ;;  %v9777_v18 = vld [vmem:[#allocation2 + $0x3c] sm:$0xf0]  ;;  %v6643_v20 = vor.u32 %v9794_v13, %v6642_v12  ;;  %v9769_v21 = vld [vmem:[#allocation2 + $0x4] sm:$0xf] }
  0x38   :  { %965 = vmatpush.bf16.msra.mxu0 %v6763_v56  ;;  %979 = vmatpush.bf16.msra.mxu1 %v6767_v57  ;;  %v6572_v22 = vld [vmem:[#allocation2 + $0x40] sm:$0xf0]  ;;  %v6578_v23 = vld [vmem:[#allocation2 + $0x8] sm:$0xf]  ;;  %v6647_v24 = vor.u32 %v9786_v14, %v6644_v15  ;;  %v9770_v26 = vld [vmem:[#allocation2 + $0xc] sm:$0xf]  ;;  %v6571_v31 = vor.u32 %v9777_v18, %v6570_v17 }
  0x39   :  { %993 = vmatpush.bf16.msra.mxu2 %v6771_v58  ;;  %v9778_v25 = vld [vmem:[#allocation2 + $0x44] sm:$0xf0]  ;;  %v6580_v27 = vld [vmem:[#allocation2 + $0x48] sm:$0xf0]  ;;  %v7034_v28 = vld [vmem:[#allocation2 + $0x390] sm:$0xf]  ;;  %v6575_v35 = vor.u32 %v9769_v21, %v6572_v22 }
  0x3a   :  { %1007 = vmatpush.bf16.msra.mxu3 %v6775_v62  ;;  %v9891_v29 = vld [vmem:[#allocation2 + $0x3cc] sm:$0xf0]  ;;  %v9883_v30 = vld [vmem:[#allocation2 + $0x394] sm:$0xf]  ;;  %v7042_v33 = vld [vmem:[#allocation2 + $0x398] sm:$0xf]  ;;  %v6579_v36 = vor.u32 %v9778_v25, %v6578_v23  ;;  %v6583_v39 = vor.u32 %v9770_v26, %v6580_v27 }
  0x3b   :  { %v7036_v32 = vld [vmem:[#allocation2 + $0x3d0] sm:$0xf0]  ;;  %v9892_v34 = vld [vmem:[#allocation2 + $0x3d4] sm:$0xf0]  ;;  %v9884_v37 = vld [vmem:[#allocation2 + $0x39c] sm:$0xf]  ;;  %v7035_v40 = vor.u32 %v9891_v29, %v7034_v28 }
  0x3c   :  { %966 = vmatpush.bf16.msra.mxu0 %v6699_v4  ;;  %980 = vmatpush.bf16.msra.mxu1 %v6703_v5  ;;  %v7044_v38 = vld [vmem:[#allocation2 + $0x3d8] sm:$0xf0]  ;;  %v10878_v41 = vld [vmem:[%s11278_s0] sm:$0xff]  ;;  %v7039_v42 = vor.u32 %v9883_v30, %v7036_v32  ;;  %v7043_v43 = vor.u32 %v9892_v34, %v7042_v33  ;;  %v6970_v44 = vld [vmem:[#allocation2 + $0x310] sm:$0xf] }
  0x3d   :  { %994 = vmatpush.bf16.msra.mxu2 %v6707_v6  ;;  %v9875_v45 = vld [vmem:[#allocation2 + $0x34c] sm:$0xf0]  ;;  %v9867_v46 = vld [vmem:[#allocation2 + $0x314] sm:$0xf]  ;;  %v7047_v47 = vor.u32 %v9884_v37, %v7044_v38  ;;  %v6978_v49 = vld [vmem:[#allocation2 + $0x318] sm:$0xf] }
  0x3e   :  { %1008 = vmatpush.bf16.msra.mxu3 %v6711_v10  ;;  %v6972_v48 = vld [vmem:[#allocation2 + $0x350] sm:$0xf0]  ;;  %v9876_v50 = vld [vmem:[#allocation2 + $0x354] sm:$0xf0]  ;;  %v9868_v51 = vld [vmem:[#allocation2 + $0x31c] sm:$0xf]  ;;  %v6971_v53 = vor.u32 %v9875_v45, %v6970_v44 }
  0x3f   :  { %v6980_v52 = vld [vmem:[#allocation2 + $0x358] sm:$0xf0]  ;;  %v6975_v54 = vor.u32 %v9867_v46, %v6972_v48  ;;  %v6979_v55 = vor.u32 %v9876_v50, %v6978_v49  ;;  %v6906_v56 = vld [vmem:[#allocation2 + $0x290] sm:$0xf]  ;;  %v9851_v58 = vld [vmem:[#allocation2 + $0x294] sm:$0xf] }
  0x40   :  { %967 = vmatpush.bf16.msra.mxu0 %v6635_v16  ;;  %981 = vmatpush.bf16.msra.mxu1 %v6639_v19  ;;  %v9859_v57 = vld [vmem:[#allocation2 + $0x2cc] sm:$0xf0]  ;;  %v6983_v59 = vor.u32 %v9868_v51, %v6980_v52  ;;  %v6908_v60 = vld [vmem:[#allocation2 + $0x2d0] sm:$0xf0]  ;;  %v6914_v61 = vld [vmem:[#allocation2 + $0x298] sm:$0xf] }
  0x41   :  { %995 = vmatpush.bf16.msra.mxu2 %v6643_v20  ;;  %v9860_v62 = vld [vmem:[#allocation2 + $0x2d4] sm:$0xf0]  ;;  %v9852_v63 = vld [vmem:[#allocation2 + $0x29c] sm:$0xf]  ;;  %v6907_v1 = vor.u32 %v9859_v57, %v6906_v56  ;;  %v6911_v2 = vor.u32 %v9851_v58, %v6908_v60  ;;  %v6842_v4 = vld [vmem:[#allocation2 + $0x210] sm:$0xf] }
  0x42   :  { %1009 = vmatpush.bf16.msra.mxu3 %v6647_v24  ;;  %v6916_v0 = vld [vmem:[#allocation2 + $0x2d8] sm:$0xf0]  ;;  %v6915_v3 = vor.u32 %v9860_v62, %v6914_v61  ;;  %v9843_v5 = vld [vmem:[#allocation2 + $0x24c] sm:$0xf0]  ;;  %v9835_v6 = vld [vmem:[#allocation2 + $0x214] sm:$0xf] }
  0x43   :  { %v6919_v7 = vor.u32 %v9852_v63, %v6916_v0  ;;  %v6844_v8 = vld [vmem:[#allocation2 + $0x250] sm:$0xf0]  ;;  %v6850_v9 = vld [vmem:[#allocation2 + $0x218] sm:$0xf]  ;;  %v9836_v11 = vld [vmem:[#allocation2 + $0x21c] sm:$0xf]  ;;  %v6843_v13 = vor.u32 %v9843_v5, %v6842_v4 }
  0x44   :  { %968 = vmatpush.bf16.msra.mxu0 %v6571_v31  ;;  %982 = vmatpush.bf16.msra.mxu1 %v6575_v35  ;;  %v9844_v10 = vld [vmem:[#allocation2 + $0x254] sm:$0xf0]  ;;  %v6852_v12 = vld [vmem:[#allocation2 + $0x258] sm:$0xf0]  ;;  %v6847_v14 = vor.u32 %v9835_v6, %v6844_v8  ;;  %v6778_v16 = vld [vmem:[#allocation2 + $0x190] sm:$0xf] }
  0x45   :  { %996 = vmatpush.bf16.msra.mxu2 %v6579_v36  ;;  %v6851_v15 = vor.u32 %v9844_v10, %v6850_v9  ;;  %v9827_v17 = vld [vmem:[#allocation2 + $0x1cc] sm:$0xf0]  ;;  %v9819_v18 = vld [vmem:[#allocation2 + $0x194] sm:$0xf]  ;;  %v6855_v19 = vor.u32 %v9836_v11, %v6852_v12  ;;  %v6786_v21 = vld [vmem:[#allocation2 + $0x198] sm:$0xf] }
  0x46   :  { %1010 = vmatpush.bf16.msra.mxu3 %v6583_v39  ;;  %v6780_v20 = vld [vmem:[#allocation2 + $0x1d0] sm:$0xf0]  ;;  %v9828_v22 = vld [vmem:[#allocation2 + $0x1d4] sm:$0xf0]  ;;  %v9820_v23 = vld [vmem:[#allocation2 + $0x19c] sm:$0xf]  ;;  %v6779_v25 = vor.u32 %v9827_v17, %v6778_v16 }
  0x47   :  { %969 = vmatmul.bf16.vlgmr.msra.gmra.mxu0 %v10878_v41  ;;  %983 = vmatmul.bf16.vlgmr.msra.gmra.mxu1 %v10878_v41  ;;  %v6788_v24 = vld [vmem:[#allocation2 + $0x1d8] sm:$0xf0]  ;;  %v6783_v26 = vor.u32 %v9819_v18, %v6780_v20  ;;  %v6787_v27 = vor.u32 %v9828_v22, %v6786_v21  ;;  %v6714_v28 = vld [vmem:[#allocation2 + $0x110] sm:$0xf]  ;;  %v9803_v30 = vld [vmem:[#allocation2 + $0x114] sm:$0xf] }
  0x48   :  { %1017 = vmatpush.bf16.msrb.mxu0 %v7035_v40  ;;  %1031 = vmatpush.bf16.msrb.mxu1 %v7039_v42  ;;  %v9811_v29 = vld [vmem:[#allocation2 + $0x14c] sm:$0xf0]  ;;  %v6791_v31 = vor.u32 %v9820_v23, %v6788_v24  ;;  %v6716_v32 = vld [vmem:[#allocation2 + $0x150] sm:$0xf0]  ;;  %v6722_v33 = vld [vmem:[#allocation2 + $0x118] sm:$0xf] }
  0x49   :  { %1045 = vmatpush.bf16.msrb.mxu2 %v7043_v43  ;;  %1011 = vmatmul.bf16.vlgmr.msra.gmra.mxu3 %v10878_v41  ;;  %v9812_v34 = vld [vmem:[#allocation2 + $0x154] sm:$0xf0]  ;;  %v9804_v35 = vld [vmem:[#allocation2 + $0x11c] sm:$0xf]  ;;  %v6715_v37 = vor.u32 %v9811_v29, %v6714_v28  ;;  %v6719_v38 = vor.u32 %v9803_v30, %v6716_v32  ;;  %v6650_v40 = vld [vmem:[#allocation2 + $0x90] sm:$0xf] }
  0x4a   :  { %1059 = vmatpush.bf16.msrb.mxu3 %v7047_v47  ;;  %997 = vmatmul.bf16.vlgmr.msra.gmra.mxu2 %v10878_v41  ;;  %v6724_v36 = vld [vmem:[#allocation2 + $0x158] sm:$0xf0]  ;;  %v6723_v39 = vor.u32 %v9812_v34, %v6722_v33  ;;  %v9795_v42 = vld [vmem:[#allocation2 + $0xcc] sm:$0xf0]  ;;  %v9787_v43 = vld [vmem:[#allocation2 + $0x94] sm:$0xf] }
  0x4b   :  { %v6727_v44 = vor.u32 %v9804_v35, %v6724_v36  ;;  %v6652_v45 = vld [vmem:[#allocation2 + $0xd0] sm:$0xf0]  ;;  %v6658_v46 = vld [vmem:[#allocation2 + $0x98] sm:$0xf]  ;;  %v9788_v48 = vld [vmem:[#allocation2 + $0x9c] sm:$0xf]  ;;  %v6651_v50 = vor.u32 %v9795_v42, %v6650_v40 }
  0x4c   :  { %1018 = vmatpush.bf16.msrb.mxu0 %v6971_v53  ;;  %1032 = vmatpush.bf16.msrb.mxu1 %v6975_v54  ;;  %v9796_v47 = vld [vmem:[#allocation2 + $0xd4] sm:$0xf0]  ;;  %v6660_v49 = vld [vmem:[#allocation2 + $0xd8] sm:$0xf0]  ;;  %v6586_v51 = vld [vmem:[#allocation2 + $0x10] sm:$0xf]  ;;  %v6655_v53 = vor.u32 %v9787_v43, %v6652_v45 }
  0x4d   :  { %1046 = vmatpush.bf16.msrb.mxu2 %v6979_v55  ;;  %v9779_v52 = vld [vmem:[#allocation2 + $0x4c] sm:$0xf0]  ;;  %v6659_v54 = vor.u32 %v9796_v47, %v6658_v46  ;;  %v9771_v55 = vld [vmem:[#allocation2 + $0x14] sm:$0xf]  ;;  %v6594_v57 = vld [vmem:[#allocation2 + $0x18] sm:$0xf]  ;;  %v6663_v58 = vor.u32 %v9788_v48, %v6660_v49 }
  0x4e   :  { %1060 = vmatpush.bf16.msrb.mxu3 %v6983_v59  ;;  %v6588_v56 = vld [vmem:[#allocation2 + $0x50] sm:$0xf0]  ;;  %v9780_v59 = vld [vmem:[#allocation2 + $0x54] sm:$0xf0]  ;;  %v9772_v60 = vld [vmem:[#allocation2 + $0x1c] sm:$0xf] }
  0x4f   :  { %v6596_v61 = vld [vmem:[#allocation2 + $0x58] sm:$0xf0]  ;;  %v7050_v62 = vld [vmem:[#allocation2 + $0x3a0] sm:$0xf]  ;;  %v9885_v0 = vld [vmem:[#allocation2 + $0x3a4] sm:$0xf]  ;;  %v6591_v5 = vor.u32 %v9771_v55, %v6588_v56  ;;  %v6595_v6 = vor.u32 %v9780_v59, %v6594_v57 }
  0x50   :  { %1019 = vmatpush.bf16.msrb.mxu0 %v6907_v1  ;;  %1033 = vmatpush.bf16.msrb.mxu1 %v6911_v2  ;;  %v9893_v63 = vld [vmem:[#allocation2 + $0x3dc] sm:$0xf0]  ;;  %v6587_v1 = vor.u32 %v9779_v52, %v6586_v51  ;;  %v7052_v2 = vld [vmem:[#allocation2 + $0x3e0] sm:$0xf0]  ;;  %v9894_v4 = vld [vmem:[#allocation2 + $0x3e4] sm:$0xf0]  ;;  %v6599_v9 = vor.u32 %v9772_v60, %v6596_v61 }
  0x51   :  { %1047 = vmatpush.bf16.msrb.mxu2 %v6915_v3  ;;  %v7058_v3 = vld [vmem:[#allocation2 + $0x3a8] sm:$0xf]  ;;  %v7060_v8 = vld [vmem:[#allocation2 + $0x3e8] sm:$0xf0]  ;;  %v7051_v10 = vor.u32 %v9893_v63, %v7050_v62  ;;  %v7055_v11 = vor.u32 %v9885_v0, %v7052_v2  ;;  %v6988_v17 = vld [vmem:[#allocation2 + $0x360] sm:$0xf0] }
  0x52   :  { %1061 = vmatpush.bf16.msrb.mxu3 %v6919_v7  ;;  %v9886_v7 = vld [vmem:[#allocation2 + $0x3ac] sm:$0xf]  ;;  %v7059_v12 = vor.u32 %v9894_v4, %v7058_v3  ;;  %v6994_v18 = vld [vmem:[#allocation2 + $0x328] sm:$0xf]  ;;  %v6924_v29 = vld [vmem:[#allocation2 + $0x2e0] sm:$0xf0] }
  0x53   :  { %v7063_v16 = vor.u32 %v9886_v7, %v7060_v8  ;;  %v9870_v20 = vld [vmem:[#allocation2 + $0x32c] sm:$0xf]  ;;  %v6930_v30 = vld [vmem:[#allocation2 + $0x2a8] sm:$0xf]  ;;  %v6860_v42 = vld [vmem:[#allocation2 + $0x260] sm:$0xf0] }
  0x54   :  { %1020 = vmatpush.bf16.msrb.mxu0 %v6843_v13  ;;  %1034 = vmatpush.bf16.msrb.mxu1 %v6847_v14  ;;  %v6986_v13 = vld [vmem:[#allocation2 + $0x320] sm:$0xf]  ;;  %v6996_v21 = vld [vmem:[#allocation2 + $0x368] sm:$0xf0]  ;;  %v6866_v43 = vld [vmem:[#allocation2 + $0x228] sm:$0xf] }
  0x55   :  { %1048 = vmatpush.bf16.msrb.mxu2 %v6851_v15  ;;  %v9877_v14 = vld [vmem:[#allocation2 + $0x35c] sm:$0xf0]  ;;  %v9869_v15 = vld [vmem:[#allocation2 + $0x324] sm:$0xf]  ;;  %v6999_v28 = vor.u32 %v9870_v20, %v6996_v21  ;;  %v9854_v32 = vld [vmem:[#allocation2 + $0x2ac] sm:$0xf] }
  0x56   :  { %1062 = vmatpush.bf16.msrb.mxu3 %v6855_v19  ;;  %v9878_v19 = vld [vmem:[#allocation2 + $0x364] sm:$0xf0]  ;;  %v6987_v22 = vor.u32 %v9877_v14, %v6986_v13  ;;  %v6991_v23 = vor.u32 %v9869_v15, %v6988_v17  ;;  %v6932_v33 = vld [vmem:[#allocation2 + $0x2e8] sm:$0xf0]  ;;  %v9829_v51 = vld [vmem:[#allocation2 + $0x1dc] sm:$0xf0] }
  0x57   :  { %v6995_v24 = vor.u32 %v9878_v19, %v6994_v18  ;;  %v6935_v40 = vor.u32 %v9854_v32, %v6932_v33  ;;  %v9838_v45 = vld [vmem:[#allocation2 + $0x22c] sm:$0xf]  ;;  %v9821_v52 = vld [vmem:[#allocation2 + $0x1a4] sm:$0xf]  ;;  %v6802_v55 = vld [vmem:[#allocation2 + $0x1a8] sm:$0xf] }
  0x58   :  { %1021 = vmatpush.bf16.msrb.mxu0 %v6779_v25  ;;  %1035 = vmatpush.bf16.msrb.mxu1 %v6783_v26  ;;  %v6922_v25 = vld [vmem:[#allocation2 + $0x2a0] sm:$0xf]  ;;  %v6868_v46 = vld [vmem:[#allocation2 + $0x268] sm:$0xf0]  ;;  %v9830_v56 = vld [vmem:[#allocation2 + $0x1e4] sm:$0xf0] }
  0x59   :  { %1049 = vmatpush.bf16.msrb.mxu2 %v6787_v27  ;;  %v9861_v26 = vld [vmem:[#allocation2 + $0x2dc] sm:$0xf0]  ;;  %v9853_v27 = vld [vmem:[#allocation2 + $0x2a4] sm:$0xf]  ;;  %v9822_v57 = vld [vmem:[#allocation2 + $0x1ac] sm:$0xf]  ;;  %v6803_v61 = vor.u32 %v9830_v56, %v6802_v55 }
  0x5a   :  { %1063 = vmatpush.bf16.msrb.mxu3 %v6791_v31  ;;  %v9862_v31 = vld [vmem:[#allocation2 + $0x2e4] sm:$0xf0]  ;;  %v6923_v34 = vor.u32 %v9861_v26, %v6922_v25  ;;  %v6927_v35 = vor.u32 %v9853_v27, %v6924_v29  ;;  %v6730_v62 = vld [vmem:[#allocation2 + $0x120] sm:$0xf]  ;;  %v9805_v0 = vld [vmem:[#allocation2 + $0x124] sm:$0xf] }
  0x5b   :  { %v6931_v36 = vor.u32 %v9862_v31, %v6930_v30  ;;  %v9813_v63 = vld [vmem:[#allocation2 + $0x15c] sm:$0xf0]  ;;  %v6732_v2 = vld [vmem:[#allocation2 + $0x160] sm:$0xf0]  ;;  %v6738_v3 = vld [vmem:[#allocation2 + $0x128] sm:$0xf] }
  0x5c   :  { %1022 = vmatpush.bf16.msrb.mxu0 %v6715_v37  ;;  %1036 = vmatpush.bf16.msrb.mxu1 %v6719_v38  ;;  %v6858_v37 = vld [vmem:[#allocation2 + $0x220] sm:$0xf]  ;;  %v9814_v4 = vld [vmem:[#allocation2 + $0x164] sm:$0xf0]  ;;  %v6731_v7 = vor.u32 %v9813_v63, %v6730_v62  ;;  %v6735_v8 = vor.u32 %v9805_v0, %v6732_v2  ;;  %v6668_v14 = vld [vmem:[#allocation2 + $0xe0] sm:$0xf0] }
  0x5d   :  { %1050 = vmatpush.bf16.msrb.mxu2 %v6723_v39  ;;  %v9845_v38 = vld [vmem:[#allocation2 + $0x25c] sm:$0xf0]  ;;  %v9837_v39 = vld [vmem:[#allocation2 + $0x224] sm:$0xf]  ;;  %v6674_v15 = vld [vmem:[#allocation2 + $0xa8] sm:$0xf] }
  0x5e   :  { %1064 = vmatpush.bf16.msrb.mxu3 %v6727_v44  ;;  %v9846_v44 = vld [vmem:[#allocation2 + $0x264] sm:$0xf0]  ;;  %v6859_v47 = vor.u32 %v9845_v38, %v6858_v37  ;;  %v6863_v48 = vor.u32 %v9837_v39, %v6860_v42  ;;  %v9790_v17 = vld [vmem:[#allocation2 + $0xac] sm:$0xf]  ;;  %v6602_v20 = vld [vmem:[#allocation2 + $0x20] sm:$0xf] }
  0x5f   :  { %v6867_v49 = vor.u32 %v9846_v44, %v6866_v43  ;;  %v6676_v18 = vld [vmem:[#allocation2 + $0xe8] sm:$0xf0]  ;;  %v9781_v21 = vld [vmem:[#allocation2 + $0x5c] sm:$0xf0]  ;;  %v6604_v25 = vld [vmem:[#allocation2 + $0x60] sm:$0xf0] }
  0x60   :  { %1023 = vmatpush.bf16.msrb.mxu0 %v6651_v50  ;;  %1037 = vmatpush.bf16.msrb.mxu1 %v6655_v53  ;;  %v6794_v50 = vld [vmem:[#allocation2 + $0x1a0] sm:$0xf]  ;;  %v6871_v53 = vor.u32 %v9838_v45, %v6868_v46  ;;  %v6610_v26 = vld [vmem:[#allocation2 + $0x28] sm:$0xf]  ;;  %v6679_v27 = vor.u32 %v9790_v17, %v6676_v18  ;;  %v9774_v29 = vld [vmem:[#allocation2 + $0x2c] sm:$0xf] }
  0x61   :  { %1051 = vmatpush.bf16.msrb.mxu2 %v6659_v54  ;;  %v6796_v54 = vld [vmem:[#allocation2 + $0x1e0] sm:$0xf0]  ;;  %v6795_v59 = vor.u32 %v9829_v51, %v6794_v50  ;;  %v6612_v30 = vld [vmem:[#allocation2 + $0x68] sm:$0xf0]  ;;  %v7066_v31 = vld [vmem:[#allocation2 + $0x3b0] sm:$0xf] }
  0x62   :  { %1065 = vmatpush.bf16.msrb.mxu3 %v6663_v58  ;;  %v6804_v58 = vld [vmem:[#allocation2 + $0x1e8] sm:$0xf0]  ;;  %v6799_v60 = vor.u32 %v9821_v52, %v6796_v54  ;;  %v9895_v32 = vld [vmem:[#allocation2 + $0x3ec] sm:$0xf0]  ;;  %v9887_v33 = vld [vmem:[#allocation2 + $0x3b4] sm:$0xf]  ;;  %v6615_v43 = vor.u32 %v9774_v29, %v6612_v30 }
  0x63   :  { %v9896_v37 = vld [vmem:[#allocation2 + $0x3f4] sm:$0xf0]  ;;  %v7076_v42 = vld [vmem:[#allocation2 + $0x3f8] sm:$0xf0]  ;;  %v7067_v44 = vor.u32 %v9895_v32, %v7066_v31  ;;  %v7004_v51 = vld [vmem:[#allocation2 + $0x370] sm:$0xf0] }
  0x64   :  { %1024 = vmatpush.bf16.msrb.mxu0 %v6587_v1  ;;  %1038 = vmatpush.bf16.msrb.mxu1 %v6591_v5  ;;  %v6807_v1 = vor.u32 %v9822_v57, %v6804_v58  ;;  %v9806_v5 = vld [vmem:[#allocation2 + $0x12c] sm:$0xf]  ;;  %v7010_v52 = vld [vmem:[#allocation2 + $0x338] sm:$0xf]  ;;  %v9872_v54 = vld [vmem:[#allocation2 + $0x33c] sm:$0xf] }
  0x65   :  { %1052 = vmatpush.bf16.msrb.mxu2 %v6595_v6  ;;  %v6740_v6 = vld [vmem:[#allocation2 + $0x168] sm:$0xf0]  ;;  %v7012_v55 = vld [vmem:[#allocation2 + $0x378] sm:$0xf0]  ;;  %v6940_v63 = vld [vmem:[#allocation2 + $0x2f0] sm:$0xf0] }
  0x66   :  { %1066 = vmatpush.bf16.msrb.mxu3 %v6599_v9  ;;  %v6739_v9 = vor.u32 %v9814_v4, %v6738_v3  ;;  %v6743_v13 = vor.u32 %v9806_v5, %v6740_v6  ;;  %v7015_v62 = vor.u32 %v9872_v54, %v7012_v55  ;;  %v6946_v0 = vld [vmem:[#allocation2 + $0x2b8] sm:$0xf]  ;;  %v9856_v2 = vld [vmem:[#allocation2 + $0x2bc] sm:$0xf]  ;;  %v6746_v31 = vld [vmem:[#allocation2 + $0x130] sm:$0xf] }
  0x67   :  { %1025 = vmatmul.bf16.vlgmr.msrb.gmra.mxu0 %v10878_v41  ;;  %1039 = vmatmul.bf16.vlgmr.msrb.gmra.mxu1 %v10878_v41  ;;  %v6948_v3 = vld [vmem:[#allocation2 + $0x2f8] sm:$0xf0]  ;;  %v9815_v32 = vld [vmem:[#allocation2 + $0x16c] sm:$0xf0] }
  0x68   :  { %1073 = vmatpush.bf16.msra.mxu0 %v7051_v10  ;;  %1087 = vmatpush.bf16.msra.mxu1 %v7055_v11  ;;  %v6666_v10 = vld [vmem:[#allocation2 + $0xa0] sm:$0xf]  ;;  %v6618_v54 = vld [vmem:[#allocation2 + $0x30] sm:$0xf] }
  0x69   :  { %1101 = vmatpush.bf16.msra.mxu2 %v7059_v12  ;;  %1067 = vmatmul.bf16.vlgmr.msrb.gmra.mxu3 %v10878_v41  ;;  %v9797_v11 = vld [vmem:[#allocation2 + $0xdc] sm:$0xf0]  ;;  %v9789_v12 = vld [vmem:[#allocation2 + $0xa4] sm:$0xf] }
  0x6a   :  { %1115 = vmatpush.bf16.msra.mxu3 %v7063_v16  ;;  %1053 = vmatmul.bf16.vlgmr.msrb.gmra.mxu2 %v10878_v41  ;;  %v9798_v16 = vld [vmem:[#allocation2 + $0xe4] sm:$0xf0]  ;;  %v6667_v19 = vor.u32 %v9797_v11, %v6666_v10  ;;  %v6951_v10 = vor.u32 %v9856_v2, %v6948_v3  ;;  %v6876_v11 = vld [vmem:[#allocation2 + $0x270] sm:$0xf0]  ;;  %v9927_v2 = vld [vmem:[#allocation6 + $0xec] sm:$0xf0] }
  0x6c   :  { %1074 = vmatpush.bf16.msra.mxu0 %v6987_v22  ;;  %1088 = vmatpush.bf16.msra.mxu1 %v6991_v23  ;;  %v6671_v22 = vor.u32 %v9789_v12, %v6668_v14  ;;  %v6675_v23 = vor.u32 %v9798_v16, %v6674_v15  ;;  %v6882_v12 = vld [vmem:[#allocation2 + $0x238] sm:$0xf]  ;;  %v9840_v14 = vld [vmem:[#allocation2 + $0x23c] sm:$0xf] }
  0x6d   :  { %1102 = vmatpush.bf16.msra.mxu2 %v6995_v24  ;;  %v9773_v24 = vld [vmem:[#allocation2 + $0x24] sm:$0xf]  ;;  %v6884_v15 = vld [vmem:[#allocation2 + $0x278] sm:$0xf0] }
  0x6e   :  { %1116 = vmatpush.bf16.msra.mxu3 %v6999_v28  ;;  %v9782_v28 = vld [vmem:[#allocation2 + $0x64] sm:$0xf0]  ;;  %v6607_v38 = vor.u32 %v9773_v24, %v6604_v25  ;;  %v6818_v24 = vld [vmem:[#allocation2 + $0x1b8] sm:$0xf] }
  0x6f   :  { %v6611_v39 = vor.u32 %v9782_v28, %v6610_v26  ;;  %v9832_v25 = vld [vmem:[#allocation2 + $0x1f4] sm:$0xf0]  ;;  %v9824_v26 = vld [vmem:[#allocation2 + $0x1bc] sm:$0xf] }
  0x70   :  { %1075 = vmatpush.bf16.msra.mxu0 %v6923_v34  ;;  %1089 = vmatpush.bf16.msra.mxu1 %v6927_v35  ;;  %v6603_v34 = vor.u32 %v9781_v21, %v6602_v20  ;;  %v7068_v35 = vld [vmem:[#allocation2 + $0x3f0] sm:$0xf0]  ;;  %v9831_v20 = vld [vmem:[#allocation2 + $0x1ec] sm:$0xf0]  ;;  %v6819_v30 = vor.u32 %v9832_v25, %v6818_v24 }
  0x71   :  { %1103 = vmatpush.bf16.msra.mxu2 %v6931_v36  ;;  %v7074_v36 = vld [vmem:[#allocation2 + $0x3b8] sm:$0xf]  ;;  %v7071_v45 = vor.u32 %v9887_v33, %v7068_v35  ;;  %v9823_v21 = vld [vmem:[#allocation2 + $0x1b4] sm:$0xf]  ;;  %v7562_v24 = vld [vmem:[#allocation6 + $0x3c0] sm:$0xf] }
  0x72   :  { %1117 = vmatpush.bf16.msra.mxu3 %v6935_v40  ;;  %v9888_v40 = vld [vmem:[#allocation2 + $0x3bc] sm:$0xf]  ;;  %v7075_v46 = vor.u32 %v9896_v37, %v7074_v36  ;;  %v9807_v33 = vld [vmem:[#allocation2 + $0x134] sm:$0xf]  ;;  %v6754_v36 = vld [vmem:[#allocation2 + $0x138] sm:$0xf] }
  0x73   :  { %v7079_v50 = vor.u32 %v9888_v40, %v7076_v42  ;;  %v6748_v35 = vld [vmem:[#allocation2 + $0x170] sm:$0xf0]  ;;  %v9816_v37 = vld [vmem:[#allocation2 + $0x174] sm:$0xf0]  ;;  %v6747_v40 = vor.u32 %v9815_v32, %v6746_v31 }
  0x74   :  { %1076 = vmatpush.bf16.msra.mxu0 %v6859_v47  ;;  %1090 = vmatpush.bf16.msra.mxu1 %v6863_v48  ;;  %v7002_v47 = vld [vmem:[#allocation2 + $0x330] sm:$0xf]  ;;  %v6751_v42 = vor.u32 %v9807_v33, %v6748_v35  ;;  %v9983_v35 = vld [vmem:[#allocation6 + $0x2ac] sm:$0xf0] }
  0x75   :  { %1104 = vmatpush.bf16.msra.mxu2 %v6867_v49  ;;  %v9879_v48 = vld [vmem:[#allocation2 + $0x36c] sm:$0xf0]  ;;  %v9871_v49 = vld [vmem:[#allocation2 + $0x334] sm:$0xf] }
  0x76   :  { %1118 = vmatpush.bf16.msra.mxu3 %v6871_v53  ;;  %v9880_v53 = vld [vmem:[#allocation2 + $0x374] sm:$0xf0]  ;;  %v7003_v56 = vor.u32 %v9879_v48, %v7002_v47  ;;  %v7007_v57 = vor.u32 %v9871_v49, %v7004_v51  ;;  %v6684_v48 = vld [vmem:[#allocation2 + $0xf0] sm:$0xf0]  ;;  %v9792_v51 = vld [vmem:[#allocation2 + $0xbc] sm:$0xf] }
  0x77   :  { %v7011_v58 = vor.u32 %v9880_v53, %v7010_v52  ;;  %v6690_v49 = vld [vmem:[#allocation2 + $0xb8] sm:$0xf]  ;;  %v6692_v52 = vld [vmem:[#allocation2 + $0xf8] sm:$0xf0] }
  0x78   :  { %1077 = vmatpush.bf16.msra.mxu0 %v6795_v59  ;;  %1091 = vmatpush.bf16.msra.mxu1 %v6799_v60  ;;  %v6938_v59 = vld [vmem:[#allocation2 + $0x2b0] sm:$0xf] }
  0x79   :  { %1105 = vmatpush.bf16.msra.mxu2 %v6803_v61  ;;  %v9863_v60 = vld [vmem:[#allocation2 + $0x2ec] sm:$0xf0]  ;;  %v9855_v61 = vld [vmem:[#allocation2 + $0x2b4] sm:$0xf] }
  0x7a   :  { %1119 = vmatpush.bf16.msra.mxu3 %v6807_v1  ;;  %v9864_v1 = vld [vmem:[#allocation2 + $0x2f4] sm:$0xf0]  ;;  %v6939_v4 = vor.u32 %v9863_v60, %v6938_v59  ;;  %v6943_v5 = vor.u32 %v9855_v61, %v6940_v63  ;;  %v6620_v59 = vld [vmem:[#allocation2 + $0x70] sm:$0xf0]  ;;  %v6695_v60 = vor.u32 %v9792_v51, %v6692_v52  ;;  %v9776_v63 = vld [vmem:[#allocation2 + $0x3c] sm:$0xf] }
  0x7b   :  { %v6947_v6 = vor.u32 %v9864_v1, %v6946_v0  ;;  %v6626_v61 = vld [vmem:[#allocation2 + $0x38] sm:$0xf]  ;;  %v6628_v0 = vld [vmem:[#allocation2 + $0x78] sm:$0xf0]  ;;  %v7194_v1 = vld [vmem:[#allocation6 + $0xe0] sm:$0xf] }
  0x7c   :  { %1078 = vmatpush.bf16.msra.mxu0 %v6731_v7  ;;  %1092 = vmatpush.bf16.msra.mxu1 %v6735_v8  ;;  %v6874_v7 = vld [vmem:[#allocation2 + $0x230] sm:$0xf]  ;;  %v9911_v52 = vld [vmem:[#allocation6 + $0x6c] sm:$0xf0] }
  0x7d   :  { %1106 = vmatpush.bf16.msra.mxu2 %v6739_v9  ;;  %v9847_v8 = vld [vmem:[#allocation2 + $0x26c] sm:$0xf0]  ;;  %v9839_v9 = vld [vmem:[#allocation2 + $0x234] sm:$0xf] }
  0x7e   :  { %1120 = vmatpush.bf16.msra.mxu3 %v6743_v13  ;;  %v9848_v13 = vld [vmem:[#allocation2 + $0x274] sm:$0xf0]  ;;  %v6875_v16 = vor.u32 %v9847_v8, %v6874_v7  ;;  %v6879_v17 = vor.u32 %v9839_v9, %v6876_v11  ;;  %v6631_v8 = vor.u32 %v9776_v63, %v6628_v0  ;;  %v7195_v9 = vor.u32 %v9927_v2, %v7194_v1  ;;  %v9991_v11 = vld [vmem:[#allocation6 + $0x2ec] sm:$0xf0]  ;;  %v7130_v51 = vld [vmem:[#allocation6 + $0x60] sm:$0xf] }
  0x7f   :  { %v6883_v18 = vor.u32 %v9848_v13, %v6882_v12  ;;  %v7578_v12 = vld [vmem:[#allocation6 + $0x3e0] sm:$0xf]  ;;  %v9907_v0 = vld [vmem:[#allocation6 + $0x4c] sm:$0xf0] }
  0x80   :  { %1079 = vmatpush.bf16.msra.mxu0 %v6667_v19  ;;  %1093 = vmatpush.bf16.msra.mxu1 %v6671_v22  ;;  %v6810_v19 = vld [vmem:[#allocation2 + $0x1b0] sm:$0xf]  ;;  %v6887_v22 = vor.u32 %v9840_v14, %v6884_v15  ;;  %v10023_v14 = vld [vmem:[#allocation6 + $0x3ec] sm:$0xf0] }
  0x81   :  { %1107 = vmatpush.bf16.msra.mxu2 %v6675_v23  ;;  %v6812_v23 = vld [vmem:[#allocation2 + $0x1f0] sm:$0xf0]  ;;  %v6811_v28 = vor.u32 %v9831_v20, %v6810_v19  ;;  %v7178_v15 = vld [vmem:[#allocation6 + $0xc0] sm:$0xf]  ;;  %v7579_v20 = vor.u32 %v10023_v14, %v7578_v12  ;;  %v9939_v2 = vld [vmem:[#allocation6 + $0x14c] sm:$0xf0] }
  0x82   :  { %1121 = vmatpush.bf16.msra.mxu3 %v6679_v27  ;;  %v6820_v27 = vld [vmem:[#allocation2 + $0x1f8] sm:$0xf0]  ;;  %v6815_v29 = vor.u32 %v9823_v21, %v6812_v23  ;;  %v9987_v23 = vld [vmem:[#allocation6 + $0x2cc] sm:$0xf0]  ;;  %v7114_v63 = vld [vmem:[#allocation6 + $0x40] sm:$0xf] }
  0x83   :  { %v7242_v1 = vld [vmem:[#allocation6 + $0x140] sm:$0xf]  ;;  %v9903_v12 = vld [vmem:[#allocation6 + $0x2c] sm:$0xf0] }
  0x84   :  { %1080 = vmatpush.bf16.msra.mxu0 %v6603_v34  ;;  %1094 = vmatpush.bf16.msra.mxu1 %v6607_v38  ;;  %v6823_v34 = vor.u32 %v9824_v26, %v6820_v27  ;;  %v9808_v38 = vld [vmem:[#allocation2 + $0x13c] sm:$0xf]  ;;  %v10019_v26 = vld [vmem:[#allocation6 + $0x3cc] sm:$0xf0]  ;;  %v7162_v27 = vld [vmem:[#allocation6 + $0xa0] sm:$0xf] }
  0x85   :  { %1108 = vmatpush.bf16.msra.mxu2 %v6611_v39  ;;  %v6756_v39 = vld [vmem:[#allocation2 + $0x178] sm:$0xf0]  ;;  %v7563_v32 = vor.u32 %v10019_v26, %v7562_v24  ;;  %v9935_v14 = vld [vmem:[#allocation6 + $0x12c] sm:$0xf0] }
  0x86   :  { %1122 = vmatpush.bf16.msra.mxu3 %v6615_v43  ;;  %v6755_v43 = vor.u32 %v9816_v37, %v6754_v36  ;;  %v6759_v47 = vor.u32 %v9808_v38, %v6756_v39  ;;  %v7546_v36 = vld [vmem:[#allocation6 + $0x3a0] sm:$0xf]  ;;  %v10015_v38 = vld [vmem:[#allocation6 + $0x3ac] sm:$0xf0] }
  0x87   :  { %1081 = vmatmul.bf16.vlgmr.msra.gmra.mxu0 %v10878_v41  ;;  %1095 = vmatmul.bf16.vlgmr.msra.gmra.mxu1 %v10878_v41  ;;  %v7146_v39 = vld [vmem:[#allocation6 + $0x80] sm:$0xf]  ;;  %v9899_v24 = vld [vmem:[#allocation6 + $0xc] sm:$0xf0] }
  0x88   :  { %1129 = vmatpush.bf16.msrb.mxu0 %v7067_v44  ;;  %1143 = vmatpush.bf16.msrb.mxu1 %v7071_v45  ;;  %v6682_v44 = vld [vmem:[#allocation2 + $0xb0] sm:$0xf]  ;;  %v9931_v26 = vld [vmem:[#allocation6 + $0x10c] sm:$0xf0] }
  0x89   :  { %1157 = vmatpush.bf16.msrb.mxu2 %v7075_v46  ;;  %1123 = vmatmul.bf16.vlgmr.msra.gmra.mxu3 %v10878_v41  ;;  %v9799_v45 = vld [vmem:[#allocation2 + $0xec] sm:$0xf0]  ;;  %v9791_v46 = vld [vmem:[#allocation2 + $0xb4] sm:$0xf] }
  0x8a   :  { %1171 = vmatpush.bf16.msrb.mxu3 %v7079_v50  ;;  %1109 = vmatmul.bf16.vlgmr.msra.gmra.mxu2 %v10878_v41  ;;  %v9800_v50 = vld [vmem:[#allocation2 + $0xf4] sm:$0xf0]  ;;  %v6683_v53 = vor.u32 %v9799_v45, %v6682_v44  ;;  %v6687_v55 = vor.u32 %v9791_v46, %v6684_v48  ;;  %v7402_v46 = vld [vmem:[#allocation6 + $0x280] sm:$0xf] }
  0x8b   :  { %v7530_v48 = vld [vmem:[#allocation6 + $0x380] sm:$0xf] }
  0x8c   :  { %1130 = vmatpush.bf16.msrb.mxu0 %v7003_v56  ;;  %1144 = vmatpush.bf16.msrb.mxu1 %v7007_v57  ;;  %v6691_v56 = vor.u32 %v9800_v50, %v6690_v49  ;;  %v9783_v57 = vld [vmem:[#allocation2 + $0x6c] sm:$0xf0]  ;;  %v10011_v50 = vld [vmem:[#allocation6 + $0x38c] sm:$0xf0] }
  0x8d   :  { %1158 = vmatpush.bf16.msrb.mxu2 %v7011_v58  ;;  %v9775_v58 = vld [vmem:[#allocation2 + $0x34] sm:$0xf]  ;;  %v6619_v3 = vor.u32 %v9783_v57, %v6618_v54  ;;  %v9943_v54 = vld [vmem:[#allocation6 + $0x16c] sm:$0xf0]  ;;  %v7131_v57 = vor.u32 %v9911_v52, %v7130_v51 }
  0x8e   :  { %1172 = vmatpush.bf16.msrb.mxu3 %v7015_v62  ;;  %v9784_v62 = vld [vmem:[#allocation2 + $0x74] sm:$0xf0] }
  0x8f   :  { %v6627_v7 = vor.u32 %v9784_v62, %v6626_v61  ;;  %v10007_v62 = vld [vmem:[#allocation6 + $0x36c] sm:$0xf0] }
  0x90   :  { %1131 = vmatpush.bf16.msrb.mxu0 %v6939_v4  ;;  %1145 = vmatpush.bf16.msrb.mxu1 %v6943_v5  ;;  %v7322_v4 = vld [vmem:[#allocation6 + $0x1e0] sm:$0xf]  ;;  %v9959_v5 = vld [vmem:[#allocation6 + $0x1ec] sm:$0xf0] }
  0x91   :  { %1159 = vmatpush.bf16.msrb.mxu2 %v6947_v6  ;;  %v6623_v6 = vor.u32 %v9775_v58, %v6620_v59  ;;  %v7323_v13 = vor.u32 %v9959_v5, %v7322_v4  ;;  %v7386_v58 = vld [vmem:[#allocation6 + $0x260] sm:$0xf]  ;;  %v9975_v59 = vld [vmem:[#allocation6 + $0x26c] sm:$0xf0]  ;;  %v7115_v5 = vor.u32 %v9907_v0, %v7114_v63 }
  0x92   :  { %1173 = vmatpush.bf16.msrb.mxu3 %v6951_v10  ;;  %v7450_v10 = vld [vmem:[#allocation6 + $0x2e0] sm:$0xf] }
  0x93   :  { %v7451_v19 = vor.u32 %v9991_v11, %v7450_v10  ;;  %v10003_v10 = vld [vmem:[#allocation6 + $0x34c] sm:$0xf0]  ;;  %v7098_v11 = vld [vmem:[#allocation6 + $0x20] sm:$0xf] }
  0x94   :  { %1132 = vmatpush.bf16.msrb.mxu0 %v6875_v16  ;;  %1146 = vmatpush.bf16.msrb.mxu1 %v6879_v17  ;;  %v9923_v16 = vld [vmem:[#allocation6 + $0xcc] sm:$0xf0]  ;;  %v7306_v17 = vld [vmem:[#allocation6 + $0x1c0] sm:$0xf] }
  0x95   :  { %1160 = vmatpush.bf16.msrb.mxu2 %v6883_v18  ;;  %v9955_v18 = vld [vmem:[#allocation6 + $0x1cc] sm:$0xf0]  ;;  %v7179_v21 = vor.u32 %v9923_v16, %v7178_v15  ;;  %v7354_v16 = vld [vmem:[#allocation6 + $0x220] sm:$0xf] }
  0x96   :  { %1174 = vmatpush.bf16.msrb.mxu3 %v6887_v22  ;;  %v7434_v22 = vld [vmem:[#allocation6 + $0x2c0] sm:$0xf]  ;;  %v7307_v25 = vor.u32 %v9955_v18, %v7306_v17  ;;  %v7099_v18 = vor.u32 %v9903_v12, %v7098_v11  ;;  %v10075_v11 = vld [vmem:[#allocation6 + $0x58c] sm:$0xf0] }
  0x97   :  { %v7435_v31 = vor.u32 %v9987_v23, %v7434_v22  ;;  %v7082_v23 = vld [vmem:[#allocation6] sm:$0xf] }
  0x98   :  { %1133 = vmatpush.bf16.msrb.mxu0 %v6811_v28  ;;  %1147 = vmatpush.bf16.msrb.mxu1 %v6815_v29  ;;  %v9919_v28 = vld [vmem:[#allocation6 + $0xac] sm:$0xf0]  ;;  %v7290_v29 = vld [vmem:[#allocation6 + $0x1a0] sm:$0xf] }
  0x99   :  { %1161 = vmatpush.bf16.msrb.mxu2 %v6819_v30  ;;  %v9951_v30 = vld [vmem:[#allocation6 + $0x1ac] sm:$0xf0]  ;;  %v7163_v33 = vor.u32 %v9919_v28, %v7162_v27  ;;  %v7706_v27 = vld [vmem:[#allocation6 + $0x4e0] sm:$0xf] }
  0x9a   :  { %1175 = vmatpush.bf16.msrb.mxu3 %v6823_v34  ;;  %v7418_v34 = vld [vmem:[#allocation6 + $0x2a0] sm:$0xf]  ;;  %v7291_v37 = vor.u32 %v9951_v30, %v7290_v29  ;;  %v10055_v28 = vld [vmem:[#allocation6 + $0x4ec] sm:$0xf0] }
  0x9b   :  { %v7419_v44 = vor.u32 %v9983_v35, %v7418_v34  ;;  %v7834_v30 = vld [vmem:[#allocation6 + $0x5e0] sm:$0xf]  ;;  %v7083_v34 = vor.u32 %v9899_v24, %v7082_v23  ;;  %v9963_v35 = vld [vmem:[#allocation6 + $0x20c] sm:$0xf0] }
  0x9c   :  { %1134 = vmatpush.bf16.msrb.mxu0 %v6747_v40  ;;  %1148 = vmatpush.bf16.msrb.mxu1 %v6751_v42  ;;  %v9915_v40 = vld [vmem:[#allocation6 + $0x8c] sm:$0xf0]  ;;  %v7274_v42 = vld [vmem:[#allocation6 + $0x180] sm:$0xf] }
  0x9d   :  { %1162 = vmatpush.bf16.msrb.mxu2 %v6755_v43  ;;  %v9947_v43 = vld [vmem:[#allocation6 + $0x18c] sm:$0xf0]  ;;  %v7147_v45 = vor.u32 %v9915_v40, %v7146_v39  ;;  %v7707_v39 = vor.u32 %v10055_v28, %v7706_v27  ;;  %v7962_v40 = vld [vmem:[#allocation6 + $0x6e0] sm:$0xf] }
  0x9e   :  { %1176 = vmatpush.bf16.msrb.mxu3 %v6759_v47  ;;  %v9979_v47 = vld [vmem:[#allocation6 + $0x28c] sm:$0xf0]  ;;  %v7275_v49 = vor.u32 %v9947_v43, %v7274_v42  ;;  %v8090_v43 = vld [vmem:[#allocation6 + $0x7e0] sm:$0xf] }
  0x9f   :  { %v10119_v42 = vld [vmem:[#allocation6 + $0x6ec] sm:$0xf0]  ;;  %v7642_v23 = vld [vmem:[#allocation6 + $0x460] sm:$0xf] }
  0xa0   :  { %1135 = vmatpush.bf16.msrb.mxu0 %v6683_v53  ;;  %1149 = vmatpush.bf16.msrb.mxu1 %v6687_v55  ;;  %v7258_v53 = vld [vmem:[#allocation6 + $0x160] sm:$0xf]  ;;  %v7403_v55 = vor.u32 %v9979_v47, %v7402_v46  ;;  %v10051_v46 = vld [vmem:[#allocation6 + $0x4cc] sm:$0xf0]  ;;  %v7963_v51 = vor.u32 %v10119_v42, %v7962_v40 }
  0xa1   :  { %1163 = vmatpush.bf16.msrb.mxu2 %v6691_v56  ;;  %v7531_v56 = vor.u32 %v10011_v50, %v7530_v48  ;;  %v7259_v61 = vor.u32 %v9943_v54, %v7258_v53  ;;  %v7818_v48 = vld [vmem:[#allocation6 + $0x5c0] sm:$0xf]  ;;  %v10039_v24 = vld [vmem:[#allocation6 + $0x46c] sm:$0xf0] }
  0xa2   :  { %1177 = vmatpush.bf16.msrb.mxu3 %v6695_v60  ;;  %v7514_v60 = vld [vmem:[#allocation6 + $0x360] sm:$0xf]  ;;  %v10071_v27 = vld [vmem:[#allocation6 + $0x56c] sm:$0xf0] }
  0xa3   :  { %v7515_v4 = vor.u32 %v10007_v62, %v7514_v60  ;;  %v7946_v54 = vld [vmem:[#allocation6 + $0x6c0] sm:$0xf]  ;;  %v10047_v60 = vld [vmem:[#allocation6 + $0x4ac] sm:$0xf0] }
  0xa4   :  { %1136 = vmatpush.bf16.msrb.mxu0 %v6619_v3  ;;  %1150 = vmatpush.bf16.msrb.mxu1 %v6623_v6  ;;  %v7387_v3 = vor.u32 %v9975_v59, %v7386_v58  ;;  %v7370_v6 = vld [vmem:[#allocation6 + $0x240] sm:$0xf]  ;;  %v10147_v58 = vld [vmem:[#allocation6 + $0x7cc] sm:$0xf0] }
  0xa5   :  { %1164 = vmatpush.bf16.msrb.mxu2 %v6627_v7  ;;  %v9971_v7 = vld [vmem:[#allocation6 + $0x24c] sm:$0xf0]  ;;  %v7674_v59 = vld [vmem:[#allocation6 + $0x4a0] sm:$0xf] }
  0xa6   :  { %1178 = vmatpush.bf16.msrb.mxu3 %v6631_v8  ;;  %v7498_v8 = vld [vmem:[#allocation6 + $0x340] sm:$0xf]  ;;  %v7371_v15 = vor.u32 %v9971_v7, %v7370_v6  ;;  %v10079_v62 = vld [vmem:[#allocation6 + $0x5ac] sm:$0xf0] }
  0xa7   :  { %1137 = vmatmul.bf16.vlgmr.msrb.gmra.mxu0 %v10878_v41  ;;  %1151 = vmatmul.bf16.vlgmr.msrb.gmra.mxu1 %v10878_v41  ;;  %v7499_v17 = vor.u32 %v10003_v10, %v7498_v8  ;;  %v10143_v6 = vld [vmem:[#allocation6 + $0x7ac] sm:$0xf0]  ;;  %v7658_v7 = vld [vmem:[#allocation6 + $0x480] sm:$0xf] }
  0xa8   :  { %4315 = vmatpush.bf16.msra.mxu0 %v7195_v9  ;;  %4329 = vmatpush.bf16.msra.mxu1 %v7323_v13  ;;  %v7243_v9 = vor.u32 %v9939_v2, %v7242_v1  ;;  %v7226_v13 = vld [vmem:[#allocation6 + $0x120] sm:$0xf]  ;;  %v7675_v1 = vor.u32 %v10047_v60, %v7674_v59  ;;  %v10043_v8 = vld [vmem:[#allocation6 + $0x48c] sm:$0xf0] }
  0xa9   :  { %1165 = vmatmul.bf16.vlgmr.msrb.gmra.mxu2 %v10878_v41  ;;  %1179 = vmatmul.bf16.vlgmr.msrb.gmra.mxu3 %v10878_v41  ;;  %v7547_v41 = vor.u32 %v10015_v38, %v7546_v36  ;;  %v7227_v22 = vor.u32 %v9935_v14, %v7226_v13  ;;  %v7466_v36 = vld [vmem:[#allocation6 + $0x300] sm:$0xf]  ;;  %v10067_v42 = vld [vmem:[#allocation6 + $0x54c] sm:$0xf0] }
  0xaa   :  { %4343 = vmatpush.bf16.msra.mxu2 %v7451_v19  ;;  %4357 = vmatpush.bf16.msra.mxu3 %v7579_v20  ;;  %v9967_v19 = vld [vmem:[#allocation6 + $0x22c] sm:$0xf0]  ;;  %v7482_v20 = vld [vmem:[#allocation6 + $0x320] sm:$0xf] }
  0xab   :  { %v7355_v29 = vor.u32 %v9967_v19, %v7354_v16  ;;  %v7930_v2 = vld [vmem:[#allocation6 + $0x6a0] sm:$0xf]  ;;  %v7659_v16 = vor.u32 %v10043_v8, %v7658_v7  ;;  %v10127_v8 = vld [vmem:[#allocation6 + $0x72c] sm:$0xf0] }
  0xac   :  { %4316 = vmatpush.bf16.msra.mxu0 %v7179_v21  ;;  %4330 = vmatpush.bf16.msra.mxu1 %v7307_v25  ;;  %v9999_v21 = vld [vmem:[#allocation6 + $0x32c] sm:$0xf0]  ;;  %v7210_v25 = vld [vmem:[#allocation6 + $0x100] sm:$0xf] }
  0xad   :  { %v7211_v38 = vor.u32 %v9931_v26, %v7210_v25  ;;  %v7786_v10 = vld [vmem:[#allocation6 + $0x580] sm:$0xf] }
  0xae   :  { %4344 = vmatpush.bf16.msra.mxu2 %v7435_v31  ;;  %4358 = vmatpush.bf16.msra.mxu3 %v7563_v32  ;;  %v10087_v31 = vld [vmem:[#allocation6 + $0x5ec] sm:$0xf0]  ;;  %v7338_v32 = vld [vmem:[#allocation6 + $0x200] sm:$0xf] }
  0xaf   :  { %v7339_v47 = vor.u32 %v9963_v35, %v7338_v32  ;;  %v8042_v19 = vld [vmem:[#allocation6 + $0x780] sm:$0xf]  ;;  %v10103_v32 = vld [vmem:[#allocation6 + $0x66c] sm:$0xf0] }
  0xb0   :  { %4317 = vmatpush.bf16.msra.mxu0 %v7163_v33  ;;  %4331 = vmatpush.bf16.msra.mxu1 %v7291_v37  ;;  %v7483_v33 = vor.u32 %v9999_v21, %v7482_v20  ;;  %v9995_v37 = vld [vmem:[#allocation6 + $0x30c] sm:$0xf0]  ;;  %v7787_v21 = vor.u32 %v10075_v11, %v7786_v10  ;;  %v7770_v26 = vld [vmem:[#allocation6 + $0x560] sm:$0xf] }
  0xb1   :  { %v7467_v50 = vor.u32 %v9995_v37, %v7466_v36  ;;  %v7771_v35 = vor.u32 %v10071_v27, %v7770_v26  ;;  %v10135_v36 = vld [vmem:[#allocation6 + $0x76c] sm:$0xf0]  ;;  %v7626_v37 = vld [vmem:[#allocation6 + $0x440] sm:$0xf] }
  0xb2   :  { %4345 = vmatpush.bf16.msra.mxu2 %v7419_v44  ;;  %4359 = vmatpush.bf16.msra.mxu3 %v7547_v41  ;;  %v7835_v44 = vor.u32 %v10087_v31, %v7834_v30  ;;  %v10151_v41 = vld [vmem:[#allocation6 + $0x7ec] sm:$0xf0]  ;;  %v7643_v30 = vor.u32 %v10039_v24, %v7642_v23  ;;  %v7898_v31 = vld [vmem:[#allocation6 + $0x660] sm:$0xf] }
  0xb3   :  { %v8091_v52 = vor.u32 %v10151_v41, %v8090_v43  ;;  %v7754_v40 = vld [vmem:[#allocation6 + $0x540] sm:$0xf]  ;;  %v10215_v24 = vld [vmem:[#allocation6 + $0x9ec] sm:$0xf0] }
  0xb4   :  { %4318 = vmatpush.bf16.msra.mxu0 %v7147_v45  ;;  %4332 = vmatpush.bf16.msra.mxu1 %v7275_v49  ;;  %v7690_v45 = vld [vmem:[#allocation6 + $0x4c0] sm:$0xf]  ;;  %v10083_v49 = vld [vmem:[#allocation6 + $0x5cc] sm:$0xf0] }
  0xb5   :  { %v7691_v53 = vor.u32 %v10051_v46, %v7690_v45  ;;  %v7882_v41 = vld [vmem:[#allocation6 + $0x640] sm:$0xf]  ;;  %v10099_v45 = vld [vmem:[#allocation6 + $0x64c] sm:$0xf0] }
  0xb6   :  { %4346 = vmatpush.bf16.msra.mxu2 %v7403_v55  ;;  %4360 = vmatpush.bf16.msra.mxu3 %v7531_v56  ;;  %v10115_v55 = vld [vmem:[#allocation6 + $0x6cc] sm:$0xf0]  ;;  %v8074_v56 = vld [vmem:[#allocation6 + $0x7c0] sm:$0xf] }
  0xb7   :  { %v7947_v63 = vor.u32 %v10115_v55, %v7946_v54  ;;  %v8075_v0 = vor.u32 %v10147_v58, %v8074_v56  ;;  %v7755_v56 = vor.u32 %v10067_v42, %v7754_v40  ;;  %v7738_v58 = vld [vmem:[#allocation6 + $0x520] sm:$0xf]  ;;  %v10091_v26 = vld [vmem:[#allocation6 + $0x60c] sm:$0xf0] }
  0xb8   :  { %4319 = vmatpush.bf16.msra.mxu0 %v7131_v57  ;;  %4333 = vmatpush.bf16.msra.mxu1 %v7259_v61  ;;  %v7819_v57 = vor.u32 %v10083_v49, %v7818_v48  ;;  %v7802_v61 = vld [vmem:[#allocation6 + $0x5a0] sm:$0xf] }
  0xb9   :  { %v7594_v10 = vld [vmem:[#allocation6 + $0x400] sm:$0xf] }
  0xba   :  { %4347 = vmatpush.bf16.msra.mxu2 %v7387_v3  ;;  %4361 = vmatpush.bf16.msra.mxu3 %v7515_v4  ;;  %v10111_v3 = vld [vmem:[#allocation6 + $0x6ac] sm:$0xf0]  ;;  %v8058_v4 = vld [vmem:[#allocation6 + $0x7a0] sm:$0xf] }
  0xbb   :  { %v7931_v13 = vor.u32 %v10111_v3, %v7930_v2  ;;  %v7883_v2 = vor.u32 %v10099_v45, %v7882_v41  ;;  %v10095_v3 = vld [vmem:[#allocation6 + $0x62c] sm:$0xf0] }
  0xbc   :  { %4320 = vmatpush.bf16.msra.mxu0 %v7115_v5  ;;  %4334 = vmatpush.bf16.msra.mxu1 %v7243_v9  ;;  %v7803_v5 = vor.u32 %v10079_v62, %v7802_v61  ;;  %v10896_v9 = vld [vmem:[#allocation4] sm:$0xff] }
  0xbd   :  { %v283_v12 = vperm.slane %v10896_v9, 0  ;;  %v284_v25 = vperm.slane %v10896_v9, 1  ;;  %v285_v60 = vperm.slane %v10896_v9, 2  ;;  %v10063_v62 = vld [vmem:[#allocation6 + $0x52c] sm:$0xf0] }
  0xbe   :  { %4348 = vmatpush.bf16.msra.mxu2 %v7371_v15  ;;  %4362 = vmatpush.bf16.msra.mxu3 %v7499_v17  ;;  %v8059_v15 = vor.u32 %v10143_v6, %v8058_v4  ;;  %v7914_v17 = vld [vmem:[#allocation6 + $0x680] sm:$0xf]  ;;  %v10179_v41 = vld [vmem:[#allocation6 + $0x8cc] sm:$0xf0] }
  0xbf   :  { %v7994_v4 = vld [vmem:[#allocation6 + $0x720] sm:$0xf] }
  0xc0   :  { %4321 = vmatpush.bf16.msra.mxu0 %v7099_v18  ;;  %4335 = vmatpush.bf16.msra.mxu1 %v7227_v22  ;;  %v10107_v18 = vld [vmem:[#allocation6 + $0x68c] sm:$0xf0] }
  0xc1   :  { %v10139_v22 = vld [vmem:[#allocation6 + $0x78c] sm:$0xf0]  ;;  %v7915_v28 = vor.u32 %v10107_v18, %v7914_v17  ;;  %v8218_v18 = vld [vmem:[#allocation6 + $0x8e0] sm:$0xf] }
  0xc2   :  { %4349 = vmatpush.bf16.msra.mxu2 %v7355_v29  ;;  %4363 = vmatpush.bf16.msra.mxu3 %v7483_v33  ;;  %v8043_v29 = vor.u32 %v10139_v22, %v8042_v19  ;;  %v8026_v33 = vld [vmem:[#allocation6 + $0x760] sm:$0xf]  ;;  %v10183_v19 = vld [vmem:[#allocation6 + $0x8ec] sm:$0xf0] }
  0xc3   :  { %v8027_v48 = vor.u32 %v10135_v36, %v8026_v33  ;;  %v8474_v33 = vld [vmem:[#allocation6 + $0xae0] sm:$0xf]  ;;  %v8219_v36 = vor.u32 %v10183_v19, %v8218_v18 }
  0xc4   :  { %4322 = vmatpush.bf16.msra.mxu0 %v7083_v34  ;;  %4336 = vmatpush.bf16.msra.mxu1 %v7211_v38  ;;  %v970_v14 = vpop.f32.mrf.mxu0  ;;  %v984_v20 = vpop.f32.mrf.mxu1  ;;  %v10035_v38 = vld [vmem:[#allocation6 + $0x44c] sm:$0xf0]  ;;  %v8426_v19 = vld [vmem:[#allocation6 + $0xa80] sm:$0xf] }
  0xc5   :  { %v971_v34 = vadd.f32 %v970_v14, %v283_v12  ;;  %v7627_v49 = vor.u32 %v10035_v38, %v7626_v37  ;;  %v7722_v14 = vld [vmem:[#allocation6 + $0x500] sm:$0xf]  ;;  %v10247_v37 = vld [vmem:[#allocation6 + $0xaec] sm:$0xf0] }
  0xc6   :  { %4350 = vmatpush.bf16.msra.mxu2 %v7339_v47  ;;  %4364 = vmatpush.bf16.msra.mxu3 %v7467_v50  ;;  %v8010_v50 = vld [vmem:[#allocation6 + $0x740] sm:$0xf] }
  0xc7   :  { %v8602_v38 = vld [vmem:[#allocation6 + $0xbe0] sm:$0xf] }
  0xc8   :  { %4371 = vmatpush.bf16.msrb.mxu0 %v7707_v39  ;;  %4385 = vmatpush.bf16.msrb.mxu1 %v7835_v44  ;;  %v985_v39 = vadd.f32 %v984_v20, %v284_v25  ;;  %v7899_v44 = vor.u32 %v10103_v32, %v7898_v31  ;;  %v8346_v20 = vld [vmem:[#allocation6 + $0x9e0] sm:$0xf]  ;;  %v10123_v32 = vld [vmem:[#allocation6 + $0x70c] sm:$0xf0] }
  0xc9   :  { %v7978_v31 = vld [vmem:[#allocation6 + $0x700] sm:$0xf] }
  0xca   :  { %4399 = vmatpush.bf16.msrb.mxu2 %v7963_v51  ;;  %4413 = vmatpush.bf16.msrb.mxu3 %v8091_v52  ;;  %v10131_v51 = vld [vmem:[#allocation6 + $0x74c] sm:$0xf0]  ;;  %v7610_v52 = vld [vmem:[#allocation6 + $0x420] sm:$0xf]  ;;  %v1186_v59 = vmax.f32 %v985_v39, 0.0 }
  0xcb   :  { %v8011_v6 = vor.u32 %v10131_v51, %v8010_v50  ;;  %v10279_v39 = vld [vmem:[#allocation6 + $0xbec] sm:$0xf0]  ;;  %v7979_v51 = vor.u32 %v10123_v32, %v7978_v31  ;;  %v288_v31 = vperm.slane %v10896_v9, 5 }
  0xcc   :  { %4372 = vmatpush.bf16.msrb.mxu0 %v7691_v53  ;;  %4386 = vmatpush.bf16.msrb.mxu1 %v7819_v57  ;;  %v1012_v46 = vpop.f32.mrf.mxu3  ;;  %v972_v47 = vpop.f32.mrf.mxu0  ;;  %v1185_v53 = vmax.f32 %v971_v34, 0.0  ;;  %v10031_v57 = vld [vmem:[#allocation6 + $0x42c] sm:$0xf0] }
  0xcd   :  { %v998_v43 = vpop.f32.mrf.mxu2  ;;  %v973_v54 = vadd.f32 %v972_v47, %v283_v12  ;;  %v986_v55 = vpop.f32.mrf.mxu1  ;;  %v7611_v7 = vor.u32 %v10031_v57, %v7610_v52  ;;  %v7739_v12 = vor.u32 %v10063_v62, %v7738_v58  ;;  %v8475_v52 = vor.u32 %v10247_v37, %v8474_v33  ;;  %v10243_v57 = vld [vmem:[#allocation6 + $0xacc] sm:$0xf0]  ;;  %v8586_v58 = vld [vmem:[#allocation6 + $0xbc0] sm:$0xf] }
  0xce   :  { %4400 = vmatpush.bf16.msrb.mxu2 %v7947_v63  ;;  %4414 = vmatpush.bf16.msrb.mxu3 %v8075_v0  ;;  %v987_v61 = vadd.f32 %v986_v55, %v284_v25  ;;  %v7866_v63 = vld [vmem:[#allocation6 + $0x620] sm:$0xf]  ;;  %v286_v0 = vperm.slane %v10896_v9, 3  ;;  %v10175_v62 = vld [vmem:[#allocation6 + $0x8ac] sm:$0xf0] }
  0xcf   :  { %v7867_v23 = vor.u32 %v10095_v3, %v7866_v63  ;;  %v7850_v25 = vld [vmem:[#allocation6 + $0x600] sm:$0xf] }
  0xd0   :  { %4373 = vmatpush.bf16.msrb.mxu0 %v7675_v1  ;;  %4387 = vmatpush.bf16.msrb.mxu1 %v7803_v5  ;;  %v1201_v1 = vmax.f32 %v973_v54, 0.0  ;;  %v1202_v5 = vmax.f32 %v987_v61, 0.0  ;;  %v7851_v47 = vor.u32 %v10091_v26, %v7850_v25  ;;  %v8603_v54 = vor.u32 %v10279_v39, %v8602_v38  ;;  %v8186_v61 = vld [vmem:[#allocation6 + $0x8a0] sm:$0xf]  ;;  %v10167_v26 = vld [vmem:[#allocation6 + $0x86c] sm:$0xf0] }
  0xd1   :  { %v8314_v63 = vld [vmem:[#allocation6 + $0x9a0] sm:$0xf]  ;;  %v8187_v3 = vor.u32 %v10175_v62, %v8186_v61  ;;  %v10263_v39 = vld [vmem:[#allocation6 + $0xb6c] sm:$0xf0] }
  0xd2   :  { %4401 = vmatpush.bf16.msrb.mxu2 %v7931_v13  ;;  %4415 = vmatpush.bf16.msrb.mxu3 %v8059_v15  ;;  %v10902_v11 = vpack.c.bf16 %v1201_v1, %v1185_v53  ;;  %v10027_v13 = vld [vmem:[#allocation6 + $0x40c] sm:$0xf0]  ;;  %v10904_v17 = vpack.c.bf16 %v1202_v5, %v1186_v59  ;;  %v8154_v25 = vld [vmem:[#allocation6 + $0x860] sm:$0xf] }
  0xd3   :  { %v10059_v15 = vld [vmem:[#allocation6 + $0x50c] sm:$0xf0]  ;;  %v8538_v37 = vld [vmem:[#allocation6 + $0xb60] sm:$0xf] }
  0xd4   :  { %4374 = vmatpush.bf16.msrb.mxu0 %v7659_v16  ;;  %4388 = vmatpush.bf16.msrb.mxu1 %v7787_v21  ;;  %v999_v16 = vadd.f32 %v998_v43, %v285_v60  ;;  %v1013_v21 = vadd.f32 %v1012_v46, %v286_v0  ;;  %v8347_v43 = vor.u32 %v10215_v24, %v8346_v20  ;;  %v10239_v5 = vld [vmem:[#allocation6 + $0xaac] sm:$0xf0]  ;;  %v8250_v61 = vld [vmem:[#allocation6 + $0x920] sm:$0xf] }
  0xd5   :  { %v1000_v22 = vpop.f32.mrf.mxu2  ;;  %4323 = vmatmul.bf16.vlgmr.msra.gmra.mxu0 %v10902_v11  ;;  %4337 = vmatmul.bf16.vlgmr.msra.gmra.mxu1 %v10904_v17  ;;  %v10235_v20 = vld [vmem:[#allocation6 + $0xa8c] sm:$0xf0] }
  0xd6   :  { %4402 = vmatpush.bf16.msrb.mxu2 %v7915_v28  ;;  %4416 = vmatpush.bf16.msrb.mxu3 %v8043_v29  ;;  %v1001_v27 = vadd.f32 %v1000_v22, %v285_v60  ;;  %v1014_v28 = vpop.f32.mrf.mxu3  ;;  %v7995_v29 = vor.u32 %v10127_v8, %v7994_v4  ;;  %v1187_v40 = vmax.f32 %v999_v16, 0.0  ;;  %v1188_v45 = vmax.f32 %v1013_v21, 0.0  ;;  %v10275_v60 = vld [vmem:[#allocation6 + $0xbcc] sm:$0xf0]  ;;  %v8442_v4 = vld [vmem:[#allocation6 + $0xaa0] sm:$0xf] }
  0xd7   :  { %v1015_v34 = vadd.f32 %v1014_v28, %v286_v0  ;;  %v10207_v0 = vld [vmem:[#allocation6 + $0x9ac] sm:$0xf0]  ;;  %v8554_v21 = vld [vmem:[#allocation6 + $0xb80] sm:$0xf]  ;;  %v8427_v32 = vor.u32 %v10235_v20, %v8426_v19 }
  0xd8   :  { %4375 = vmatpush.bf16.msrb.mxu0 %v7643_v30  ;;  %4389 = vmatpush.bf16.msrb.mxu1 %v7771_v35  ;;  %v7595_v30 = vor.u32 %v10027_v13, %v7594_v10  ;;  %v7723_v35 = vor.u32 %v10059_v15, %v7722_v14  ;;  %v1203_v42 = vmax.f32 %v1001_v27, 0.0  ;;  %v10271_v8 = vld [vmem:[#allocation6 + $0xbac] sm:$0xf0]  ;;  %v8170_v10 = vld [vmem:[#allocation6 + $0x880] sm:$0xf]  ;;  %v8443_v15 = vor.u32 %v10239_v5, %v8442_v4 }
  0xd9   :  { %v1204_v46 = vmax.f32 %v1015_v34, 0.0  ;;  %v8298_v13 = vld [vmem:[#allocation6 + $0x980] sm:$0xf]  ;;  %v10203_v14 = vld [vmem:[#allocation6 + $0x98c] sm:$0xf0]  ;;  %v287_v27 = vperm.slane %v10896_v9, 4  ;;  %v8155_v34 = vor.u32 %v10167_v26, %v8154_v25 }
  0xda   :  { %4403 = vmatpush.bf16.msrb.mxu2 %v7899_v44  ;;  %4417 = vmatpush.bf16.msrb.mxu3 %v8027_v48  ;;  %v8202_v44 = vld [vmem:[#allocation6 + $0x8c0] sm:$0xf]  ;;  %v10908_v50 = vpack.c.bf16 %v1203_v42, %v1187_v40  ;;  %v10267_v24 = vld [vmem:[#allocation6 + $0xb8c] sm:$0xf0]  ;;  %v289_v4 = vperm.slane %v10896_v9, 6 }
  0xdb   :  { %v8330_v48 = vld [vmem:[#allocation6 + $0x9c0] sm:$0xf]  ;;  %v10910_v53 = vpack.c.bf16 %v1204_v46, %v1188_v45  ;;  %v8203_v55 = vor.u32 %v10179_v41, %v8202_v44  ;;  %v8555_v33 = vor.u32 %v10267_v24, %v8554_v21  ;;  %v10163_v42 = vld [vmem:[#allocation6 + $0x84c] sm:$0xf0] }
  0xdc   :  { %4376 = vmatpush.bf16.msrb.mxu0 %v7627_v49  ;;  %4390 = vmatpush.bf16.msrb.mxu1 %v7755_v56  ;;  %v10211_v49 = vld [vmem:[#allocation6 + $0x9cc] sm:$0xf0]  ;;  %v8458_v56 = vld [vmem:[#allocation6 + $0xac0] sm:$0xf] }
  0xdd   :  { %4351 = vmatmul.bf16.vlgmr.msra.gmra.mxu2 %v10908_v50  ;;  %v8331_v59 = vor.u32 %v10211_v49, %v8330_v48  ;;  %4365 = vmatmul.bf16.vlgmr.msra.gmra.mxu3 %v10910_v53  ;;  %v8459_v1 = vor.u32 %v10243_v57, %v8458_v56  ;;  %v8138_v40 = vld [vmem:[#allocation6 + $0x840] sm:$0xf]  ;;  %v10195_v41 = vld [vmem:[#allocation6 + $0x94c] sm:$0xf0]  ;;  %v8539_v49 = vor.u32 %v10263_v39, %v8538_v37 }
  0xde   :  { %4404 = vmatpush.bf16.msrb.mxu2 %v7883_v2  ;;  %4418 = vmatpush.bf16.msrb.mxu3 %v8011_v6  ;;  %v8587_v2 = vor.u32 %v10275_v60, %v8586_v58  ;;  %v8570_v6 = vld [vmem:[#allocation6 + $0xba0] sm:$0xf]  ;;  %v10159_v60 = vld [vmem:[#allocation6 + $0x82c] sm:$0xf0] }
  0xdf   :  { %v8571_v16 = vor.u32 %v10271_v8, %v8570_v6  ;;  %v8266_v44 = vld [vmem:[#allocation6 + $0x940] sm:$0xf]  ;;  %v10155_v20 = vld [vmem:[#allocation6 + $0x80c] sm:$0xf0] }
  0xe0   :  { %4377 = vmatpush.bf16.msrb.mxu0 %v7611_v7  ;;  %4391 = vmatpush.bf16.msrb.mxu1 %v7739_v12  ;;  %v8315_v7 = vor.u32 %v10207_v0, %v8314_v63  ;;  %v10171_v12 = vld [vmem:[#allocation6 + $0x88c] sm:$0xf0]  ;;  %v8267_v58 = vor.u32 %v10195_v41, %v8266_v44  ;;  %v8506_v8 = vld [vmem:[#allocation6 + $0xb20] sm:$0xf] }
  0xe1   :  { %v8171_v18 = vor.u32 %v10171_v12, %v8170_v10  ;;  %v290_v10 = vperm.slane %v10896_v9, 7  ;;  %v8234_v21 = vld [vmem:[#allocation6 + $0x900] sm:$0xf]  ;;  %v10311_v25 = vld [vmem:[#allocation6 + $0xcec] sm:$0xf0] }
  0xe2   :  { %4405 = vmatpush.bf16.msrb.mxu2 %v7867_v23  ;;  %4419 = vmatpush.bf16.msrb.mxu3 %v7995_v29  ;;  %v8299_v23 = vor.u32 %v10203_v14, %v8298_v13  ;;  %v8282_v29 = vld [vmem:[#allocation6 + $0x960] sm:$0xf] }
  0xe3   :  { %v8730_v24 = vld [vmem:[#allocation6 + $0xce0] sm:$0xf] }
  0xe4   :  { %4378 = vmatpush.bf16.msrb.mxu0 %v7595_v30  ;;  %4392 = vmatpush.bf16.msrb.mxu1 %v7723_v35  ;;  %v1026_v22 = vpop.f32.mrf.mxu0  ;;  %v1040_v28 = vpop.f32.mrf.mxu1  ;;  %v10199_v30 = vld [vmem:[#allocation6 + $0x96c] sm:$0xf0]  ;;  %v8410_v35 = vld [vmem:[#allocation6 + $0xa60] sm:$0xf]  ;;  %v8731_v39 = vor.u32 %v10311_v25, %v8730_v24 }
  0xe5   :  { %v8283_v38 = vor.u32 %v10199_v30, %v8282_v29  ;;  %v1041_v45 = vadd.f32 %v1040_v28, %v288_v31  ;;  %v8858_v28 = vld [vmem:[#allocation6 + $0xde0] sm:$0xf]  ;;  %v10343_v29 = vld [vmem:[#allocation6 + $0xdec] sm:$0xf0] }
  0xe6   :  { %4406 = vmatpush.bf16.msrb.mxu2 %v7851_v47  ;;  %4420 = vmatpush.bf16.msrb.mxu3 %v7979_v51  ;;  %v8394_v47 = vld [vmem:[#allocation6 + $0xa40] sm:$0xf]  ;;  %v8139_v51 = vor.u32 %v10163_v42, %v8138_v40  ;;  %v10251_v42 = vld [vmem:[#allocation6 + $0xb0c] sm:$0xf0]  ;;  %v8859_v41 = vor.u32 %v10343_v29, %v8858_v28 }
  0xe7   :  { %v8490_v40 = vld [vmem:[#allocation6 + $0xb00] sm:$0xf]  ;;  %v10331_v25 = vld [vmem:[#allocation6 + $0xd8c] sm:$0xf0] }
  0xe8   :  { %4427 = vmatpush.bf16.msra.mxu0 %v8219_v36  ;;  %4441 = vmatpush.bf16.msra.mxu1 %v8347_v43  ;;  %v10231_v36 = vld [vmem:[#allocation6 + $0xa6c] sm:$0xf0]  ;;  %v1027_v43 = vadd.f32 %v1026_v22, %v287_v27  ;;  %v8810_v24 = vld [vmem:[#allocation6 + $0xd80] sm:$0xf] }
  0xe9   :  { %v8411_v46 = vor.u32 %v10231_v36, %v8410_v35  ;;  %v10219_v35 = vld [vmem:[#allocation6 + $0xa0c] sm:$0xf0] }
  0xea   :  { %4455 = vmatpush.bf16.msra.mxu2 %v8475_v52  ;;  %4469 = vmatpush.bf16.msra.mxu3 %v8603_v54  ;;  %v10227_v52 = vld [vmem:[#allocation6 + $0xa4c] sm:$0xf0]  ;;  %v8522_v54 = vld [vmem:[#allocation6 + $0xb40] sm:$0xf]  ;;  %v1189_v62 = vmax.f32 %v1027_v43, 0.0 }
  0xeb   :  { %v8395_v6 = vor.u32 %v10227_v52, %v8394_v47  ;;  %v8986_v43 = vld [vmem:[#allocation6 + $0xee0] sm:$0xf]  ;;  %v10407_v47 = vld [vmem:[#allocation6 + $0xfec] sm:$0xf0] }
  0xec   :  { %4428 = vmatpush.bf16.msra.mxu0 %v8203_v55  ;;  %4442 = vmatpush.bf16.msra.mxu1 %v8331_v59  ;;  %v10259_v55 = vld [vmem:[#allocation6 + $0xb4c] sm:$0xf0]  ;;  %v1068_v56 = vpop.f32.mrf.mxu3  ;;  %v1028_v57 = vpop.f32.mrf.mxu0  ;;  %v8122_v59 = vld [vmem:[#allocation6 + $0x820] sm:$0xf] }
  0xed   :  { %v1054_v48 = vpop.f32.mrf.mxu2  ;;  %v1029_v63 = vadd.f32 %v1028_v57, %v287_v27  ;;  %v1042_v0 = vpop.f32.mrf.mxu1  ;;  %v8523_v13 = vor.u32 %v10259_v55, %v8522_v54  ;;  %v8123_v14 = vor.u32 %v10159_v60, %v8122_v59  ;;  %v1069_v30 = vadd.f32 %v1068_v56, %v290_v10  ;;  %v8714_v52 = vld [vmem:[#allocation6 + $0xcc0] sm:$0xf]  ;;  %v10307_v54 = vld [vmem:[#allocation6 + $0xccc] sm:$0xf0] }
  0xee   :  { %4456 = vmatpush.bf16.msra.mxu2 %v8459_v1  ;;  %4470 = vmatpush.bf16.msra.mxu3 %v8587_v2  ;;  %v10191_v1 = vld [vmem:[#allocation6 + $0x92c] sm:$0xf0]  ;;  %v8378_v2 = vld [vmem:[#allocation6 + $0xa20] sm:$0xf]  ;;  %v1043_v5 = vadd.f32 %v1042_v0, %v288_v31  ;;  %v1055_v26 = vadd.f32 %v1054_v48, %v289_v4  ;;  %v8491_v57 = vor.u32 %v10251_v42, %v8490_v40 }
  0xef   :  { %v1205_v12 = vmax.f32 %v1029_v63, 0.0  ;;  %v8251_v19 = vor.u32 %v10191_v1, %v8250_v61  ;;  %v1192_v55 = vmax.f32 %v1069_v30, 0.0  ;;  %v10339_v59 = vld [vmem:[#allocation6 + $0xdcc] sm:$0xf0]  ;;  %v8715_v0 = vor.u32 %v10307_v54, %v8714_v52  ;;  %v8970_v1 = vld [vmem:[#allocation6 + $0xec0] sm:$0xf] }
  0xf0   :  { %4429 = vmatpush.bf16.msra.mxu0 %v8187_v3  ;;  %4443 = vmatpush.bf16.msra.mxu1 %v8315_v7  ;;  %v1190_v3 = vmax.f32 %v1041_v45, 0.0  ;;  %v10223_v7 = vld [vmem:[#allocation6 + $0xa2c] sm:$0xf0]  ;;  %v1191_v48 = vmax.f32 %v1055_v26, 0.0  ;;  %v10930_v26 = vld [vmem:[#allocation4 + $0x8] sm:$0xff] }
  0xf1   :  { %v10918_v22 = vpack.c.bf16 %v1205_v12, %v1189_v62  ;;  %v8379_v9 = vor.u32 %v10223_v7, %v8378_v2  ;;  %v10375_v45 = vld [vmem:[#allocation6 + $0xeec] sm:$0xf0]  ;;  %v8938_v30 = vld [vmem:[#allocation6 + $0xe80] sm:$0xf] }
  0xf2   :  { %4457 = vmatpush.bf16.msra.mxu2 %v8443_v15  ;;  %4471 = vmatpush.bf16.msra.mxu3 %v8571_v16  ;;  %v10255_v15 = vld [vmem:[#allocation6 + $0xb2c] sm:$0xf0]  ;;  %v8106_v16 = vld [vmem:[#allocation6 + $0x800] sm:$0xf]  ;;  %v8987_v61 = vor.u32 %v10375_v45, %v8986_v43  ;;  %v292_v43 = vperm.slane %v10930_v26, 1 }
  0xf3   :  { %4379 = vmatmul.bf16.vlgmr.msrb.gmra.mxu0 %v10918_v22  ;;  %v10371_v2 = vld [vmem:[#allocation6 + $0xecc] sm:$0xf0]  ;;  %v8794_v40 = vld [vmem:[#allocation6 + $0xd60] sm:$0xf] }
  0xf4   :  { %4430 = vmatpush.bf16.msra.mxu0 %v8171_v18  ;;  %4444 = vmatpush.bf16.msra.mxu1 %v8299_v23  ;;  %v1206_v18 = vmax.f32 %v1043_v5, 0.0  ;;  %v10187_v23 = vld [vmem:[#allocation6 + $0x90c] sm:$0xf0]  ;;  %v1070_v37 = vpop.f32.mrf.mxu3  ;;  %v8971_v12 = vor.u32 %v10371_v2, %v8970_v1  ;;  %v8650_v52 = vld [vmem:[#allocation6 + $0xc40] sm:$0xf] }
  0xf5   :  { %v1056_v31 = vpop.f32.mrf.mxu2  ;;  %v1071_v44 = vadd.f32 %v1070_v37, %v290_v10  ;;  %v10403_v5 = vld [vmem:[#allocation6 + $0xfcc] sm:$0xf0] }
  0xf6   :  { %4458 = vmatpush.bf16.msra.mxu2 %v8427_v32  ;;  %4472 = vmatpush.bf16.msra.mxu3 %v8555_v33  ;;  %v10920_v27 = vpack.c.bf16 %v1206_v18, %v1190_v3  ;;  %v8507_v32 = vor.u32 %v10255_v15, %v8506_v8  ;;  %v8107_v33 = vor.u32 %v10155_v20, %v8106_v16  ;;  %v9098_v3 = vld [vmem:[#allocation6 + $0xfc0] sm:$0xf]  ;;  %v10303_v7 = vld [vmem:[#allocation6 + $0xcac] sm:$0xf0] }
  0xf7   :  { %v1057_v36 = vadd.f32 %v1056_v31, %v289_v4  ;;  %v1208_v56 = vmax.f32 %v1071_v44, 0.0  ;;  %v8826_v8 = vld [vmem:[#allocation6 + $0xda0] sm:$0xf]  ;;  %v10335_v10 = vld [vmem:[#allocation6 + $0xdac] sm:$0xf0] }
  0xf8   :  { %4431 = vmatpush.bf16.msra.mxu0 %v8155_v34  ;;  %4445 = vmatpush.bf16.msra.mxu1 %v8283_v38  ;;  %v8362_v34 = vld [vmem:[#allocation6 + $0xa00] sm:$0xf]  ;;  %v8235_v38 = vor.u32 %v10187_v23, %v8234_v21  ;;  %v10367_v16 = vld [vmem:[#allocation6 + $0xeac] sm:$0xf0] }
  0xf9   :  { %4393 = vmatmul.bf16.vlgmr.msrb.gmra.mxu1 %v10920_v27  ;;  %v10926_v62 = vpack.c.bf16 %v1208_v56, %v1192_v55  ;;  %v8954_v15 = vld [vmem:[#allocation6 + $0xea0] sm:$0xf]  ;;  %v10399_v20 = vld [vmem:[#allocation6 + $0xfac] sm:$0xf0] }
  0xfa   :  { %4459 = vmatpush.bf16.msra.mxu2 %v8411_v46  ;;  %4473 = vmatpush.bf16.msra.mxu3 %v8539_v49  ;;  %v9114_v46 = vld [vmem:[#allocation6 + $0xfe0] sm:$0xf]  ;;  %v1207_v49 = vmax.f32 %v1057_v36, 0.0  ;;  %v10299_v23 = vld [vmem:[#allocation6 + $0xc8c] sm:$0xf0] }
  0xfb   :  { %v9115_v63 = vor.u32 %v10407_v47, %v9114_v46  ;;  %4421 = vmatmul.bf16.vlgmr.msrb.gmra.mxu3 %v10926_v62  ;;  %v9082_v18 = vld [vmem:[#allocation6 + $0xfa0] sm:$0xf]  ;;  %v10363_v31 = vld [vmem:[#allocation6 + $0xe8c] sm:$0xf0] }
  0xfc   :  { %4432 = vmatpush.bf16.msra.mxu0 %v8139_v51  ;;  %4446 = vmatpush.bf16.msra.mxu1 %v8267_v58  ;;  %v8363_v51 = vor.u32 %v10219_v35, %v8362_v34  ;;  %v8842_v58 = vld [vmem:[#allocation6 + $0xdc0] sm:$0xf]  ;;  %v10924_v60 = vpack.c.bf16 %v1207_v49, %v1191_v48  ;;  %v9083_v28 = vor.u32 %v10399_v20, %v9082_v18  ;;  %v10395_v35 = vld [vmem:[#allocation6 + $0xf8c] sm:$0xf0]  ;;  %v293_v20 = vperm.slane %v10930_v26, 2 }
  0xfd   :  { %v8843_v4 = vor.u32 %v10339_v59, %v8842_v58  ;;  %v8682_v21 = vld [vmem:[#allocation6 + $0xc80] sm:$0xf]  ;;  %v8811_v34 = vor.u32 %v10331_v25, %v8810_v24  ;;  %v10295_v37 = vld [vmem:[#allocation6 + $0xc6c] sm:$0xf0]  ;;  %v8939_v44 = vor.u32 %v10363_v31, %v8938_v30 }
  0xfe   :  { %4460 = vmatpush.bf16.msra.mxu2 %v8395_v6  ;;  %4474 = vmatpush.bf16.msra.mxu3 %v8523_v13  ;;  %v8698_v6 = vld [vmem:[#allocation6 + $0xca0] sm:$0xf]  ;;  %v9099_v13 = vor.u32 %v10403_v5, %v9098_v3  ;;  %v8683_v29 = vor.u32 %v10299_v23, %v8682_v21  ;;  %v10327_v42 = vld [vmem:[#allocation6 + $0xd6c] sm:$0xf0] }
  0xff   :  { %4407 = vmatmul.bf16.vlgmr.msrb.gmra.mxu2 %v10924_v60  ;;  %v8666_v36 = vld [vmem:[#allocation6 + $0xc60] sm:$0xf]  ;;  %v10359_v47 = vld [vmem:[#allocation6 + $0xe6c] sm:$0xf0]  ;;  %v8795_v49 = vor.u32 %v10327_v42, %v8794_v40  ;;  %v7196_v40 = vld [vmem:[#allocation6 + $0xf0] sm:$0xf0] }
 0x100   :  { %4433 = vmatpush.bf16.msra.mxu0 %v8123_v14  ;;  %4447 = vmatpush.bf16.msra.mxu1 %v8251_v19  ;;  %v8699_v14 = vor.u32 %v10303_v7, %v8698_v6  ;;  %v8827_v19 = vor.u32 %v10335_v10, %v8826_v8  ;;  %v8667_v45 = vor.u32 %v10295_v37, %v8666_v36  ;;  %v8922_v46 = vld [vmem:[#allocation6 + $0xe60] sm:$0xf]  ;;  %v10291_v54 = vld [vmem:[#allocation6 + $0xc4c] sm:$0xf0] }
 0x101   :  { %v9050_v48 = vld [vmem:[#allocation6 + $0xf60] sm:$0xf]  ;;  %v8923_v59 = vor.u32 %v10359_v47, %v8922_v46  ;;  %v8651_v1 = vor.u32 %v10291_v54, %v8650_v52  ;;  %v10355_v2 = vld [vmem:[#allocation6 + $0xe4c] sm:$0xf0] }
 0x102   :  { %4461 = vmatpush.bf16.msra.mxu2 %v8379_v9  ;;  %4475 = vmatpush.bf16.msra.mxu3 %v8507_v32  ;;  %v8955_v9 = vor.u32 %v10367_v16, %v8954_v15  ;;  %v9066_v32 = vld [vmem:[#allocation6 + $0xf80] sm:$0xf]  ;;  %v10287_v10 = vld [vmem:[#allocation6 + $0xc2c] sm:$0xf0] }
 0x103   :  { %v8778_v56 = vld [vmem:[#allocation6 + $0xd40] sm:$0xf]  ;;  %v10319_v16 = vld [vmem:[#allocation6 + $0xd2c] sm:$0xf0] }
 0x104   :  { %4434 = vmatpush.bf16.msra.mxu0 %v8107_v33  ;;  %4448 = vmatpush.bf16.msra.mxu1 %v8235_v38  ;;  %v1082_v33 = vpop.f32.mrf.mxu0  ;;  %v291_v38 = vperm.slane %v10930_v26, 0  ;;  %v9034_v3 = vld [vmem:[#allocation6 + $0xf40] sm:$0xf]  ;;  %v10351_v24 = vld [vmem:[#allocation6 + $0xe2c] sm:$0xf0] }
 0x105   :  { %v8634_v8 = vld [vmem:[#allocation6 + $0xc20] sm:$0xf]  ;;  %v10383_v31 = vld [vmem:[#allocation6 + $0xf2c] sm:$0xf0] }
 0x106   :  { %4462 = vmatpush.bf16.msra.mxu2 %v8363_v51  ;;  %4476 = vmatpush.bf16.msra.mxu3 %v8491_v57  ;;  %v10391_v51 = vld [vmem:[#allocation6 + $0xf6c] sm:$0xf0]  ;;  %v1083_v55 = vadd.f32 %v1082_v33, %v291_v38  ;;  %v8890_v18 = vld [vmem:[#allocation6 + $0xe20] sm:$0xf]  ;;  %v8635_v30 = vor.u32 %v10287_v10, %v8634_v8  ;;  %v7180_v8 = vld [vmem:[#allocation6 + $0xd0] sm:$0xf0] }
 0x107   :  { %v10323_v57 = vld [vmem:[#allocation6 + $0xd4c] sm:$0xf0]  ;;  %v9018_v25 = vld [vmem:[#allocation6 + $0xf20] sm:$0xf] }
 0x108   :  { %4483 = vmatpush.bf16.msrb.mxu0 %v8731_v39  ;;  %4497 = vmatpush.bf16.msrb.mxu1 %v8859_v41  ;;  %v1096_v39 = vpop.f32.mrf.mxu1  ;;  %v9067_v41 = vor.u32 %v10395_v35, %v9066_v32  ;;  %v8779_v7 = vor.u32 %v10323_v57, %v8778_v56  ;;  %v8618_v32 = vld [vmem:[#allocation6 + $0xc00] sm:$0xf]  ;;  %v10283_v35 = vld [vmem:[#allocation6 + $0xc0c] sm:$0xf0] }
 0x109   :  { %v1097_v58 = vadd.f32 %v1096_v39, %v292_v43  ;;  %v8746_v36 = vld [vmem:[#allocation6 + $0xd00] sm:$0xf]  ;;  %v9925_v39 = vld [vmem:[#allocation6 + $0xe4] sm:$0xf]  ;;  %v10347_v52 = vld [vmem:[#allocation6 + $0xe0c] sm:$0xf0] }
 0x10a   :  { %4511 = vmatpush.bf16.msrb.mxu2 %v8987_v61  ;;  %4525 = vmatpush.bf16.msrb.mxu3 %v9115_v63  ;;  %v8906_v61 = vld [vmem:[#allocation6 + $0xe40] sm:$0xf]  ;;  %v7199_v57 = vor.u32 %v9925_v39, %v7196_v40  ;;  %v10013_v39 = vld [vmem:[#allocation6 + $0x3a4] sm:$0xf] }
 0x10b   :  { %v8907_v23 = vor.u32 %v10355_v2, %v8906_v61  ;;  %v9989_v61 = vld [vmem:[#allocation6 + $0x2e4] sm:$0xf] }
 0x10c   :  { %4484 = vmatpush.bf16.msrb.mxu0 %v8715_v0  ;;  %4498 = vmatpush.bf16.msrb.mxu1 %v8843_v4  ;;  %v9051_v0 = vor.u32 %v10391_v51, %v9050_v48  ;;  %v10387_v4 = vld [vmem:[#allocation6 + $0xf4c] sm:$0xf0]  ;;  %v1124_v5 = vpop.f32.mrf.mxu3  ;;  %v1084_v6 = vpop.f32.mrf.mxu0  ;;  %v9019_v48 = vor.u32 %v10383_v31, %v9018_v25  ;;  %v8874_v51 = vld [vmem:[#allocation6 + $0xe00] sm:$0xf]  ;;  %v10021_v2 = vld [vmem:[#allocation6 + $0x3e4] sm:$0xf] }
 0x10d   :  { %v1110_v63 = vpop.f32.mrf.mxu2  ;;  %v10017_v25 = vld [vmem:[#allocation6 + $0x3c4] sm:$0xf] }
 0x10e   :  { %4512 = vmatpush.bf16.msrb.mxu2 %v8971_v12  ;;  %4526 = vmatpush.bf16.msrb.mxu3 %v9099_v13  ;;  %v8762_v12 = vld [vmem:[#allocation6 + $0xd20] sm:$0xf]  ;;  %v1193_v13 = vmax.f32 %v1083_v55, 0.0  ;;  %v1111_v42 = vadd.f32 %v1110_v63, %v293_v20  ;;  %v9949_v31 = vld [vmem:[#allocation6 + $0x1a4] sm:$0xf] }
 0x110   :  { %4485 = vmatpush.bf16.msrb.mxu0 %v8699_v14  ;;  %4499 = vmatpush.bf16.msrb.mxu1 %v8827_v19  ;;  %v1085_v14 = vadd.f32 %v1084_v6, %v291_v38  ;;  %v1098_v15 = vpop.f32.mrf.mxu1  ;;  %v1194_v19 = vmax.f32 %v1097_v58, 0.0  ;;  %v10315_v38 = vld [vmem:[#allocation6 + $0xd0c] sm:$0xf0]  ;;  %v9002_v58 = vld [vmem:[#allocation6 + $0xf00] sm:$0xf]  ;;  %v8875_v6 = vor.u32 %v10347_v52, %v8874_v51 }
 0x111   :  { %v1099_v21 = vadd.f32 %v1098_v15, %v292_v43  ;;  %v8747_v56 = vor.u32 %v10315_v38, %v8746_v36  ;;  %v7308_v15 = vld [vmem:[#allocation6 + $0x1d0] sm:$0xf0]  ;;  %v9981_v36 = vld [vmem:[#allocation6 + $0x2a4] sm:$0xf] }
 0x112   :  { %4513 = vmatpush.bf16.msrb.mxu2 %v8955_v9  ;;  %4527 = vmatpush.bf16.msrb.mxu3 %v9083_v28  ;;  %v294_v9 = vperm.slane %v10930_v26, 3  ;;  %v1209_v28 = vmax.f32 %v1085_v14, 0.0  ;;  %v9953_v14 = vld [vmem:[#allocation6 + $0x1c4] sm:$0xf]  ;;  %v7420_v38 = vld [vmem:[#allocation6 + $0x2b0] sm:$0xf0] }
 0x113   :  { %v1210_v33 = vmax.f32 %v1099_v21, 0.0 }
 0x114   :  { %4486 = vmatpush.bf16.msrb.mxu0 %v8683_v29  ;;  %4500 = vmatpush.bf16.msrb.mxu1 %v8811_v34  ;;  %v9035_v29 = vor.u32 %v10387_v4, %v9034_v3  ;;  %v8763_v34 = vor.u32 %v10319_v16, %v8762_v12  ;;  %v10936_v37 = vpack.c.bf16 %v1209_v28, %v1193_v13  ;;  %v1126_v55 = vpop.f32.mrf.mxu3  ;;  %v7580_v3 = vld [vmem:[#allocation6 + $0x3f0] sm:$0xf0]  ;;  %v1195_v4 = vmax.f32 %v1111_v42, 0.0 }
 0x115   :  { %v10938_v43 = vpack.c.bf16 %v1210_v33, %v1194_v19  ;;  %v1125_v46 = vadd.f32 %v1124_v5, %v294_v9  ;;  %v1112_v47 = vpop.f32.mrf.mxu2  ;;  %v1127_v63 = vadd.f32 %v1126_v55, %v294_v9  ;;  %v7311_v9 = vor.u32 %v9953_v14, %v7308_v15  ;;  %v7564_v28 = vld [vmem:[#allocation6 + $0x3d0] sm:$0xf0]  ;;  %v9905_v14 = vld [vmem:[#allocation6 + $0x44] sm:$0xf] }
 0x116   :  { %4514 = vmatpush.bf16.msrb.mxu2 %v8939_v44  ;;  %4528 = vmatpush.bf16.msrb.mxu3 %v9067_v41  ;;  %v8891_v44 = vor.u32 %v10351_v24, %v8890_v18  ;;  %v9957_v41 = vld [vmem:[#allocation6 + $0x1e4] sm:$0xf]  ;;  %v1113_v54 = vadd.f32 %v1112_v47, %v293_v20  ;;  %v7583_v20 = vor.u32 %v10021_v2, %v7580_v3  ;;  %v7436_v24 = vld [vmem:[#allocation6 + $0x2d0] sm:$0xf0]  ;;  %v295_v47 = vperm.slane %v10930_v26, 4 }
 0x117   :  { %4435 = vmatmul.bf16.vlgmr.msra.gmra.mxu0 %v10936_v37  ;;  %4449 = vmatmul.bf16.vlgmr.msra.gmra.mxu1 %v10938_v43  ;;  %v1196_v10 = vmax.f32 %v1125_v46, 0.0  ;;  %v1212_v12 = vmax.f32 %v1127_v63, 0.0  ;;  %v7548_v42 = vld [vmem:[#allocation6 + $0x3b0] sm:$0xf0] }
 0x118   :  { %4487 = vmatpush.bf16.msrb.mxu0 %v8667_v45  ;;  %4501 = vmatpush.bf16.msrb.mxu1 %v8795_v49  ;;  %v7324_v45 = vld [vmem:[#allocation6 + $0x1f0] sm:$0xf0]  ;;  %v8619_v49 = vor.u32 %v10283_v35, %v8618_v32  ;;  %v1211_v5 = vmax.f32 %v1113_v54, 0.0  ;;  %v7551_v51 = vor.u32 %v10013_v39, %v7548_v42  ;;  %v9977_v54 = vld [vmem:[#allocation6 + $0x284] sm:$0xf] }
 0x119   :  { %v10944_v19 = vpack.c.bf16 %v1212_v12, %v1196_v10  ;;  %v7292_v32 = vld [vmem:[#allocation6 + $0x1b0] sm:$0xf0]  ;;  %v9933_v42 = vld [vmem:[#allocation6 + $0x124] sm:$0xf] }
 0x11a   :  { %4515 = vmatpush.bf16.msrb.mxu2 %v8923_v59  ;;  %4529 = vmatpush.bf16.msrb.mxu3 %v9051_v0  ;;  %v10379_v59 = vld [vmem:[#allocation6 + $0xf0c] sm:$0xf0]  ;;  %v7327_v0 = vor.u32 %v9957_v41, %v7324_v45  ;;  %v10942_v16 = vpack.c.bf16 %v1211_v5, %v1195_v4  ;;  %v7295_v40 = vor.u32 %v9949_v31, %v7292_v32  ;;  %v7148_v41 = vld [vmem:[#allocation6 + $0x90] sm:$0xf0]  ;;  %v9945_v45 = vld [vmem:[#allocation6 + $0x184] sm:$0xf] }
 0x11b   :  { %v9003_v13 = vor.u32 %v10379_v59, %v9002_v58  ;;  %4477 = vmatmul.bf16.vlgmr.msra.gmra.mxu3 %v10944_v19  ;;  %v7276_v46 = vld [vmem:[#allocation6 + $0x190] sm:$0xf0]  ;;  %v10001_v32 = vld [vmem:[#allocation6 + $0x344] sm:$0xf] }
 0x11c   :  { %4488 = vmatpush.bf16.msrb.mxu0 %v8651_v1  ;;  %4502 = vmatpush.bf16.msrb.mxu1 %v8779_v7  ;;  %v7452_v1 = vld [vmem:[#allocation6 + $0x2f0] sm:$0xf0]  ;;  %v9921_v7 = vld [vmem:[#allocation6 + $0xc4] sm:$0xf]  ;;  %v7279_v58 = vor.u32 %v9945_v45, %v7276_v46 }
 0x11d   :  { %v7455_v18 = vor.u32 %v9989_v61, %v7452_v1  ;;  %v7183_v21 = vor.u32 %v9921_v7, %v7180_v8  ;;  %4463 = vmatmul.bf16.vlgmr.msra.gmra.mxu2 %v10942_v16  ;;  %v7404_v55 = vld [vmem:[#allocation6 + $0x290] sm:$0xf0]  ;;  %v9909_v61 = vld [vmem:[#allocation6 + $0x64] sm:$0xf] }
 0x11e   :  { %4516 = vmatpush.bf16.msrb.mxu2 %v8907_v23  ;;  %4530 = vmatpush.bf16.msrb.mxu3 %v9035_v29  ;;  %v9985_v23 = vld [vmem:[#allocation6 + $0x2c4] sm:$0xf]  ;;  %v7532_v59 = vld [vmem:[#allocation6 + $0x390] sm:$0xf0]  ;;  %v7407_v3 = vor.u32 %v9977_v54, %v7404_v55 }
 0x11f   :  { %v9917_v29 = vld [vmem:[#allocation6 + $0xa4] sm:$0xf]  ;;  %v7439_v33 = vor.u32 %v9985_v23, %v7436_v24  ;;  %v7132_v63 = vld [vmem:[#allocation6 + $0x70] sm:$0xf0] }
 0x120   :  { %4489 = vmatpush.bf16.msrb.mxu0 %v8635_v30  ;;  %4503 = vmatpush.bf16.msrb.mxu1 %v8763_v34  ;;  %v7164_v30 = vld [vmem:[#allocation6 + $0xb0] sm:$0xf0]  ;;  %v7567_v34 = vor.u32 %v10017_v25, %v7564_v28  ;;  %v9941_v1 = vld [vmem:[#allocation6 + $0x164] sm:$0xf]  ;;  %v7135_v5 = vor.u32 %v9909_v61, %v7132_v63 }
 0x121   :  { %v7167_v35 = vor.u32 %v9917_v29, %v7164_v30  ;;  %v7260_v2 = vld [vmem:[#allocation6 + $0x170] sm:$0xf0]  ;;  %v10005_v8 = vld [vmem:[#allocation6 + $0x364] sm:$0xf] }
 0x122   :  { %4517 = vmatpush.bf16.msrb.mxu2 %v8891_v44  ;;  %4531 = vmatpush.bf16.msrb.mxu3 %v9019_v48  ;;  %v9913_v44 = vld [vmem:[#allocation6 + $0x84] sm:$0xf]  ;;  %v7423_v48 = vor.u32 %v9981_v36, %v7420_v38  ;;  %v7388_v7 = vld [vmem:[#allocation6 + $0x270] sm:$0xf0]  ;;  %v7263_v12 = vor.u32 %v9941_v1, %v7260_v2 }
 0x123   :  { %v7151_v52 = vor.u32 %v9913_v44, %v7148_v41  ;;  %v7116_v15 = vld [vmem:[#allocation6 + $0x50] sm:$0xf0]  ;;  %v9969_v25 = vld [vmem:[#allocation6 + $0x244] sm:$0xf]  ;;  %v297_v41 = vperm.slane %v10930_v26, 6 }
 0x124   :  { %4490 = vmatpush.bf16.msrb.mxu0 %v8619_v49  ;;  %4504 = vmatpush.bf16.msrb.mxu1 %v8747_v56  ;;  %v1138_v49 = vpop.f32.mrf.mxu0  ;;  %v10009_v56 = vld [vmem:[#allocation6 + $0x384] sm:$0xf]  ;;  %v7119_v31 = vor.u32 %v9905_v14, %v7116_v15  ;;  %v7228_v46 = vld [vmem:[#allocation6 + $0x130] sm:$0xf0] }
 0x125   :  { %v7535_v4 = vor.u32 %v10009_v56, %v7532_v59  ;;  %v1139_v10 = vadd.f32 %v1138_v49, %v295_v47  ;;  %v298_v49 = vperm.slane %v10930_v26, 7  ;;  %v7356_v54 = vld [vmem:[#allocation6 + $0x230] sm:$0xf0]  ;;  %v9997_v55 = vld [vmem:[#allocation6 + $0x324] sm:$0xf]  ;;  %v7231_v63 = vor.u32 %v9933_v42, %v7228_v46 }
 0x126   :  { %4518 = vmatpush.bf16.msrb.mxu2 %v8875_v6  ;;  %4532 = vmatpush.bf16.msrb.mxu3 %v9003_v13  ;;  %v9973_v6 = vld [vmem:[#allocation6 + $0x264] sm:$0xf]  ;;  %v7516_v13 = vld [vmem:[#allocation6 + $0x370] sm:$0xf0] }
 0x127   :  { %v7391_v24 = vor.u32 %v9973_v6, %v7388_v7  ;;  %v7519_v30 = vor.u32 %v10005_v8, %v7516_v13  ;;  %v9897_v59 = vld [vmem:[#allocation6 + $0x4] sm:$0xf]  ;;  %v7212_v2 = vld [vmem:[#allocation6 + $0x110] sm:$0xf0] }
 0x128   :  { %4539 = vmatpush.bf16.msra.mxu0 %v7199_v57  ;;  %4553 = vmatpush.bf16.msra.mxu1 %v7327_v0  ;;  %v1152_v57 = vpop.f32.mrf.mxu1  ;;  %v296_v0 = vperm.slane %v10930_v26, 5  ;;  %v9929_v1 = vld [vmem:[#allocation6 + $0x104] sm:$0xf]  ;;  %v7340_v14 = vld [vmem:[#allocation6 + $0x210] sm:$0xf0] }
 0x129   :  { %v10085_v6 = vld [vmem:[#allocation6 + $0x5e4] sm:$0xf] }
 0x12a   :  { %4567 = vmatpush.bf16.msra.mxu2 %v7455_v18  ;;  %4581 = vmatpush.bf16.msra.mxu3 %v7583_v20  ;;  %v1153_v18 = vadd.f32 %v1152_v57, %v296_v0  ;;  %v9937_v20 = vld [vmem:[#allocation6 + $0x144] sm:$0xf] }
 0x12b   :  { %v9961_v13 = vld [vmem:[#allocation6 + $0x204] sm:$0xf] }
 0x12c   :  { %4540 = vmatpush.bf16.msra.mxu0 %v7183_v21  ;;  %4554 = vmatpush.bf16.msra.mxu1 %v7311_v9  ;;  %v7244_v21 = vld [vmem:[#allocation6 + $0x150] sm:$0xf0]  ;;  %v1166_v23 = vpop.f32.mrf.mxu2  ;;  %v1180_v28 = vpop.f32.mrf.mxu3  ;;  %v1198_v44 = vmax.f32 %v1153_v18, 0.0  ;;  %v7343_v42 = vor.u32 %v9961_v13, %v7340_v14  ;;  %v10073_v13 = vld [vmem:[#allocation6 + $0x584] sm:$0xf] }
 0x12d   :  { %v7372_v9 = vld [vmem:[#allocation6 + $0x250] sm:$0xf0]  ;;  %v1140_v29 = vpop.f32.mrf.mxu0  ;;  %v7247_v39 = vor.u32 %v9937_v20, %v7244_v21  ;;  %v1167_v26 = vadd.f32 %v1166_v23, %v297_v41  ;;  %v1181_v7 = vadd.f32 %v1180_v28, %v298_v49  ;;  %v9993_v23 = vld [vmem:[#allocation6 + $0x304] sm:$0xf]  ;;  %v7215_v28 = vor.u32 %v9929_v1, %v7212_v2 }
 0x12e   :  { %4568 = vmatpush.bf16.msra.mxu2 %v7439_v33  ;;  %4582 = vmatpush.bf16.msra.mxu3 %v7567_v34  ;;  %v7500_v33 = vld [vmem:[#allocation6 + $0x350] sm:$0xf0]  ;;  %v9901_v34 = vld [vmem:[#allocation6 + $0x24] sm:$0xf]  ;;  %v1141_v36 = vadd.f32 %v1140_v29, %v295_v47 }
 0x12f   :  { %v7503_v47 = vor.u32 %v10001_v32, %v7500_v33  ;;  %v8092_v32 = vld [vmem:[#allocation6 + $0x7f0] sm:$0xf0]  ;;  %v1199_v33 = vmax.f32 %v1167_v26, 0.0 }
 0x130   :  { %4541 = vmatpush.bf16.msra.mxu0 %v7167_v35  ;;  %4555 = vmatpush.bf16.msra.mxu1 %v7295_v40  ;;  %v1197_v35 = vmax.f32 %v1139_v10, 0.0  ;;  %v1154_v38 = vpop.f32.mrf.mxu1  ;;  %v7100_v40 = vld [vmem:[#allocation6 + $0x30] sm:$0xf0] }
 0x131   :  { %v1155_v45 = vadd.f32 %v1154_v38, %v296_v0  ;;  %v7103_v57 = vor.u32 %v9901_v34, %v7100_v40  ;;  %v7084_v0 = vld [vmem:[#allocation6 + $0x10] sm:$0xf0] }
 0x132   :  { %4569 = vmatpush.bf16.msra.mxu2 %v7423_v48  ;;  %4583 = vmatpush.bf16.msra.mxu3 %v7551_v51  ;;  %v9965_v48 = vld [vmem:[#allocation6 + $0x224] sm:$0xf]  ;;  %v1213_v51 = vmax.f32 %v1141_v36, 0.0  ;;  %v7087_v21 = vor.u32 %v9897_v59, %v7084_v0  ;;  %v7692_v38 = vld [vmem:[#allocation6 + $0x4d0] sm:$0xf0] }
 0x133   :  { %v1214_v56 = vmax.f32 %v1155_v45, 0.0  ;;  %v7359_v10 = vor.u32 %v9965_v48, %v7356_v54  ;;  %v10049_v36 = vld [vmem:[#allocation6 + $0x4c4] sm:$0xf]  ;;  %v7676_v59 = vld [vmem:[#allocation6 + $0x4b0] sm:$0xf0] }
 0x134   :  { %4542 = vmatpush.bf16.msra.mxu0 %v7151_v52  ;;  %4556 = vmatpush.bf16.msra.mxu1 %v7279_v58  ;;  %v7375_v52 = vor.u32 %v9969_v25, %v7372_v9  ;;  %v7484_v58 = vld [vmem:[#allocation6 + $0x330] sm:$0xf0]  ;;  %v10952_v61 = vpack.c.bf16 %v1213_v51, %v1197_v35  ;;  %v1168_v8 = vpop.f32.mrf.mxu2  ;;  %v1182_v18 = vpop.f32.mrf.mxu3  ;;  %v10117_v25 = vld [vmem:[#allocation6 + $0x6e4] sm:$0xf] }
 0x135   :  { %v1169_v15 = vadd.f32 %v1168_v8, %v297_v41  ;;  %v7487_v20 = vor.u32 %v9997_v55, %v7484_v58  ;;  %v1183_v9 = vadd.f32 %v1182_v18, %v298_v49  ;;  %v7820_v41 = vld [vmem:[#allocation6 + $0x5d0] sm:$0xf0]  ;;  %v10113_v54 = vld [vmem:[#allocation6 + $0x6c4] sm:$0xf] }
 0x136   :  { %4570 = vmatpush.bf16.msra.mxu2 %v7407_v3  ;;  %4584 = vmatpush.bf16.msra.mxu3 %v7535_v4  ;;  %v10954_v3 = vpack.c.bf16 %v1214_v56, %v1198_v44  ;;  %v10053_v4 = vld [vmem:[#allocation6 + $0x4e4] sm:$0xf]  ;;  %v7948_v55 = vld [vmem:[#allocation6 + $0x6d0] sm:$0xf0] }
 0x137   :  { %4491 = vmatmul.bf16.vlgmr.msrb.gmra.mxu0 %v10952_v61  ;;  %v1215_v34 = vmax.f32 %v1169_v15, 0.0  ;;  %v1216_v40 = vmax.f32 %v1183_v9, 0.0  ;;  %v10081_v44 = vld [vmem:[#allocation6 + $0x5c4] sm:$0xf]  ;;  %v7804_v0 = vld [vmem:[#allocation6 + $0x5b0] sm:$0xf0]  ;;  %v7951_v1 = vor.u32 %v10113_v54, %v7948_v55 }
 0x138   :  { %4543 = vmatpush.bf16.msra.mxu0 %v7135_v5  ;;  %4557 = vmatpush.bf16.msra.mxu1 %v7263_v12  ;;  %v7708_v5 = vld [vmem:[#allocation6 + $0x4f0] sm:$0xf0]  ;;  %v10145_v56 = vld [vmem:[#allocation6 + $0x7c4] sm:$0xf] }
 0x139   :  { %v7836_v12 = vld [vmem:[#allocation6 + $0x5f0] sm:$0xf0]  ;;  %v7711_v29 = vor.u32 %v10053_v4, %v7708_v5  ;;  %4505 = vmatmul.bf16.vlgmr.msrb.gmra.mxu1 %v10954_v3  ;;  %v10958_v45 = vpack.c.bf16 %v1215_v34, %v1199_v33  ;;  %v10045_v58 = vld [vmem:[#allocation6 + $0x4a4] sm:$0xf] }
 0x13a   :  { %4571 = vmatpush.bf16.msra.mxu2 %v7391_v24  ;;  %4585 = vmatpush.bf16.msra.mxu3 %v7519_v30  ;;  %v7468_v24 = vld [vmem:[#allocation6 + $0x310] sm:$0xf0]  ;;  %v7839_v35 = vor.u32 %v10085_v6, %v7836_v12  ;;  %v7679_v26 = vor.u32 %v10045_v58, %v7676_v59  ;;  %v10109_v4 = vld [vmem:[#allocation6 + $0x6a4] sm:$0xf] }
 0x13b   :  { %v7964_v30 = vld [vmem:[#allocation6 + $0x6f0] sm:$0xf0]  ;;  %11292 = vst [vmem:[#allocation20_spill] sm:$0xff] %v10958_v45  ;;  %v7471_v46 = vor.u32 %v9993_v23, %v7468_v24  ;;  %4519 = vmatmul.bf16.vlgmr.msrb.gmra.mxu2 %v10958_v45  ;;  %v10141_v6 = vld [vmem:[#allocation6 + $0x7a4] sm:$0xf] }
 0x13c   :  { %4544 = vmatpush.bf16.msra.mxu0 %v7119_v31  ;;  %4558 = vmatpush.bf16.msra.mxu1 %v7247_v39  ;;  %v10149_v31 = vld [vmem:[#allocation6 + $0x7e4] sm:$0xf]  ;;  %v1200_v39 = vmax.f32 %v1181_v7, 0.0  ;;  %v7967_v48 = vor.u32 %v10117_v25, %v7964_v30  ;;  %v7932_v5 = vld [vmem:[#allocation6 + $0x6b0] sm:$0xf0] }
 0x13d   :  { %v8095_v51 = vor.u32 %v10149_v31, %v8092_v32  ;;  %v8060_v8 = vld [vmem:[#allocation6 + $0x7b0] sm:$0xf0]  ;;  %v7935_v15 = vor.u32 %v10109_v4, %v7932_v5  ;;  %v10137_v24 = vld [vmem:[#allocation6 + $0x784] sm:$0xf] }
 0x13e   :  { %4572 = vmatpush.bf16.msra.mxu2 %v7375_v52  ;;  %4586 = vmatpush.bf16.msra.mxu3 %v7503_v47  ;;  %v10960_v49 = vpack.c.bf16 %v1216_v40, %v1200_v39  ;;  %v7695_v52 = vor.u32 %v10049_v36, %v7692_v38  ;;  %v7823_v47 = vor.u32 %v10081_v44, %v7820_v41  ;;  %v7660_v12 = vld [vmem:[#allocation6 + $0x490] sm:$0xf0]  ;;  %v10069_v30 = vld [vmem:[#allocation6 + $0x564] sm:$0xf] }
 0x13f   :  { %v7788_v14 = vld [vmem:[#allocation6 + $0x590] sm:$0xf0]  ;;  %v8063_v18 = vor.u32 %v10141_v6, %v8060_v8  ;;  %v10133_v38 = vld [vmem:[#allocation6 + $0x764] sm:$0xf] }
 0x140   :  { %4545 = vmatpush.bf16.msra.mxu0 %v7103_v57  ;;  %4559 = vmatpush.bf16.msra.mxu1 %v7231_v63  ;;  %11293 = vst [vmem:[#allocation21_spill] sm:$0xff] %v10960_v49  ;;  %v8076_v57 = vld [vmem:[#allocation6 + $0x7d0] sm:$0xf0]  ;;  %v10077_v63 = vld [vmem:[#allocation6 + $0x5a4] sm:$0xf]  ;;  %v7791_v25 = vor.u32 %v10073_v13, %v7788_v14 }
 0x141   :  { %4533 = vmatmul.bf16.vlgmr.msrb.gmra.mxu3 %v10960_v49  ;;  %v8079_v2 = vor.u32 %v10145_v56, %v8076_v57  ;;  %v7807_v7 = vor.u32 %v10077_v63, %v7804_v0  ;;  %v7916_v23 = vld [vmem:[#allocation6 + $0x690] sm:$0xf0]  ;;  %v10065_v41 = vld [vmem:[#allocation6 + $0x544] sm:$0xf] }
 0x142   :  { %4573 = vmatpush.bf16.msra.mxu2 %v7359_v10  ;;  %4587 = vmatpush.bf16.msra.mxu3 %v7487_v20  ;;  %v10041_v10 = vld [vmem:[#allocation6 + $0x484] sm:$0xf]  ;;  %v8044_v9 = vld [vmem:[#allocation6 + $0x790] sm:$0xf0] }
 0x143   :  { %v7663_v20 = vor.u32 %v10041_v10, %v7660_v12  ;;  %v7772_v31 = vld [vmem:[#allocation6 + $0x570] sm:$0xf0]  ;;  %v8047_v33 = vor.u32 %v10137_v24, %v8044_v9  ;;  %v10097_v54 = vld [vmem:[#allocation6 + $0x644] sm:$0xf] }
 0x144   :  { %4546 = vmatpush.bf16.msra.mxu0 %v7087_v21  ;;  %4560 = vmatpush.bf16.msra.mxu1 %v7215_v28  ;;  %v10105_v21 = vld [vmem:[#allocation6 + $0x684] sm:$0xf]  ;;  %v7900_v36 = vld [vmem:[#allocation6 + $0x670] sm:$0xf0]  ;;  %v7775_v39 = vor.u32 %v10069_v30, %v7772_v31  ;;  %v10968_v31 = vld [vmem:[#allocation7] sm:$0xf] }
 0x145   :  { %v10037_v28 = vld [vmem:[#allocation6 + $0x464] sm:$0xf]  ;;  %v7919_v32 = vor.u32 %v10105_v21, %v7916_v23  ;;  %v8028_v40 = vld [vmem:[#allocation6 + $0x770] sm:$0xf0] }
 0x146   :  { %4574 = vmatpush.bf16.msra.mxu2 %v7343_v42  ;;  %4588 = vmatpush.bf16.msra.mxu3 %v7471_v46  ;;  %v10033_v42 = vld [vmem:[#allocation6 + $0x444] sm:$0xf]  ;;  %v7628_v44 = vld [vmem:[#allocation6 + $0x450] sm:$0xf0] }
 0x147   :  { %4547 = vmatmul.bf16.vlgmr.msra.gmra.mxu0 %v10902_v11  ;;  %v7756_v46 = vld [vmem:[#allocation6 + $0x550] sm:$0xf0]  ;;  %v10129_v56 = vld [vmem:[#allocation6 + $0x744] sm:$0xf] }
 0x148   :  { %4595 = vmatpush.bf16.msrb.mxu0 %v7711_v29  ;;  %4609 = vmatpush.bf16.msrb.mxu1 %v7839_v35  ;;  %v7644_v29 = vld [vmem:[#allocation6 + $0x470] sm:$0xf0]  ;;  %v10101_v35 = vld [vmem:[#allocation6 + $0x664] sm:$0xf] }
 0x149   :  { %v7647_v34 = vor.u32 %v10037_v28, %v7644_v29  ;;  %4561 = vmatmul.bf16.vlgmr.msra.gmra.mxu1 %v10904_v17  ;;  %v7884_v55 = vld [vmem:[#allocation6 + $0x650] sm:$0xf0]  ;;  %v10029_v58 = vld [vmem:[#allocation6 + $0x424] sm:$0xf] }
 0x14a   :  { %4623 = vmatpush.bf16.msrb.mxu2 %v7967_v48  ;;  %4637 = vmatpush.bf16.msrb.mxu3 %v8095_v51  ;;  %v7903_v48 = vor.u32 %v10101_v35, %v7900_v36  ;;  %v8031_v51 = vor.u32 %v10133_v38, %v8028_v40  ;;  %v8012_v57 = vld [vmem:[#allocation6 + $0x750] sm:$0xf0]  ;;  %v10061_v63 = vld [vmem:[#allocation6 + $0x524] sm:$0xf] }
 0x14b   :  { %4575 = vmatmul.bf16.vlgmr.msra.gmra.mxu2 %v10908_v50  ;;  %v7612_v59 = vld [vmem:[#allocation6 + $0x430] sm:$0xf0]  ;;  %v8015_v4 = vor.u32 %v10129_v56, %v8012_v57  ;;  %v10125_v6 = vld [vmem:[#allocation6 + $0x724] sm:$0xf] }
 0x14c   :  { %4596 = vmatpush.bf16.msrb.mxu0 %v7695_v52  ;;  %4610 = vmatpush.bf16.msrb.mxu1 %v7823_v47  ;;  %v7631_v52 = vor.u32 %v10033_v42, %v7628_v44  ;;  %v7759_v47 = vor.u32 %v10065_v41, %v7756_v46  ;;  %v7740_v0 = vld [vmem:[#allocation6 + $0x530] sm:$0xf0]  ;;  %v7615_v5 = vor.u32 %v10029_v58, %v7612_v59  ;;  %v10025_v8 = vld [vmem:[#allocation6 + $0x404] sm:$0xf] }
 0x14d   :  { %v7743_v10 = vor.u32 %v10061_v63, %v7740_v0  ;;  %v7596_v12 = vld [vmem:[#allocation6 + $0x410] sm:$0xf0]  ;;  %v10057_v13 = vld [vmem:[#allocation6 + $0x504] sm:$0xf] }
 0x14e   :  { %4624 = vmatpush.bf16.msrb.mxu2 %v7951_v1  ;;  %4638 = vmatpush.bf16.msrb.mxu3 %v8079_v2  ;;  %v7887_v1 = vor.u32 %v10097_v54, %v7884_v55  ;;  %v10093_v2 = vld [vmem:[#allocation6 + $0x624] sm:$0xf]  ;;  %v7724_v14 = vld [vmem:[#allocation6 + $0x510] sm:$0xf0]  ;;  %v7599_v28 = vor.u32 %v10025_v8, %v7596_v12 }
 0x14f   :  { %v8348_v23 = vld [vmem:[#allocation6 + $0x9f0] sm:$0xf0]  ;;  %v10089_v24 = vld [vmem:[#allocation6 + $0x604] sm:$0xf] }
 0x150   :  { %4597 = vmatpush.bf16.msrb.mxu0 %v7679_v26  ;;  %4611 = vmatpush.bf16.msrb.mxu1 %v7807_v7  ;;  %v7868_v26 = vld [vmem:[#allocation6 + $0x630] sm:$0xf0]  ;;  %v10121_v29 = vld [vmem:[#allocation6 + $0x704] sm:$0xf] }
 0x151   :  { %4589 = vmatmul.bf16.vlgmr.msra.gmra.mxu3 %v10910_v53  ;;  %v7996_v7 = vld [vmem:[#allocation6 + $0x730] sm:$0xf0]  ;;  %v7871_v21 = vor.u32 %v10093_v2, %v7868_v26  ;;  %v10277_v36 = vld [vmem:[#allocation6 + $0xbe4] sm:$0xf] }
 0x152   :  { %4625 = vmatpush.bf16.msrb.mxu2 %v7935_v15  ;;  %4639 = vmatpush.bf16.msrb.mxu3 %v8063_v18  ;;  %v10181_v15 = vld [vmem:[#allocation6 + $0x8e4] sm:$0xf]  ;;  %v8220_v18 = vld [vmem:[#allocation6 + $0x8f0] sm:$0xf0]  ;;  %v7999_v9 = vor.u32 %v10125_v6, %v7996_v7  ;;  %v4324_v58 = vpop.f32.mrf.mxu0 }
 0x153   :  { %v7980_v30 = vld [vmem:[#allocation6 + $0x710] sm:$0xf0]  ;;  %v10177_v40 = vld [vmem:[#allocation6 + $0x8c4] sm:$0xf] }
 0x154   :  { %4598 = vmatpush.bf16.msrb.mxu0 %v7663_v20  ;;  %4612 = vmatpush.bf16.msrb.mxu1 %v7791_v25  ;;  %v10213_v20 = vld [vmem:[#allocation6 + $0x9e4] sm:$0xf]  ;;  %v7852_v25 = vld [vmem:[#allocation6 + $0x610] sm:$0xf0] }
 0x155   :  { %v8476_v35 = vld [vmem:[#allocation6 + $0xaf0] sm:$0xf0]  ;;  %v8351_v38 = vor.u32 %v10213_v20, %v8348_v23  ;;  %v7855_v44 = vor.u32 %v10089_v24, %v7852_v25  ;;  %v10209_v41 = vld [vmem:[#allocation6 + $0x9c4] sm:$0xf] }
 0x156   :  { %4626 = vmatpush.bf16.msrb.mxu2 %v7919_v32  ;;  %4640 = vmatpush.bf16.msrb.mxu3 %v8047_v33  ;;  %v7727_v32 = vor.u32 %v10057_v13, %v7724_v14  ;;  %v8223_v33 = vor.u32 %v10181_v15, %v8220_v18  ;;  %v8204_v42 = vld [vmem:[#allocation6 + $0x8d0] sm:$0xf0]  ;;  %v10241_v55 = vld [vmem:[#allocation6 + $0xac4] sm:$0xf] }
 0x157   :  { %v8332_v46 = vld [vmem:[#allocation6 + $0x9d0] sm:$0xf0]  ;;  %v10273_v59 = vld [vmem:[#allocation6 + $0xbc4] sm:$0xf] }
 0x158   :  { %4599 = vmatpush.bf16.msrb.mxu0 %v7647_v34  ;;  %4613 = vmatpush.bf16.msrb.mxu1 %v7775_v39  ;;  %v10245_v34 = vld [vmem:[#allocation6 + $0xae4] sm:$0xf]  ;;  %v8604_v39 = vld [vmem:[#allocation6 + $0xbf0] sm:$0xf0]  ;;  %v8335_v57 = vor.u32 %v10209_v41, %v8332_v46 }
 0x159   :  { %v8607_v54 = vor.u32 %v10277_v36, %v8604_v39  ;;  %v8460_v56 = vld [vmem:[#allocation6 + $0xad0] sm:$0xf0]  ;;  %v10173_v0 = vld [vmem:[#allocation6 + $0x8a4] sm:$0xf] }
 0x15a   :  { %4627 = vmatpush.bf16.msrb.mxu2 %v7903_v48  ;;  %4641 = vmatpush.bf16.msrb.mxu3 %v8031_v51  ;;  %v11289_v48 = vperm.slane %v10968_v31, 0  ;;  %v7983_v51 = vor.u32 %v10121_v29, %v7980_v30  ;;  %v8588_v63 = vld [vmem:[#allocation6 + $0xbd0] sm:$0xf0]  ;;  %v10205_v26 = vld [vmem:[#allocation6 + $0x9a4] sm:$0xf]  ;;  %v8463_v6 = vor.u32 %v10241_v55, %v8460_v56 }
 0x15b   :  { %v8188_v2 = vld [vmem:[#allocation6 + $0x8b0] sm:$0xf0]  ;;  %v8591_v7 = vor.u32 %v10273_v59, %v8588_v63  ;;  %v10237_v8 = vld [vmem:[#allocation6 + $0xaa4] sm:$0xf] }
 0x15c   :  { %4600 = vmatpush.bf16.msrb.mxu0 %v7631_v52  ;;  %4614 = vmatpush.bf16.msrb.mxu1 %v7759_v47  ;;  %v8479_v52 = vor.u32 %v10245_v34, %v8476_v35  ;;  %v8207_v47 = vor.u32 %v10177_v40, %v8204_v42  ;;  %v8191_v13 = vor.u32 %v10173_v0, %v8188_v2  ;;  %v10269_v15 = vld [vmem:[#allocation6 + $0xba4] sm:$0xf]  ;;  %v8572_v18 = vld [vmem:[#allocation6 + $0xbb0] sm:$0xf0] }
 0x15d   :  { %v10169_v20 = vld [vmem:[#allocation6 + $0x884] sm:$0xf]  ;;  %v8300_v24 = vld [vmem:[#allocation6 + $0x990] sm:$0xf0] }
 0x15e   :  { %4628 = vmatpush.bf16.msrb.mxu2 %v7887_v1  ;;  %4642 = vmatpush.bf16.msrb.mxu3 %v8015_v4  ;;  %v4325_v1 = vadd.f32 %v4324_v58, %v11289_v48  ;;  %v8316_v4 = vld [vmem:[#allocation6 + $0x9b0] sm:$0xf0]  ;;  %v10201_v23 = vld [vmem:[#allocation6 + $0x984] sm:$0xf]  ;;  %v10248_v48 = vld [vmem:[#allocation6 + $0xaf4] sm:$0xf0] }
 0x15f   :  { %v8319_v14 = vor.u32 %v10205_v26, %v8316_v4  ;;  %v8428_v29 = vld [vmem:[#allocation6 + $0xa90] sm:$0xf0]  ;;  %v10165_v35 = vld [vmem:[#allocation6 + $0x864] sm:$0xf] }
 0x160   :  { %4601 = vmatpush.bf16.msrb.mxu0 %v7615_v5  ;;  %4615 = vmatpush.bf16.msrb.mxu1 %v7743_v10  ;;  %v4338_v5 = vpop.f32.mrf.mxu1  ;;  %v8444_v10 = vld [vmem:[#allocation6 + $0xab0] sm:$0xf0]  ;;  %v10161_v55 = vld [vmem:[#allocation6 + $0x844] sm:$0xf]  ;;  %v4352_v56 = vpop.f32.mrf.mxu2 }
 0x161   :  { %v4339_v12 = vadd.f32 %v4338_v5, %v4325_v1  ;;  %v8447_v25 = vor.u32 %v10237_v8, %v8444_v10  ;;  %v8556_v34 = vld [vmem:[#allocation6 + $0xb90] sm:$0xf0]  ;;  %v4366_v63 = vpop.f32.mrf.mxu3  ;;  %v10225_v2 = vld [vmem:[#allocation6 + $0xa44] sm:$0xf] }
 0x162   :  { %4629 = vmatpush.bf16.msrb.mxu2 %v7871_v21  ;;  %4643 = vmatpush.bf16.msrb.mxu3 %v7999_v9  ;;  %v8172_v21 = vld [vmem:[#allocation6 + $0x890] sm:$0xf0]  ;;  %v8575_v9 = vor.u32 %v10269_v15, %v8572_v18  ;;  %v10157_v10 = vld [vmem:[#allocation6 + $0x824] sm:$0xf] }
 0x163   :  { %v8175_v30 = vor.u32 %v10169_v20, %v8172_v21  ;;  %v8156_v36 = vld [vmem:[#allocation6 + $0x870] sm:$0xf0]  ;;  %v4353_v59 = vadd.f32 %v4352_v56, %v4339_v12  ;;  %v10221_v20 = vld [vmem:[#allocation6 + $0xa24] sm:$0xf] }
 0x164   :  { %4602 = vmatpush.bf16.msrb.mxu0 %v7599_v28  ;;  %4616 = vmatpush.bf16.msrb.mxu1 %v7727_v32  ;;  %v10233_v28 = vld [vmem:[#allocation6 + $0xa84] sm:$0xf]  ;;  %v8303_v32 = vor.u32 %v10201_v23, %v8300_v24  ;;  %v8284_v39 = vld [vmem:[#allocation6 + $0x970] sm:$0xf0]  ;;  %v8159_v46 = vor.u32 %v10165_v35, %v8156_v36 }
 0x165   :  { %v8431_v40 = vor.u32 %v10233_v28, %v8428_v29  ;;  %v8412_v41 = vld [vmem:[#allocation6 + $0xa70] sm:$0xf0]  ;;  %v10977_v4 = vadd.f32 %v4366_v63, %v4353_v59  ;;  %v10253_v23 = vld [vmem:[#allocation6 + $0xb24] sm:$0xf] }
 0x166   :  { %4630 = vmatpush.bf16.msrb.mxu2 %v7855_v44  ;;  %4644 = vmatpush.bf16.msrb.mxu3 %v7983_v51  ;;  %v10229_v44 = vld [vmem:[#allocation6 + $0xa64] sm:$0xf]  ;;  %v8268_v58 = vld [vmem:[#allocation6 + $0x950] sm:$0xf0] }
 0x167   :  { %4603 = vmatmul.bf16.vlgmr.msrb.gmra.mxu0 %v10918_v22  ;;  %4617 = vmatmul.bf16.vlgmr.msrb.gmra.mxu1 %v10920_v27  ;;  %v8415_v0 = vor.u32 %v10229_v44, %v8412_v41  ;;  %v8396_v26 = vld [vmem:[#allocation6 + $0xa50] sm:$0xf0]  ;;  %v10153_v28 = vld [vmem:[#allocation6 + $0x804] sm:$0xf] }
 0x168   :  { %4651 = vmatpush.bf16.msra.mxu0 %v8223_v33  ;;  %4665 = vmatpush.bf16.msra.mxu1 %v8351_v38  ;;  %v10265_v33 = vld [vmem:[#allocation6 + $0xb84] sm:$0xf]  ;;  %v8524_v8 = vld [vmem:[#allocation6 + $0xb50] sm:$0xf0]  ;;  %v8399_v12 = vor.u32 %v10225_v2, %v8396_v26 }
 0x169   :  { %4631 = vmatmul.bf16.vlgmr.msrb.gmra.mxu2 %v10924_v60  ;;  %4645 = vmatmul.bf16.vlgmr.msrb.gmra.mxu3 %v10926_v62  ;;  %v10197_v38 = vld [vmem:[#allocation6 + $0x964] sm:$0xf]  ;;  %v8559_v42 = vor.u32 %v10265_v33, %v8556_v34  ;;  %v8252_v15 = vld [vmem:[#allocation6 + $0x930] sm:$0xf0] }
 0x16a   :  { %4679 = vmatpush.bf16.msra.mxu2 %v8479_v52  ;;  %4693 = vmatpush.bf16.msra.mxu3 %v8607_v54  ;;  %v8287_v51 = vor.u32 %v10197_v38, %v8284_v39  ;;  %v10261_v52 = vld [vmem:[#allocation6 + $0xb64] sm:$0xf]  ;;  %v8540_v54 = vld [vmem:[#allocation6 + $0xb70] sm:$0xf0]  ;;  %v10979_v38 = vpop.f32.mrf.mxu0 }
 0x16b   :  { %v8543_v1 = vor.u32 %v10261_v52, %v8540_v54  ;;  %v8380_v21 = vld [vmem:[#allocation6 + $0xa30] sm:$0xf0]  ;;  %v10309_v33 = vld [vmem:[#allocation6 + $0xce4] sm:$0xf]  ;;  %v10981_v52 = vpop.f32.mrf.mxu1 }
 0x16c   :  { %4652 = vmatpush.bf16.msra.mxu0 %v8207_v47  ;;  %4666 = vmatpush.bf16.msra.mxu1 %v8335_v57  ;;  %v8140_v47 = vld [vmem:[#allocation6 + $0x850] sm:$0xf0]  ;;  %v10193_v57 = vld [vmem:[#allocation6 + $0x944] sm:$0xf]  ;;  %v8383_v39 = vor.u32 %v10221_v20, %v8380_v21 }
 0x16d   :  { %v8143_v5 = vor.u32 %v10161_v55, %v8140_v47  ;;  %v8108_v29 = vld [vmem:[#allocation6 + $0x810] sm:$0xf0]  ;;  %v10341_v35 = vld [vmem:[#allocation6 + $0xde4] sm:$0xf] }
 0x16e   :  { %4680 = vmatpush.bf16.msra.mxu2 %v8463_v6  ;;  %4694 = vmatpush.bf16.msra.mxu3 %v8591_v7  ;;  %v8271_v6 = vor.u32 %v10193_v57, %v8268_v58  ;;  %v10257_v7 = vld [vmem:[#allocation6 + $0xb44] sm:$0xf]  ;;  %v8732_v34 = vld [vmem:[#allocation6 + $0xcf0] sm:$0xf0] }
 0x16f   :  { %v8527_v18 = vor.u32 %v10257_v7, %v8524_v8  ;;  %v8860_v36 = vld [vmem:[#allocation6 + $0xdf0] sm:$0xf0]  ;;  %v10217_v41 = vld [vmem:[#allocation6 + $0xa04] sm:$0xf]  ;;  %v8735_v54 = vor.u32 %v10309_v33, %v8732_v34 }
 0x170   :  { %4653 = vmatpush.bf16.msra.mxu0 %v8191_v13  ;;  %4667 = vmatpush.bf16.msra.mxu1 %v8319_v14  ;;  %v8124_v13 = vld [vmem:[#allocation6 + $0x830] sm:$0xf0]  ;;  %v10189_v14 = vld [vmem:[#allocation6 + $0x924] sm:$0xf]  ;;  %v8863_v55 = vor.u32 %v10341_v35, %v8860_v36 }
 0x171   :  { %v8127_v24 = vor.u32 %v10157_v10, %v8124_v13  ;;  %v8492_v56 = vld [vmem:[#allocation6 + $0xb10] sm:$0xf0]  ;;  %v10373_v47 = vld [vmem:[#allocation6 + $0xee4] sm:$0xf] }
 0x172   :  { %4681 = vmatpush.bf16.msra.mxu2 %v8447_v25  ;;  %4695 = vmatpush.bf16.msra.mxu3 %v8575_v9  ;;  %v8255_v25 = vor.u32 %v10189_v14, %v8252_v15  ;;  %v8508_v9 = vld [vmem:[#allocation6 + $0xb30] sm:$0xf0]  ;;  %v10405_v58 = vld [vmem:[#allocation6 + $0xfe4] sm:$0xf]  ;;  %v4380_v20 = vpop.f32.mrf.mxu0 }
 0x173   :  { %v8988_v57 = vld [vmem:[#allocation6 + $0xef0] sm:$0xf0]  ;;  %v10305_v63 = vld [vmem:[#allocation6 + $0xcc4] sm:$0xf] }
 0x174   :  { %4654 = vmatpush.bf16.msra.mxu0 %v8175_v30  ;;  %4668 = vmatpush.bf16.msra.mxu1 %v8303_v32  ;;  %v10185_v30 = vld [vmem:[#allocation6 + $0x904] sm:$0xf]  ;;  %v8236_v32 = vld [vmem:[#allocation6 + $0x910] sm:$0xf0] }
 0x175   :  { %v8239_v44 = vor.u32 %v10185_v30, %v8236_v32  ;;  %v9116_v59 = vld [vmem:[#allocation6 + $0xff0] sm:$0xf0]  ;;  %v10369_v8 = vld [vmem:[#allocation6 + $0xec4] sm:$0xf] }
 0x176   :  { %4682 = vmatpush.bf16.msra.mxu2 %v8431_v40  ;;  %4696 = vmatpush.bf16.msra.mxu3 %v8559_v42  ;;  %v8511_v40 = vor.u32 %v10253_v23, %v8508_v9  ;;  %v8111_v42 = vor.u32 %v10153_v28, %v8108_v29  ;;  %v8844_v2 = vld [vmem:[#allocation6 + $0xdd0] sm:$0xf0]  ;;  %v9119_v7 = vor.u32 %v10405_v58, %v9116_v59  ;;  %v10401_v15 = vld [vmem:[#allocation6 + $0xfc4] sm:$0xf]  ;;  %v4394_v9 = vpop.f32.mrf.mxu1 }
 0x177   :  { %v8972_v10 = vld [vmem:[#allocation6 + $0xed0] sm:$0xf0]  ;;  %v10333_v23 = vld [vmem:[#allocation6 + $0xda4] sm:$0xf] }
 0x178   :  { %4655 = vmatpush.bf16.msra.mxu0 %v8159_v46  ;;  %4669 = vmatpush.bf16.msra.mxu1 %v8287_v51  ;;  %v8364_v46 = vld [vmem:[#allocation6 + $0xa10] sm:$0xf0]  ;;  %v10249_v51 = vld [vmem:[#allocation6 + $0xb04] sm:$0xf]  ;;  %v8975_v28 = vor.u32 %v10369_v8, %v8972_v10 }
 0x179   :  { %v8367_v26 = vor.u32 %v10217_v41, %v8364_v46  ;;  %v8700_v21 = vld [vmem:[#allocation6 + $0xcb0] sm:$0xf0]  ;;  %v10365_v30 = vld [vmem:[#allocation6 + $0xea4] sm:$0xf]  ;;  %v10988_v41 = vpop.f32.mrf.mxu2 }
 0x17a   :  { %4683 = vmatpush.bf16.msra.mxu2 %v8415_v0  ;;  %4697 = vmatpush.bf16.msra.mxu3 %v8543_v1  ;;  %v8716_v0 = vld [vmem:[#allocation6 + $0xcd0] sm:$0xf0]  ;;  %v10337_v1 = vld [vmem:[#allocation6 + $0xdc4] sm:$0xf] }
 0x17b   :  { %v8719_v13 = vor.u32 %v10305_v63, %v8716_v0  ;;  %v8847_v14 = vor.u32 %v10337_v1, %v8844_v2  ;;  %v8956_v32 = vld [vmem:[#allocation6 + $0xeb0] sm:$0xf0]  ;;  %v10397_v36 = vld [vmem:[#allocation6 + $0xfa4] sm:$0xf] }
 0x17c   :  { %4656 = vmatpush.bf16.msra.mxu0 %v8143_v5  ;;  %4670 = vmatpush.bf16.msra.mxu1 %v8271_v6  ;;  %v8495_v5 = vor.u32 %v10249_v51, %v8492_v56  ;;  %v8991_v6 = vor.u32 %v10373_v47, %v8988_v57  ;;  %v8959_v46 = vor.u32 %v10365_v30, %v8956_v32  ;;  %v10990_v56 = vpop.f32.mrf.mxu3  ;;  %v10393_v58 = vld [vmem:[#allocation6 + $0xf84] sm:$0xf]  ;;  %v9068_v59 = vld [vmem:[#allocation6 + $0xf90] sm:$0xf0] }
 0x17d   :  { %v10293_v63 = vld [vmem:[#allocation6 + $0xc64] sm:$0xf]  ;;  %v8668_v0 = vld [vmem:[#allocation6 + $0xc70] sm:$0xf0] }
 0x17e   :  { %4684 = vmatpush.bf16.msra.mxu2 %v8399_v12  ;;  %4698 = vmatpush.bf16.msra.mxu3 %v8527_v18  ;;  %v9100_v12 = vld [vmem:[#allocation6 + $0xfd0] sm:$0xf0]  ;;  %v10301_v18 = vld [vmem:[#allocation6 + $0xca4] sm:$0xf]  ;;  %v8671_v8 = vor.u32 %v10293_v63, %v8668_v0 }
 0x17f   :  { %v9103_v29 = vor.u32 %v10401_v15, %v9100_v12  ;;  %v8703_v34 = vor.u32 %v10301_v18, %v8700_v21  ;;  %v10325_v1 = vld [vmem:[#allocation6 + $0xd64] sm:$0xf]  ;;  %v8796_v2 = vld [vmem:[#allocation6 + $0xd70] sm:$0xf0] }
 0x180   :  { %4657 = vmatpush.bf16.msra.mxu0 %v8127_v24  ;;  %4671 = vmatpush.bf16.msra.mxu1 %v8255_v25  ;;  %v8828_v24 = vld [vmem:[#allocation6 + $0xdb0] sm:$0xf0]  ;;  %v4381_v25 = vadd.f32 %v4380_v20, %v10977_v4  ;;  %v8799_v10 = vor.u32 %v10325_v1, %v8796_v2  ;;  %v10289_v15 = vld [vmem:[#allocation6 + $0xc44] sm:$0xf]  ;;  %v7202_v1 = vld [vmem:[#allocation6 + $0xe8] sm:$0xf] }
 0x181   :  { %v8831_v35 = vor.u32 %v10333_v23, %v8828_v24  ;;  %v8684_v4 = vld [vmem:[#allocation6 + $0xc90] sm:$0xf0]  ;;  %v10321_v18 = vld [vmem:[#allocation6 + $0xd44] sm:$0xf]  ;;  %v9928_v2 = vld [vmem:[#allocation6 + $0xf4] sm:$0xf0] }
 0x182   :  { %4685 = vmatpush.bf16.msra.mxu2 %v8383_v39  ;;  %4699 = vmatpush.bf16.msra.mxu3 %v8511_v40  ;;  %v4395_v33 = vadd.f32 %v4394_v9, %v4381_v25  ;;  %v9084_v39 = vld [vmem:[#allocation6 + $0xfb0] sm:$0xf0]  ;;  %v10297_v40 = vld [vmem:[#allocation6 + $0xc84] sm:$0xf]  ;;  %v4408_v21 = vpop.f32.mrf.mxu2 }
 0x183   :  { %v9087_v51 = vor.u32 %v10397_v36, %v9084_v39  ;;  %v8687_v47 = vor.u32 %v10297_v40, %v8684_v4  ;;  %v8652_v12 = vld [vmem:[#allocation6 + $0xc50] sm:$0xf0]  ;;  %v10353_v9 = vld [vmem:[#allocation6 + $0xe44] sm:$0xf] }
 0x184   :  { %4658 = vmatpush.bf16.msra.mxu0 %v8111_v42  ;;  %4672 = vmatpush.bf16.msra.mxu1 %v8239_v44  ;;  %v10329_v42 = vld [vmem:[#allocation6 + $0xd84] sm:$0xf]  ;;  %v8812_v44 = vld [vmem:[#allocation6 + $0xd90] sm:$0xf0]  ;;  %v4409_v23 = vadd.f32 %v4408_v21, %v4395_v33  ;;  %v8655_v30 = vor.u32 %v10289_v15, %v8652_v12 }
 0x185   :  { %v8815_v57 = vor.u32 %v10329_v42, %v8812_v44  ;;  %v8780_v20 = vld [vmem:[#allocation6 + $0xd50] sm:$0xf0]  ;;  %v10285_v36 = vld [vmem:[#allocation6 + $0xc24] sm:$0xf] }
 0x186   :  { %4686 = vmatpush.bf16.msra.mxu2 %v8367_v26  ;;  %4700 = vmatpush.bf16.msra.mxu3 %v8495_v5  ;;  %v9071_v5 = vor.u32 %v10393_v58, %v9068_v59  ;;  %v8783_v32 = vor.u32 %v10321_v18, %v8780_v20  ;;  %v8636_v40 = vld [vmem:[#allocation6 + $0xc30] sm:$0xf0]  ;;  %v10317_v4 = vld [vmem:[#allocation6 + $0xd24] sm:$0xf]  ;;  %v10996_v18 = vpop.f32.mrf.mxu1  ;;  %v7203_v20 = vor.u32 %v9928_v2, %v7202_v1 }
 0x187   :  { %4659 = vmatmul.bf16.vlgmr.msra.gmra.mxu0 %v10936_v37  ;;  %4673 = vmatmul.bf16.vlgmr.msra.gmra.mxu1 %v10938_v43  ;;  %v8764_v42 = vld [vmem:[#allocation6 + $0xd30] sm:$0xf0]  ;;  %v10281_v58 = vld [vmem:[#allocation6 + $0xc04] sm:$0xf] }
 0x188   :  { %4707 = vmatpush.bf16.msrb.mxu0 %v8735_v54  ;;  %4721 = vmatpush.bf16.msrb.mxu1 %v8863_v55  ;;  %v10361_v54 = vld [vmem:[#allocation6 + $0xe84] sm:$0xf]  ;;  %v8940_v55 = vld [vmem:[#allocation6 + $0xe90] sm:$0xf0] }
 0x189   :  { %4687 = vmatmul.bf16.vlgmr.msra.gmra.mxu2 %v10942_v16  ;;  %4701 = vmatmul.bf16.vlgmr.msra.gmra.mxu3 %v10944_v19  ;;  %v8943_v26 = vor.u32 %v10361_v54, %v8940_v55  ;;  %v10381_v54 = vld [vmem:[#allocation6 + $0xf24] sm:$0xf]  ;;  %v8639_v55 = vor.u32 %v10285_v36, %v8636_v40  ;;  %v8620_v59 = vld [vmem:[#allocation6 + $0xc10] sm:$0xf0] }
 0x18a   :  { %4735 = vmatpush.bf16.msrb.mxu2 %v8991_v6  ;;  %4749 = vmatpush.bf16.msrb.mxu3 %v9119_v7  ;;  %v10357_v6 = vld [vmem:[#allocation6 + $0xe64] sm:$0xf]  ;;  %v8924_v7 = vld [vmem:[#allocation6 + $0xe70] sm:$0xf0] }
 0x18b   :  { %v8927_v24 = vor.u32 %v10357_v6, %v8924_v7  ;;  %v10313_v63 = vld [vmem:[#allocation6 + $0xd04] sm:$0xf]  ;;  %v8748_v0 = vld [vmem:[#allocation6 + $0xd10] sm:$0xf0]  ;;  %v10994_v6 = vpop.f32.mrf.mxu0 }
 0x18c   :  { %4708 = vmatpush.bf16.msrb.mxu0 %v8719_v13  ;;  %4722 = vmatpush.bf16.msrb.mxu1 %v8847_v14  ;;  %v10389_v13 = vld [vmem:[#allocation6 + $0xf64] sm:$0xf]  ;;  %v9052_v14 = vld [vmem:[#allocation6 + $0xf70] sm:$0xf0] }
 0x18d   :  { %v9055_v25 = vor.u32 %v10389_v13, %v9052_v14  ;;  %v8751_v13 = vor.u32 %v10313_v63, %v8748_v0  ;;  %v10345_v14 = vld [vmem:[#allocation6 + $0xe04] sm:$0xf]  ;;  %v8876_v15 = vld [vmem:[#allocation6 + $0xe10] sm:$0xf0] }
 0x18e   :  { %4736 = vmatpush.bf16.msrb.mxu2 %v8975_v28  ;;  %4750 = vmatpush.bf16.msrb.mxu3 %v9103_v29  ;;  %v8908_v28 = vld [vmem:[#allocation6 + $0xe50] sm:$0xf0]  ;;  %v4422_v29 = vpop.f32.mrf.mxu3  ;;  %v10377_v12 = vld [vmem:[#allocation6 + $0xf04] sm:$0xf] }
 0x18f   :  { %v10992_v39 = vadd.f32 %v4422_v29, %v4409_v23  ;;  %v8911_v33 = vor.u32 %v10353_v9, %v8908_v28  ;;  %v9004_v23 = vld [vmem:[#allocation6 + $0xf10] sm:$0xf0]  ;;  %v7586_v9 = vld [vmem:[#allocation6 + $0x3e8] sm:$0xf]  ;;  %v10024_v28 = vld [vmem:[#allocation6 + $0x3f4] sm:$0xf0] }
 0x190   :  { %4709 = vmatpush.bf16.msrb.mxu0 %v8703_v34  ;;  %4723 = vmatpush.bf16.msrb.mxu1 %v8831_v35  ;;  %v10385_v34 = vld [vmem:[#allocation6 + $0xf44] sm:$0xf]  ;;  %v9036_v35 = vld [vmem:[#allocation6 + $0xf50] sm:$0xf0]  ;;  %v7186_v29 = vld [vmem:[#allocation6 + $0xc8] sm:$0xf]  ;;  %v9007_v36 = vor.u32 %v10377_v12, %v9004_v23 }
 0x191   :  { %v9039_v44 = vor.u32 %v10385_v34, %v9036_v35  ;;  %v9956_v34 = vld [vmem:[#allocation6 + $0x1d4] sm:$0xf0]  ;;  %v8879_v35 = vor.u32 %v10345_v14, %v8876_v15  ;;  %v7154_v15 = vld [vmem:[#allocation6 + $0x88] sm:$0xf] }
 0x192   :  { %4737 = vmatpush.bf16.msrb.mxu2 %v8959_v46  ;;  %4751 = vmatpush.bf16.msrb.mxu3 %v9087_v51  ;;  %v10349_v46 = vld [vmem:[#allocation6 + $0xe24] sm:$0xf]  ;;  %v8892_v51 = vld [vmem:[#allocation6 + $0xe30] sm:$0xf0]  ;;  %v10016_v14 = vld [vmem:[#allocation6 + $0x3b4] sm:$0xf0] }
 0x193   :  { %v8895_v7 = vor.u32 %v10349_v46, %v8892_v51  ;;  %v7570_v51 = vld [vmem:[#allocation6 + $0x3c8] sm:$0xf] }
 0x194   :  { %4710 = vmatpush.bf16.msrb.mxu0 %v8687_v47  ;;  %4724 = vmatpush.bf16.msrb.mxu1 %v8815_v57  ;;  %v8767_v47 = vor.u32 %v10317_v4, %v8764_v42  ;;  %v9020_v57 = vld [vmem:[#allocation6 + $0xf30] sm:$0xf0]  ;;  %v7587_v4 = vor.u32 %v10024_v28, %v7586_v9  ;;  %v7442_v42 = vld [vmem:[#allocation6 + $0x2c8] sm:$0xf]  ;;  %v4450_v0 = vpop.f32.mrf.mxu1  ;;  %v9980_v9 = vld [vmem:[#allocation6 + $0x294] sm:$0xf0] }
 0x195   :  { %v7282_v12 = vld [vmem:[#allocation6 + $0x188] sm:$0xf] }
 0x196   :  { %4738 = vmatpush.bf16.msrb.mxu2 %v8943_v26  ;;  %4752 = vmatpush.bf16.msrb.mxu3 %v9071_v5  ;;  %v7330_v26 = vld [vmem:[#allocation6 + $0x1e8] sm:$0xf]  ;;  %v9960_v5 = vld [vmem:[#allocation6 + $0x1f4] sm:$0xf0]  ;;  %v11005_v28 = vpop.f32.mrf.mxu3 }
 0x197   :  { %v7331_v21 = vor.u32 %v9960_v5, %v7330_v26  ;;  %v7426_v26 = vld [vmem:[#allocation6 + $0x2a8] sm:$0xf]  ;;  %v9984_v5 = vld [vmem:[#allocation6 + $0x2b4] sm:$0xf0]  ;;  %11294 = vst [vmem:[#allocation22_spill] sm:$0xff] %v11005_v28 }
 0x198   :  { %4711 = vmatpush.bf16.msrb.mxu0 %v8671_v8  ;;  %4725 = vmatpush.bf16.msrb.mxu1 %v8799_v10  ;;  %v9023_v8 = vor.u32 %v10381_v54, %v9020_v57  ;;  %v8623_v10 = vor.u32 %v10281_v58, %v8620_v59  ;;  %v10020_v54 = vld [vmem:[#allocation6 + $0x3d4] sm:$0xf0]  ;;  %v7298_v58 = vld [vmem:[#allocation6 + $0x1a8] sm:$0xf]  ;;  %v7427_v23 = vor.u32 %v9984_v5, %v7426_v26  ;;  %v9922_v28 = vld [vmem:[#allocation6 + $0xcc] sm:$0xf] }
 0x199   :  { %v9920_v57 = vld [vmem:[#allocation6 + $0xb4] sm:$0xf0]  ;;  %v7571_v2 = vor.u32 %v10020_v54, %v7570_v51  ;;  %v7378_v5 = vld [vmem:[#allocation6 + $0x248] sm:$0xf] }
 0x19a   :  { %4739 = vmatpush.bf16.msrb.mxu2 %v8927_v24  ;;  %4753 = vmatpush.bf16.msrb.mxu3 %v9055_v25  ;;  %v7458_v24 = vld [vmem:[#allocation6 + $0x2e8] sm:$0xf]  ;;  %v9992_v25 = vld [vmem:[#allocation6 + $0x2f4] sm:$0xf0] }
 0x19b   :  { %v7459_v40 = vor.u32 %v9992_v25, %v7458_v24  ;;  %v9952_v59 = vld [vmem:[#allocation6 + $0x1b4] sm:$0xf0]  ;;  %v7410_v25 = vld [vmem:[#allocation6 + $0x288] sm:$0xf] }
 0x19c   :  { %4712 = vmatpush.bf16.msrb.mxu0 %v8655_v30  ;;  %4726 = vmatpush.bf16.msrb.mxu1 %v8783_v32  ;;  %v9924_v30 = vld [vmem:[#allocation6 + $0xd4] sm:$0xf0]  ;;  %v7314_v32 = vld [vmem:[#allocation6 + $0x1c8] sm:$0xf] }
 0x19d   :  { %v7315_v46 = vor.u32 %v9956_v34, %v7314_v32  ;;  %v7538_v32 = vld [vmem:[#allocation6 + $0x388] sm:$0xf]  ;;  %v10012_v34 = vld [vmem:[#allocation6 + $0x394] sm:$0xf0] }
 0x19e   :  { %4740 = vmatpush.bf16.msrb.mxu2 %v8911_v33  ;;  %4754 = vmatpush.bf16.msrb.mxu3 %v9039_v44  ;;  %v9988_v33 = vld [vmem:[#allocation6 + $0x2d4] sm:$0xf0]  ;;  %v7187_v44 = vor.u32 %v9924_v30, %v7186_v29 }
 0x19f   :  { %v7443_v1 = vor.u32 %v9988_v33, %v7442_v42  ;;  %v7411_v42 = vor.u32 %v9980_v9, %v7410_v25  ;;  %v7539_v33 = vor.u32 %v10012_v34, %v7538_v32  ;;  %v9936_v25 = vld [vmem:[#allocation6 + $0x134] sm:$0xf0]  ;;  %v7490_v32 = vld [vmem:[#allocation6 + $0x328] sm:$0xf] }
 0x1a0   :  { %4713 = vmatpush.bf16.msrb.mxu0 %v8639_v55  ;;  %4727 = vmatpush.bf16.msrb.mxu1 %v8767_v47  ;;  %v7170_v55 = vld [vmem:[#allocation6 + $0xa8] sm:$0xf]  ;;  %v4436_v47 = vpop.f32.mrf.mxu0 }
 0x1a1   :  { %v4437_v63 = vadd.f32 %v4436_v47, %v10992_v39  ;;  %v9916_v39 = vld [vmem:[#allocation6 + $0x94] sm:$0xf0] }
 0x1a2   :  { %4741 = vmatpush.bf16.msrb.mxu2 %v8895_v7  ;;  %4755 = vmatpush.bf16.msrb.mxu3 %v9023_v8  ;;  %v7171_v8 = vor.u32 %v9920_v57, %v7170_v55  ;;  %v7155_v29 = vor.u32 %v9916_v39, %v7154_v15  ;;  %v7522_v55 = vld [vmem:[#allocation6 + $0x368] sm:$0xf]  ;;  %v10008_v47 = vld [vmem:[#allocation6 + $0x374] sm:$0xf0] }
 0x1a3   :  { %v4451_v7 = vadd.f32 %v4450_v0, %v4437_v63  ;;  %v7122_v57 = vld [vmem:[#allocation6 + $0x48] sm:$0xf]  ;;  %v9940_v63 = vld [vmem:[#allocation6 + $0x154] sm:$0xf0]  ;;  %v7523_v26 = vor.u32 %v10008_v47, %v7522_v55 }
 0x1a4   :  { %4714 = vmatpush.bf16.msrb.mxu0 %v8623_v10  ;;  %4728 = vmatpush.bf16.msrb.mxu1 %v8751_v13  ;;  %v7299_v10 = vor.u32 %v9952_v59, %v7298_v58  ;;  %v7554_v13 = vld [vmem:[#allocation6 + $0x3a8] sm:$0xf]  ;;  %v9908_v58 = vld [vmem:[#allocation6 + $0x54] sm:$0xf0] }
 0x1a5   :  { %v7555_v24 = vor.u32 %v10016_v14, %v7554_v13  ;;  %v7250_v59 = vld [vmem:[#allocation6 + $0x148] sm:$0xf]  ;;  %v7123_v13 = vor.u32 %v9908_v58, %v7122_v57  ;;  %v10004_v39 = vld [vmem:[#allocation6 + $0x354] sm:$0xf0]  ;;  %v11011_v58 = vpop.f32.mrf.mxu1 }
 0x1a6   :  { %4742 = vmatpush.bf16.msrb.mxu2 %v8879_v35  ;;  %4756 = vmatpush.bf16.msrb.mxu3 %v9007_v36  ;;  %v7138_v35 = vld [vmem:[#allocation6 + $0x68] sm:$0xf]  ;;  %v9912_v36 = vld [vmem:[#allocation6 + $0x74] sm:$0xf0]  ;;  %v7251_v14 = vor.u32 %v9940_v63, %v7250_v59  ;;  %11296 = vst [vmem:[#allocation24_spill] sm:$0xff] %v11011_v58 }
 0x1a7   :  { %4715 = vmatmul.bf16.vlgmr.msrb.gmra.mxu0 %v10952_v61  ;;  %4729 = vmatmul.bf16.vlgmr.msrb.gmra.mxu1 %v10954_v3  ;;  %v7139_v51 = vor.u32 %v9912_v36, %v7138_v35  ;;  %v7506_v15 = vld [vmem:[#allocation6 + $0x348] sm:$0xf]  ;;  %v10000_v36 = vld [vmem:[#allocation6 + $0x334] sm:$0xf0]  ;;  %v7204_v58 = vld [vmem:[#allocation6 + $0xf8] sm:$0xf0] }
 0x1a8   :  { %4763 = vmatpush.bf16.msra.mxu0 %v7203_v20  ;;  %4777 = vmatpush.bf16.msra.mxu1 %v7331_v21  ;;  %v9948_v20 = vld [vmem:[#allocation6 + $0x194] sm:$0xf0]  ;;  %v11003_v21 = vpop.f32.mrf.mxu2  ;;  %v7507_v9 = vor.u32 %v10004_v39, %v7506_v15  ;;  %v7491_v57 = vor.u32 %v10000_v36, %v7490_v32  ;;  %v7698_v39 = vld [vmem:[#allocation6 + $0x4c8] sm:$0xf] }
 0x1a9   :  { %4743 = vmatmul.bf16.vlgmr.msrb.gmra.mxu2 %v10958_v45  ;;  %4757 = vmatmul.bf16.vlgmr.msrb.gmra.mxu3 %v10960_v49  ;;  %v7283_v30 = vor.u32 %v9948_v20, %v7282_v12  ;;  %v7106_v12 = vld [vmem:[#allocation6 + $0x28] sm:$0xf]  ;;  %v10088_v55 = vld [vmem:[#allocation6 + $0x5f4] sm:$0xf0] }
 0x1aa   :  { %4791 = vmatpush.bf16.msra.mxu2 %v7459_v40  ;;  %4805 = vmatpush.bf16.msra.mxu3 %v7587_v4  ;;  %v7266_v40 = vld [vmem:[#allocation6 + $0x168] sm:$0xf]  ;;  %v9944_v4 = vld [vmem:[#allocation6 + $0x174] sm:$0xf0] }
 0x1ab   :  { %v7267_v54 = vor.u32 %v9944_v4, %v7266_v40  ;;  %v7090_v40 = vld [vmem:[#allocation6 + $0x8] sm:$0xf]  ;;  %v9900_v4 = vld [vmem:[#allocation6 + $0x14] sm:$0xf0] }
 0x1ac   :  { %4764 = vmatpush.bf16.msra.mxu0 %v7187_v44  ;;  %4778 = vmatpush.bf16.msra.mxu1 %v7315_v46  ;;  %v7394_v44 = vld [vmem:[#allocation6 + $0x268] sm:$0xf]  ;;  %v9976_v46 = vld [vmem:[#allocation6 + $0x274] sm:$0xf0]  ;;  %v7091_v59 = vor.u32 %v9900_v4, %v7090_v40 }
 0x1ad   :  { %v10152_v15 = vld [vmem:[#allocation6 + $0x7f4] sm:$0xf0]  ;;  %v7954_v32 = vld [vmem:[#allocation6 + $0x6c8] sm:$0xf] }
 0x1ae   :  { %4792 = vmatpush.bf16.msra.mxu2 %v7443_v1  ;;  %4806 = vmatpush.bf16.msra.mxu3 %v7571_v2  ;;  %v7395_v2 = vor.u32 %v9976_v46, %v7394_v44  ;;  %v9932_v44 = vld [vmem:[#allocation6 + $0x114] sm:$0xf0]  ;;  %v7714_v46 = vld [vmem:[#allocation6 + $0x4e8] sm:$0xf] }
 0x1af   :  { %v8082_v4 = vld [vmem:[#allocation6 + $0x7c8] sm:$0xf] }
 0x1b0   :  { %4765 = vmatpush.bf16.msra.mxu0 %v7171_v8  ;;  %4779 = vmatpush.bf16.msra.mxu1 %v7299_v10  ;;  %v4464_v0 = vpop.f32.mrf.mxu2  ;;  %v9972_v8 = vld [vmem:[#allocation6 + $0x254] sm:$0xf0]  ;;  %v4478_v10 = vpop.f32.mrf.mxu3 }
 0x1b1   :  { %v4465_v1 = vadd.f32 %v4464_v0, %v4451_v7  ;;  %v7379_v7 = vor.u32 %v9972_v8, %v7378_v5  ;;  %v7346_v0 = vld [vmem:[#allocation6 + $0x208] sm:$0xf]  ;;  %v9996_v8 = vld [vmem:[#allocation6 + $0x314] sm:$0xf0] }
 0x1b2   :  { %4793 = vmatpush.bf16.msra.mxu2 %v7427_v23  ;;  %4807 = vmatpush.bf16.msra.mxu3 %v7555_v24  ;;  %v9904_v23 = vld [vmem:[#allocation6 + $0x34] sm:$0xf0]  ;;  %v7234_v24 = vld [vmem:[#allocation6 + $0x128] sm:$0xf] }
 0x1b3   :  { %v11007_v20 = vadd.f32 %v4478_v10, %v4465_v1  ;;  %v7107_v34 = vor.u32 %v9904_v23, %v7106_v12  ;;  %v7235_v35 = vor.u32 %v9936_v25, %v7234_v24  ;;  %v9964_v1 = vld [vmem:[#allocation6 + $0x214] sm:$0xf0]  ;;  %v7970_v10 = vld [vmem:[#allocation6 + $0x6e8] sm:$0xf] }
 0x1b4   :  { %4766 = vmatpush.bf16.msra.mxu0 %v7155_v29  ;;  %4780 = vmatpush.bf16.msra.mxu1 %v7283_v30  ;;  %v7362_v29 = vld [vmem:[#allocation6 + $0x228] sm:$0xf]  ;;  %v9968_v30 = vld [vmem:[#allocation6 + $0x234] sm:$0xf0]  ;;  %v7347_v25 = vor.u32 %v9964_v1, %v7346_v0 }
 0x1b5   :  { %v7363_v47 = vor.u32 %v9968_v30, %v7362_v29  ;;  %v10052_v12 = vld [vmem:[#allocation6 + $0x4d4] sm:$0xf0]  ;;  %v7826_v23 = vld [vmem:[#allocation6 + $0x5c8] sm:$0xf] }
 0x1b6   :  { %4794 = vmatpush.bf16.msra.mxu2 %v7411_v42  ;;  %4808 = vmatpush.bf16.msra.mxu3 %v7539_v33  ;;  %v11009_v42 = vpop.f32.mrf.mxu0  ;;  %v7218_v33 = vld [vmem:[#allocation6 + $0x108] sm:$0xf]  ;;  %v10084_v24 = vld [vmem:[#allocation6 + $0x5d4] sm:$0xf0] }
 0x1b7   :  { %11295 = vst [vmem:[#allocation23_spill] sm:$0xff] %v11009_v42  ;;  %v7219_v63 = vor.u32 %v9932_v44, %v7218_v33  ;;  %v7827_v36 = vor.u32 %v10084_v24, %v7826_v23  ;;  %v10148_v33 = vld [vmem:[#allocation6 + $0x7d4] sm:$0xf0]  ;;  %v7682_v44 = vld [vmem:[#allocation6 + $0x4a8] sm:$0xf] }
 0x1b8   :  { %4767 = vmatpush.bf16.msra.mxu0 %v7139_v51  ;;  %4781 = vmatpush.bf16.msra.mxu1 %v7267_v54  ;;  %v10056_v51 = vld [vmem:[#allocation6 + $0x4f4] sm:$0xf0]  ;;  %v7842_v54 = vld [vmem:[#allocation6 + $0x5e8] sm:$0xf]  ;;  %v11016_v0 = vpop.f32.mrf.mxu2  ;;  %v10022_v42 = vld [vmem:[#allocation6 + $0x3ec] sm:$0xf] }
 0x1b9   :  { %v7843_v5 = vor.u32 %v10088_v55, %v7842_v54  ;;  %v10080_v54 = vld [vmem:[#allocation6 + $0x5b4] sm:$0xf0]  ;;  %v4506_v55 = vpop.f32.mrf.mxu1  ;;  %11297 = vst [vmem:[#allocation25_spill] sm:$0xff] %v11016_v0  ;;  %v7922_v24 = vld [vmem:[#allocation6 + $0x688] sm:$0xf] }
 0x1ba   :  { %4795 = vmatpush.bf16.msra.mxu2 %v7395_v2  ;;  %4809 = vmatpush.bf16.msra.mxu3 %v7523_v26  ;;  %v7474_v2 = vld [vmem:[#allocation6 + $0x308] sm:$0xf]  ;;  %v7715_v26 = vor.u32 %v10056_v51, %v7714_v46  ;;  %v10048_v46 = vld [vmem:[#allocation6 + $0x4b4] sm:$0xf0] }
 0x1bb   :  { %v7810_v51 = vld [vmem:[#allocation6 + $0x5a8] sm:$0xf]  ;;  %v7683_v1 = vor.u32 %v10048_v46, %v7682_v44  ;;  %v10104_v46 = vld [vmem:[#allocation6 + $0x674] sm:$0xf0] }
 0x1bc   :  { %4768 = vmatpush.bf16.msra.mxu0 %v7123_v13  ;;  %4782 = vmatpush.bf16.msra.mxu1 %v7251_v14  ;;  %v10120_v13 = vld [vmem:[#allocation6 + $0x6f4] sm:$0xf0]  ;;  %v8098_v14 = vld [vmem:[#allocation6 + $0x7e8] sm:$0xf] }
 0x1bd   :  { %v8099_v29 = vor.u32 %v10152_v15, %v8098_v14  ;;  %v7794_v14 = vld [vmem:[#allocation6 + $0x588] sm:$0xf]  ;;  %v10076_v15 = vld [vmem:[#allocation6 + $0x594] sm:$0xf0] }
 0x1be   :  { %4796 = vmatpush.bf16.msra.mxu2 %v7379_v7  ;;  %4810 = vmatpush.bf16.msra.mxu3 %v7507_v9  ;;  %v7475_v7 = vor.u32 %v9996_v8, %v7474_v2  ;;  %v7971_v9 = vor.u32 %v10120_v13, %v7970_v10  ;;  %v4492_v30 = vpop.f32.mrf.mxu0  ;;  %v7811_v2 = vor.u32 %v10080_v54, %v7810_v51  ;;  %v7666_v8 = vld [vmem:[#allocation6 + $0x488] sm:$0xf]  ;;  %v11018_v10 = vpop.f32.mrf.mxu3  ;;  %v10044_v13 = vld [vmem:[#allocation6 + $0x494] sm:$0xf0] }
 0x1bf   :  { %v4493_v40 = vadd.f32 %v4492_v30, %v11007_v20  ;;  %v10112_v20 = vld [vmem:[#allocation6 + $0x6b4] sm:$0xf0]  ;;  %11298 = vst [vmem:[#allocation26_spill] sm:$0xff] %v11018_v10  ;;  %v7906_v44 = vld [vmem:[#allocation6 + $0x668] sm:$0xf] }
 0x1c0   :  { %4769 = vmatpush.bf16.msra.mxu0 %v7107_v34  ;;  %4783 = vmatpush.bf16.msra.mxu1 %v7235_v35  ;;  %v10116_v34 = vld [vmem:[#allocation6 + $0x6d4] sm:$0xf0]  ;;  %v7699_v35 = vor.u32 %v10052_v12, %v7698_v39  ;;  %v8034_v51 = vld [vmem:[#allocation6 + $0x768] sm:$0xf] }
 0x1c1   :  { %v10140_v30 = vld [vmem:[#allocation6 + $0x794] sm:$0xf0]  ;;  %v8722_v0 = vld [vmem:[#allocation6 + $0xcc8] sm:$0xf] }
 0x1c2   :  { %4797 = vmatpush.bf16.msra.mxu2 %v7363_v47  ;;  %4811 = vmatpush.bf16.msra.mxu3 %v7491_v57  ;;  %v4507_v47 = vadd.f32 %v4506_v55, %v4493_v40  ;;  %v7955_v57 = vor.u32 %v10116_v34, %v7954_v32  ;;  %v7650_v32 = vld [vmem:[#allocation6 + $0x468] sm:$0xf]  ;;  %v10040_v34 = vld [vmem:[#allocation6 + $0x474] sm:$0xf0]  ;;  %v11024_v40 = vpop.f32.mrf.mxu1 }
 0x1c3   :  { %11300 = vst [vmem:[#allocation28_spill] sm:$0xff] %v11024_v40  ;;  %v7651_v54 = vor.u32 %v10040_v34, %v7650_v32  ;;  %v7618_v32 = vld [vmem:[#allocation6 + $0x428] sm:$0xf]  ;;  %v10032_v34 = vld [vmem:[#allocation6 + $0x434] sm:$0xf0] }
 0x1c4   :  { %4770 = vmatpush.bf16.msra.mxu0 %v7091_v59  ;;  %4784 = vmatpush.bf16.msra.mxu1 %v7219_v63  ;;  %v8083_v59 = vor.u32 %v10148_v33, %v8082_v4  ;;  %v7938_v63 = vld [vmem:[#allocation6 + $0x6a8] sm:$0xf]  ;;  %v10312_v40 = vld [vmem:[#allocation6 + $0xcf4] sm:$0xf0] }
 0x1c5   :  { %v7939_v39 = vor.u32 %v10112_v20, %v7938_v63  ;;  %v7634_v63 = vld [vmem:[#allocation6 + $0x448] sm:$0xf]  ;;  %v11026_v20 = vld [vmem:[#allocation7] sm:$0xf]  ;;  %v10408_v10 = vld [vmem:[#allocation6 + $0xff4] sm:$0xf0] }
 0x1c6   :  { %4798 = vmatpush.bf16.msra.mxu2 %v7347_v25  ;;  %4812 = vmatpush.bf16.msra.mxu3 %v7475_v7  ;;  %v11022_v23 = vpop.f32.mrf.mxu0  ;;  %v10108_v25 = vld [vmem:[#allocation6 + $0x694] sm:$0xf0]  ;;  %v7667_v7 = vor.u32 %v10044_v13, %v7666_v8  ;;  %v7762_v8 = vld [vmem:[#allocation6 + $0x548] sm:$0xf] }
 0x1c7   :  { %4771 = vmatmul.bf16.vlgmr.msra.gmra.mxu0 %v10902_v11  ;;  %4785 = vmatmul.bf16.vlgmr.msra.gmra.mxu1 %v10904_v17  ;;  %11299 = vst [vmem:[#allocation27_spill] sm:$0xff] %v11022_v23  ;;  %v7923_v4 = vor.u32 %v10108_v25, %v7922_v24  ;;  %v10068_v13 = vld [vmem:[#allocation6 + $0x554] sm:$0xf0]  ;;  %v7890_v24 = vld [vmem:[#allocation6 + $0x648] sm:$0xf] }
 0x1c8   :  { %4819 = vmatpush.bf16.msrb.mxu0 %v7715_v26  ;;  %4833 = vmatpush.bf16.msrb.mxu1 %v7843_v5  ;;  %v8066_v26 = vld [vmem:[#allocation6 + $0x7a8] sm:$0xf]  ;;  %v10144_v5 = vld [vmem:[#allocation6 + $0x7b4] sm:$0xf0] }
 0x1c9   :  { %4799 = vmatmul.bf16.vlgmr.msra.gmra.mxu2 %v10908_v50  ;;  %4813 = vmatmul.bf16.vlgmr.msra.gmra.mxu3 %v10910_v53  ;;  %v8067_v12 = vor.u32 %v10144_v5, %v8066_v26  ;;  %v4534_v26 = vpop.f32.mrf.mxu3  ;;  %v10036_v5 = vld [vmem:[#allocation6 + $0x454] sm:$0xf0]  ;;  %v9122_v23 = vld [vmem:[#allocation6 + $0xfe8] sm:$0xf] }
 0x1ca   :  { %4847 = vmatpush.bf16.msrb.mxu2 %v7971_v9  ;;  %4861 = vmatpush.bf16.msrb.mxu3 %v8099_v29  ;;  %v7795_v9 = vor.u32 %v10076_v15, %v7794_v14  ;;  %v8050_v29 = vld [vmem:[#allocation6 + $0x788] sm:$0xf]  ;;  %v7907_v15 = vor.u32 %v10104_v46, %v7906_v44  ;;  %v10100_v25 = vld [vmem:[#allocation6 + $0x654] sm:$0xf0] }
 0x1cb   :  { %v8051_v33 = vor.u32 %v10140_v30, %v8050_v29  ;;  %v8018_v29 = vld [vmem:[#allocation6 + $0x748] sm:$0xf]  ;;  %v10132_v30 = vld [vmem:[#allocation6 + $0x754] sm:$0xf0] }
 0x1cc   :  { %4820 = vmatpush.bf16.msrb.mxu0 %v7699_v35  ;;  %4834 = vmatpush.bf16.msrb.mxu1 %v7827_v36  ;;  %v7778_v35 = vld [vmem:[#allocation6 + $0x568] sm:$0xf]  ;;  %v10072_v36 = vld [vmem:[#allocation6 + $0x574] sm:$0xf0]  ;;  %v8019_v44 = vor.u32 %v10132_v30, %v8018_v29 }
 0x1cd   :  { %v7779_v55 = vor.u32 %v10072_v36, %v7778_v35  ;;  %v7746_v35 = vld [vmem:[#allocation6 + $0x528] sm:$0xf]  ;;  %v10064_v36 = vld [vmem:[#allocation6 + $0x534] sm:$0xf0] }
 0x1ce   :  { %4848 = vmatpush.bf16.msrb.mxu2 %v7955_v57  ;;  %4862 = vmatpush.bf16.msrb.mxu3 %v8083_v59  ;;  %v4520_v57 = vpop.f32.mrf.mxu2  ;;  %v10136_v59 = vld [vmem:[#allocation6 + $0x774] sm:$0xf0]  ;;  %v7874_v46 = vld [vmem:[#allocation6 + $0x628] sm:$0xf] }
 0x1cf   :  { %v7858_v30 = vld [vmem:[#allocation6 + $0x608] sm:$0xf] }
 0x1d0   :  { %4821 = vmatpush.bf16.msrb.mxu0 %v7683_v1  ;;  %4835 = vmatpush.bf16.msrb.mxu1 %v7811_v2  ;;  %v11288_v1 = vperm.slane %v11026_v20, 1  ;;  %v4521_v2 = vadd.f32 %v4520_v57, %v4507_v47  ;;  %v7619_v57 = vor.u32 %v10032_v34, %v7618_v32  ;;  %v10092_v32 = vld [vmem:[#allocation6 + $0x614] sm:$0xf0]  ;;  %v7986_v34 = vld [vmem:[#allocation6 + $0x708] sm:$0xf] }
 0x1d2   :  { %4849 = vmatpush.bf16.msrb.mxu2 %v7939_v39  ;;  %4863 = vmatpush.bf16.msrb.mxu3 %v8067_v12  ;;  %v11029_v14 = vadd.f32 %v4534_v26, %v4521_v2  ;;  %v8035_v39 = vor.u32 %v10136_v59, %v8034_v51  ;;  %v4548_v12 = vpop.f32.mrf.mxu0  ;;  %v10096_v51 = vld [vmem:[#allocation6 + $0x634] sm:$0xf0]  ;;  %v7747_v59 = vor.u32 %v10064_v36, %v7746_v35  ;;  %v7602_v26 = vld [vmem:[#allocation6 + $0x408] sm:$0xf] }
 0x1d3   :  { %v4549_v47 = vadd.f32 %v4548_v12, %v11288_v1  ;;  %v10128_v2 = vld [vmem:[#allocation6 + $0x734] sm:$0xf0]  ;;  %v8482_v1 = vld [vmem:[#allocation6 + $0xae8] sm:$0xf] }
 0x1d4   :  { %4822 = vmatpush.bf16.msrb.mxu0 %v7667_v7  ;;  %4836 = vmatpush.bf16.msrb.mxu1 %v7795_v9  ;;  %11301 = vst [vmem:[#allocation29_spill] sm:$0xff] %v11029_v14  ;;  %v7635_v7 = vor.u32 %v10036_v5, %v7634_v63  ;;  %v7763_v9 = vor.u32 %v10068_v13, %v7762_v8  ;;  %v10028_v5 = vld [vmem:[#allocation6 + $0x414] sm:$0xf0]  ;;  %v11035_v8 = vpop.f32.mrf.mxu3  ;;  %v7730_v13 = vld [vmem:[#allocation6 + $0x508] sm:$0xf] }
 0x1d5   :  { %11303 = vst [vmem:[#allocation31_spill] sm:$0xff] %v11035_v8  ;;  %v10184_v12 = vld [vmem:[#allocation6 + $0x8f4] sm:$0xf0]  ;;  %v8610_v14 = vld [vmem:[#allocation6 + $0xbe8] sm:$0xf] }
 0x1d6   :  { %4850 = vmatpush.bf16.msrb.mxu2 %v7923_v4  ;;  %4864 = vmatpush.bf16.msrb.mxu3 %v8051_v33  ;;  %v4562_v4 = vpop.f32.mrf.mxu1  ;;  %v7891_v33 = vor.u32 %v10100_v25, %v7890_v24  ;;  %v11033_v63 = vpop.f32.mrf.mxu2  ;;  %v8354_v24 = vld [vmem:[#allocation6 + $0x9e8] sm:$0xf]  ;;  %v10216_v25 = vld [vmem:[#allocation6 + $0x9f4] sm:$0xf0] }
 0x1d7   :  { %11302 = vst [vmem:[#allocation30_spill] sm:$0xff] %v11033_v63  ;;  %v8355_v36 = vor.u32 %v10216_v25, %v8354_v24  ;;  %v10280_v8 = vld [vmem:[#allocation6 + $0xbf4] sm:$0xf0]  ;;  %v8210_v63 = vld [vmem:[#allocation6 + $0x8c8] sm:$0xf] }
 0x1d8   :  { %4823 = vmatpush.bf16.msrb.mxu0 %v7651_v54  ;;  %4837 = vmatpush.bf16.msrb.mxu1 %v7779_v55  ;;  %v8002_v54 = vld [vmem:[#allocation6 + $0x728] sm:$0xf]  ;;  %v4563_v55 = vadd.f32 %v4562_v4, %v4549_v47  ;;  %v7603_v47 = vor.u32 %v10028_v5, %v7602_v26  ;;  %v10124_v4 = vld [vmem:[#allocation6 + $0x714] sm:$0xf0]  ;;  %v8611_v26 = vor.u32 %v10280_v8, %v8610_v14 }
 0x1da   :  { %4851 = vmatpush.bf16.msrb.mxu2 %v7907_v15  ;;  %4865 = vmatpush.bf16.msrb.mxu3 %v8035_v39  ;;  %v10060_v15 = vld [vmem:[#allocation6 + $0x514] sm:$0xf0]  ;;  %v8226_v39 = vld [vmem:[#allocation6 + $0x8e8] sm:$0xf] }
 0x1db   :  { %v7731_v29 = vor.u32 %v10060_v15, %v7730_v13  ;;  %v8227_v35 = vor.u32 %v10184_v12, %v8226_v39  ;;  %v8466_v15 = vld [vmem:[#allocation6 + $0xac8] sm:$0xf]  ;;  %v10244_v39 = vld [vmem:[#allocation6 + $0xad4] sm:$0xf0] }
 0x1dc   :  { %4824 = vmatpush.bf16.msrb.mxu0 %v7635_v7  ;;  %4838 = vmatpush.bf16.msrb.mxu1 %v7763_v9  ;;  %v7875_v7 = vor.u32 %v10096_v51, %v7874_v46  ;;  %v8003_v9 = vor.u32 %v10128_v2, %v8002_v54  ;;  %v10212_v46 = vld [vmem:[#allocation6 + $0x9d4] sm:$0xf0]  ;;  %v11037_v51 = vpop.f32.mrf.mxu0  ;;  %v7859_v54 = vor.u32 %v10092_v32, %v7858_v30  ;;  %v4590_v13 = vpop.f32.mrf.mxu3  ;;  %v8322_v32 = vld [vmem:[#allocation6 + $0x9a8] sm:$0xf] }
 0x1dd   :  { %v8483_v2 = vor.u32 %v10248_v48, %v8482_v1  ;;  %v10176_v30 = vld [vmem:[#allocation6 + $0x8b4] sm:$0xf0]  ;;  %v8467_v1 = vor.u32 %v10244_v39, %v8466_v15 }
 0x1de   :  { %4852 = vmatpush.bf16.msrb.mxu2 %v7891_v33  ;;  %4866 = vmatpush.bf16.msrb.mxu3 %v8019_v44  ;;  %v10180_v33 = vld [vmem:[#allocation6 + $0x8d4] sm:$0xf0]  ;;  %v8338_v44 = vld [vmem:[#allocation6 + $0x9c8] sm:$0xf]  ;;  %v11039_v12 = vpop.f32.mrf.mxu1 }
 0x1df   :  { %v8211_v24 = vor.u32 %v10180_v33, %v8210_v63  ;;  %v8339_v25 = vor.u32 %v10212_v46, %v8338_v44  ;;  %v10208_v48 = vld [vmem:[#allocation6 + $0x9b4] sm:$0xf0]  ;;  %v8306_v44 = vld [vmem:[#allocation6 + $0x988] sm:$0xf] }
 0x1e0   :  { %4825 = vmatpush.bf16.msrb.mxu0 %v7619_v57  ;;  %4839 = vmatpush.bf16.msrb.mxu1 %v7747_v59  ;;  %v7987_v57 = vor.u32 %v10124_v4, %v7986_v34  ;;  %v4576_v59 = vpop.f32.mrf.mxu2  ;;  %v10240_v63 = vld [vmem:[#allocation6 + $0xab4] sm:$0xf0]  ;;  %v8323_v34 = vor.u32 %v10208_v48, %v8322_v32  ;;  %v8178_v4 = vld [vmem:[#allocation6 + $0x888] sm:$0xf] }
 0x1e1   :  { %v4577_v5 = vadd.f32 %v4576_v59, %v4563_v55  ;;  %v8450_v55 = vld [vmem:[#allocation6 + $0xaa8] sm:$0xf]  ;;  %v10172_v33 = vld [vmem:[#allocation6 + $0x894] sm:$0xf0] }
 0x1e2   :  { %4853 = vmatpush.bf16.msrb.mxu2 %v7875_v7  ;;  %4867 = vmatpush.bf16.msrb.mxu3 %v8003_v9  ;;  %v8594_v7 = vld [vmem:[#allocation6 + $0xbc8] sm:$0xf]  ;;  %v10276_v9 = vld [vmem:[#allocation6 + $0xbd4] sm:$0xf0]  ;;  %v8179_v39 = vor.u32 %v10172_v33, %v8178_v4 }
 0x1e3   :  { %v8595_v14 = vor.u32 %v10276_v9, %v8594_v7  ;;  %v10204_v46 = vld [vmem:[#allocation6 + $0x994] sm:$0xf0]  ;;  %v8562_v7 = vld [vmem:[#allocation6 + $0xb88] sm:$0xf] }
 0x1e4   :  { %4826 = vmatpush.bf16.msrb.mxu0 %v7603_v47  ;;  %4840 = vmatpush.bf16.msrb.mxu1 %v7731_v29  ;;  %v8194_v47 = vld [vmem:[#allocation6 + $0x8a8] sm:$0xf]  ;;  %v4591_v29 = vadd.f32 %v4590_v13, %v4577_v5  ;;  %v10236_v13 = vld [vmem:[#allocation6 + $0xa94] sm:$0xf0] }
 0x1e5   :  { %v8195_v8 = vor.u32 %v10176_v30, %v8194_v47  ;;  %v8434_v5 = vld [vmem:[#allocation6 + $0xa88] sm:$0xf]  ;;  %v10268_v9 = vld [vmem:[#allocation6 + $0xb94] sm:$0xf0] }
 0x1e6   :  { %4854 = vmatpush.bf16.msrb.mxu2 %v7859_v54  ;;  %4868 = vmatpush.bf16.msrb.mxu3 %v7987_v57  ;;  %v4604_v54 = vpop.f32.mrf.mxu0  ;;  %v4618_v15 = vpop.f32.mrf.mxu1  ;;  %v8162_v47 = vld [vmem:[#allocation6 + $0x868] sm:$0xf]  ;;  %v10168_v32 = vld [vmem:[#allocation6 + $0x874] sm:$0xf0] }
 0x1e7   :  { %4827 = vmatmul.bf16.vlgmr.msrb.gmra.mxu0 %v10918_v22  ;;  %4841 = vmatmul.bf16.vlgmr.msrb.gmra.mxu1 %v10920_v27  ;;  %v4605_v59 = vadd.f32 %v4604_v54, %v4591_v29  ;;  %v8290_v48 = vld [vmem:[#allocation6 + $0x968] sm:$0xf]  ;;  %v8435_v29 = vor.u32 %v10236_v13, %v8434_v5  ;;  %v10164_v33 = vld [vmem:[#allocation6 + $0x854] sm:$0xf0] }
 0x1e8   :  { %4875 = vmatpush.bf16.msra.mxu0 %v8227_v35  ;;  %4889 = vmatpush.bf16.msra.mxu1 %v8355_v36  ;;  %v8578_v35 = vld [vmem:[#allocation6 + $0xba8] sm:$0xf]  ;;  %v10272_v36 = vld [vmem:[#allocation6 + $0xbb4] sm:$0xf0]  ;;  %v11045_v57 = vpop.f32.mrf.mxu2 }
 0x1e9   :  { %4855 = vmatmul.bf16.vlgmr.msrb.gmra.mxu2 %v10924_v60  ;;  %4869 = vmatmul.bf16.vlgmr.msrb.gmra.mxu3 %v10926_v62  ;;  %v4619_v30 = vadd.f32 %v4618_v15, %v4605_v59  ;;  %v8146_v4 = vld [vmem:[#allocation6 + $0x848] sm:$0xf] }
 0x1ea   :  { %4903 = vmatpush.bf16.msra.mxu2 %v8483_v2  ;;  %4917 = vmatpush.bf16.msra.mxu3 %v8611_v26  ;;  %v8451_v2 = vor.u32 %v10240_v63, %v8450_v55  ;;  %v8579_v26 = vor.u32 %v10272_v36, %v8578_v35  ;;  %v8418_v55 = vld [vmem:[#allocation6 + $0xa68] sm:$0xf]  ;;  %v10232_v63 = vld [vmem:[#allocation6 + $0xa74] sm:$0xf0]  ;;  %v8147_v5 = vor.u32 %v10164_v33, %v8146_v4 }
 0x1eb   :  { %v8546_v35 = vld [vmem:[#allocation6 + $0xb68] sm:$0xf]  ;;  %v10264_v36 = vld [vmem:[#allocation6 + $0xb74] sm:$0xf0]  ;;  %v8419_v54 = vor.u32 %v10232_v63, %v8418_v55 }
 0x1ec   :  { %4876 = vmatpush.bf16.msra.mxu0 %v8211_v24  ;;  %4890 = vmatpush.bf16.msra.mxu1 %v8339_v25  ;;  %v8307_v24 = vor.u32 %v10204_v46, %v8306_v44  ;;  %v11047_v25 = vpop.f32.mrf.mxu3  ;;  %v8274_v44 = vld [vmem:[#allocation6 + $0x948] sm:$0xf]  ;;  %v10196_v46 = vld [vmem:[#allocation6 + $0x954] sm:$0xf0]  ;;  %v8547_v59 = vor.u32 %v10264_v36, %v8546_v35 }
 0x1ed   :  { %v8275_v13 = vor.u32 %v10196_v46, %v8274_v44  ;;  %v8386_v63 = vld [vmem:[#allocation6 + $0xa28] sm:$0xf]  ;;  %v10256_v4 = vld [vmem:[#allocation6 + $0xb34] sm:$0xf0] }
 0x1ee   :  { %4904 = vmatpush.bf16.msra.mxu2 %v8467_v1  ;;  %4918 = vmatpush.bf16.msra.mxu3 %v8595_v14  ;;  %v10200_v1 = vld [vmem:[#allocation6 + $0x974] sm:$0xf0]  ;;  %v8563_v14 = vor.u32 %v10268_v9, %v8562_v7  ;;  %v8130_v7 = vld [vmem:[#allocation6 + $0x828] sm:$0xf] }
 0x1ef   :  { %v8114_v33 = vld [vmem:[#allocation6 + $0x808] sm:$0xf]  ;;  %v10188_v46 = vld [vmem:[#allocation6 + $0x914] sm:$0xf0] }
 0x1f0   :  { %4877 = vmatpush.bf16.msra.mxu0 %v8195_v8  ;;  %4891 = vmatpush.bf16.msra.mxu1 %v8323_v34  ;;  %v8163_v8 = vor.u32 %v10168_v32, %v8162_v47  ;;  %v8291_v34 = vor.u32 %v10200_v1, %v8290_v48  ;;  %v4632_v15 = vpop.f32.mrf.mxu2  ;;  %v10160_v47 = vld [vmem:[#allocation6 + $0x834] sm:$0xf0]  ;;  %v8258_v32 = vld [vmem:[#allocation6 + $0x928] sm:$0xf] }
 0x1f1   :  { %v4633_v9 = vadd.f32 %v4632_v15, %v4619_v30  ;;  %v10192_v48 = vld [vmem:[#allocation6 + $0x934] sm:$0xf0]  ;;  %v8131_v35 = vor.u32 %v10160_v47, %v8130_v7  ;;  %v8242_v44 = vld [vmem:[#allocation6 + $0x908] sm:$0xf] }
 0x1f2   :  { %4905 = vmatpush.bf16.msra.mxu2 %v8451_v2  ;;  %4919 = vmatpush.bf16.msra.mxu3 %v8579_v26  ;;  %v8402_v2 = vld [vmem:[#allocation6 + $0xa48] sm:$0xf]  ;;  %v10228_v26 = vld [vmem:[#allocation6 + $0xa54] sm:$0xf0]  ;;  %v8259_v36 = vor.u32 %v10192_v48, %v8258_v32 }
 0x1f3   :  { %v10156_v30 = vld [vmem:[#allocation6 + $0x814] sm:$0xf0]  ;;  %v8738_v15 = vld [vmem:[#allocation6 + $0xce8] sm:$0xf] }
 0x1f4   :  { %4878 = vmatpush.bf16.msra.mxu0 %v8179_v39  ;;  %4892 = vmatpush.bf16.msra.mxu1 %v8307_v24  ;;  %v8530_v39 = vld [vmem:[#allocation6 + $0xb48] sm:$0xf]  ;;  %v10260_v24 = vld [vmem:[#allocation6 + $0xb54] sm:$0xf0]  ;;  %v4646_v1 = vpop.f32.mrf.mxu3 }
 0x1f5   :  { %v8531_v55 = vor.u32 %v10260_v24, %v8530_v39  ;;  %v8115_v39 = vor.u32 %v10156_v30, %v8114_v33  ;;  %v10220_v24 = vld [vmem:[#allocation6 + $0xa14] sm:$0xf0]  ;;  %v8498_v7 = vld [vmem:[#allocation6 + $0xb08] sm:$0xf]  ;;  %v11053_v30 = vpop.f32.mrf.mxu1 }
 0x1f6   :  { %4906 = vmatpush.bf16.msra.mxu2 %v8435_v29  ;;  %4920 = vmatpush.bf16.msra.mxu3 %v8563_v14  ;;  %v11049_v29 = vadd.f32 %v4646_v1, %v4633_v9  ;;  %v8403_v14 = vor.u32 %v10228_v26, %v8402_v2  ;;  %v8739_v9 = vor.u32 %v10312_v40, %v8738_v15  ;;  %v10252_v32 = vld [vmem:[#allocation6 + $0xb14] sm:$0xf0]  ;;  %v8994_v48 = vld [vmem:[#allocation6 + $0xee8] sm:$0xf] }
 0x1f7   :  { %v10376_v1 = vld [vmem:[#allocation6 + $0xef4] sm:$0xf0]  ;;  %v9106_v15 = vld [vmem:[#allocation6 + $0xfc8] sm:$0xf] }
 0x1f8   :  { %4879 = vmatpush.bf16.msra.mxu0 %v8163_v8  ;;  %4893 = vmatpush.bf16.msra.mxu1 %v8291_v34  ;;  %v10224_v8 = vld [vmem:[#allocation6 + $0xa34] sm:$0xf0]  ;;  %v8514_v34 = vld [vmem:[#allocation6 + $0xb28] sm:$0xf]  ;;  %v8995_v40 = vor.u32 %v10376_v1, %v8994_v48 }
 0x1f9   :  { %v8387_v2 = vor.u32 %v10224_v8, %v8386_v63  ;;  %v8515_v26 = vor.u32 %v10256_v4, %v8514_v34  ;;  %v10340_v63 = vld [vmem:[#allocation6 + $0xdd4] sm:$0xf0]  ;;  %v11051_v8 = vpop.f32.mrf.mxu0  ;;  %v8978_v4 = vld [vmem:[#allocation6 + $0xec8] sm:$0xf] }
 0x1fa   :  { %4907 = vmatpush.bf16.msra.mxu2 %v8419_v54  ;;  %4921 = vmatpush.bf16.msra.mxu3 %v8547_v59  ;;  %v8866_v54 = vld [vmem:[#allocation6 + $0xde8] sm:$0xf]  ;;  %v10344_v59 = vld [vmem:[#allocation6 + $0xdf4] sm:$0xf0] }
 0x1fb   :  { %v8867_v47 = vor.u32 %v10344_v59, %v8866_v54  ;;  %v10372_v33 = vld [vmem:[#allocation6 + $0xed4] sm:$0xf0]  ;;  %v8706_v59 = vld [vmem:[#allocation6 + $0xca8] sm:$0xf] }
 0x1fc   :  { %4880 = vmatpush.bf16.msra.mxu0 %v8147_v5  ;;  %4894 = vmatpush.bf16.msra.mxu1 %v8275_v13  ;;  %v8243_v5 = vor.u32 %v10188_v46, %v8242_v44  ;;  %v8370_v13 = vld [vmem:[#allocation6 + $0xa08] sm:$0xf]  ;;  %v10404_v54 = vld [vmem:[#allocation6 + $0xfd4] sm:$0xf0] }
 0x1fd   :  { %v8371_v34 = vor.u32 %v10220_v24, %v8370_v13  ;;  %v10368_v13 = vld [vmem:[#allocation6 + $0xeb4] sm:$0xf0]  ;;  %v8818_v48 = vld [vmem:[#allocation6 + $0xd88] sm:$0xf] }
 0x1fe   :  { %4908 = vmatpush.bf16.msra.mxu2 %v8403_v14  ;;  %4922 = vmatpush.bf16.msra.mxu3 %v8531_v55  ;;  %v10308_v14 = vld [vmem:[#allocation6 + $0xcd4] sm:$0xf0]  ;;  %v8850_v55 = vld [vmem:[#allocation6 + $0xdc8] sm:$0xf] }
 0x1ff   :  { %v8723_v44 = vor.u32 %v10308_v14, %v8722_v0  ;;  %v8851_v46 = vor.u32 %v10340_v63, %v8850_v55  ;;  %v10332_v1 = vld [vmem:[#allocation6 + $0xd94] sm:$0xf0] }
 0x200   :  { %4881 = vmatpush.bf16.msra.mxu0 %v8131_v35  ;;  %4895 = vmatpush.bf16.msra.mxu1 %v8259_v36  ;;  %v8499_v35 = vor.u32 %v10252_v32, %v8498_v7  ;;  %v9123_v36 = vor.u32 %v10408_v10, %v9122_v23  ;;  %v8979_v10 = vor.u32 %v10372_v33, %v8978_v4  ;;  %v9090_v7 = vld [vmem:[#allocation6 + $0xfa8] sm:$0xf]  ;;  %v10300_v32 = vld [vmem:[#allocation6 + $0xc94] sm:$0xf0] }
 0x201   :  { %v9107_v23 = vor.u32 %v10404_v54, %v9106_v15  ;;  %v10396_v15 = vld [vmem:[#allocation6 + $0xf94] sm:$0xf0]  ;;  %v8674_v54 = vld [vmem:[#allocation6 + $0xc68] sm:$0xf] }
 0x202   :  { %4909 = vmatpush.bf16.msra.mxu2 %v8387_v2  ;;  %4923 = vmatpush.bf16.msra.mxu3 %v8515_v26  ;;  %v10304_v2 = vld [vmem:[#allocation6 + $0xcb4] sm:$0xf0]  ;;  %v8834_v26 = vld [vmem:[#allocation6 + $0xda8] sm:$0xf] }
 0x203   :  { %v8707_v0 = vor.u32 %v10304_v2, %v8706_v59  ;;  %v10296_v2 = vld [vmem:[#allocation6 + $0xc74] sm:$0xf0] }
 0x204   :  { %4882 = vmatpush.bf16.msra.mxu0 %v8115_v39  ;;  %4896 = vmatpush.bf16.msra.mxu1 %v8243_v5  ;;  %v10336_v39 = vld [vmem:[#allocation6 + $0xdb4] sm:$0xf0]  ;;  %v8962_v5 = vld [vmem:[#allocation6 + $0xea8] sm:$0xf]  ;;  %v4660_v14 = vpop.f32.mrf.mxu0  ;;  %v4674_v4 = vpop.f32.mrf.mxu1 }
 0x205   :  { %v8835_v24 = vor.u32 %v10336_v39, %v8834_v26  ;;  %v4661_v55 = vadd.f32 %v4660_v14, %v11049_v29  ;;  %v8963_v63 = vor.u32 %v10368_v13, %v8962_v5  ;;  %v8802_v26 = vld [vmem:[#allocation6 + $0xd68] sm:$0xf]  ;;  %v10328_v39 = vld [vmem:[#allocation6 + $0xd74] sm:$0xf0] }
 0x206   :  { %4910 = vmatpush.bf16.msra.mxu2 %v8371_v34  ;;  %4924 = vmatpush.bf16.msra.mxu3 %v8499_v35  ;;  %v8946_v35 = vld [vmem:[#allocation6 + $0xe88] sm:$0xf]  ;;  %v10360_v13 = vld [vmem:[#allocation6 + $0xe74] sm:$0xf0] }
 0x207   :  { %4883 = vmatmul.bf16.vlgmr.msra.gmra.mxu0 %v10936_v37  ;;  %4897 = vmatmul.bf16.vlgmr.msra.gmra.mxu1 %v10938_v43  ;;  %v4675_v59 = vadd.f32 %v4674_v4, %v4661_v55  ;;  %v8930_v5 = vld [vmem:[#allocation6 + $0xe68] sm:$0xf] }
 0x208   :  { %4931 = vmatpush.bf16.msrb.mxu0 %v8739_v9  ;;  %4945 = vmatpush.bf16.msrb.mxu1 %v8867_v47  ;;  %v10400_v9 = vld [vmem:[#allocation6 + $0xfb4] sm:$0xf0]  ;;  %v8690_v47 = vld [vmem:[#allocation6 + $0xc88] sm:$0xf]  ;;  %v8931_v14 = vor.u32 %v10360_v13, %v8930_v5 }
 0x209   :  { %4911 = vmatmul.bf16.vlgmr.msra.gmra.mxu2 %v10942_v16  ;;  %4925 = vmatmul.bf16.vlgmr.msra.gmra.mxu3 %v10944_v19  ;;  %v9091_v34 = vor.u32 %v10400_v9, %v9090_v7  ;;  %v8691_v33 = vor.u32 %v10300_v32, %v8690_v47  ;;  %v9058_v7 = vld [vmem:[#allocation6 + $0xf68] sm:$0xf]  ;;  %v10392_v9 = vld [vmem:[#allocation6 + $0xf74] sm:$0xf0] }
 0x20a   :  { %4959 = vmatpush.bf16.msrb.mxu2 %v8995_v40  ;;  %4973 = vmatpush.bf16.msrb.mxu3 %v9123_v36  ;;  %v10364_v40 = vld [vmem:[#allocation6 + $0xe94] sm:$0xf0]  ;;  %v11060_v36 = vpop.f32.mrf.mxu2  ;;  %v8658_v47 = vld [vmem:[#allocation6 + $0xc48] sm:$0xf]  ;;  %v9059_v55 = vor.u32 %v10392_v9, %v9058_v7 }
 0x20b   :  { %v8947_v29 = vor.u32 %v10364_v40, %v8946_v35  ;;  %v10292_v32 = vld [vmem:[#allocation6 + $0xc54] sm:$0xf0]  ;;  %v8898_v13 = vld [vmem:[#allocation6 + $0xe28] sm:$0xf] }
 0x20c   :  { %4932 = vmatpush.bf16.msrb.mxu0 %v8723_v44  ;;  %4946 = vmatpush.bf16.msrb.mxu1 %v8851_v46  ;;  %v8819_v44 = vor.u32 %v10332_v1, %v8818_v48  ;;  %v9074_v46 = vld [vmem:[#allocation6 + $0xf88] sm:$0xf]  ;;  %v10324_v1 = vld [vmem:[#allocation6 + $0xd54] sm:$0xf0]  ;;  %v8659_v40 = vor.u32 %v10292_v32, %v8658_v47 }
 0x20d   :  { %v8786_v48 = vld [vmem:[#allocation6 + $0xd48] sm:$0xf]  ;;  %v10384_v47 = vld [vmem:[#allocation6 + $0xf34] sm:$0xf0] }
 0x20e   :  { %4960 = vmatpush.bf16.msrb.mxu2 %v8979_v10  ;;  %4974 = vmatpush.bf16.msrb.mxu3 %v9107_v23  ;;  %v11062_v10 = vpop.f32.mrf.mxu3  ;;  %v9075_v23 = vor.u32 %v10396_v15, %v9074_v46  ;;  %v8787_v4 = vor.u32 %v10324_v1, %v8786_v48  ;;  %v8642_v46 = vld [vmem:[#allocation6 + $0xc28] sm:$0xf]  ;;  %v10316_v1 = vld [vmem:[#allocation6 + $0xd14] sm:$0xf0] }
 0x20f   :  { %11304 = vst [vmem:[#allocation32_spill] sm:$0xff] %v11062_v10  ;;  %v8626_v32 = vld [vmem:[#allocation6 + $0xc08] sm:$0xf]  ;;  %v7588_v10 = vld [vmem:[#allocation6 + $0x3f8] sm:$0xf0] }
 0x210   :  { %4933 = vmatpush.bf16.msrb.mxu0 %v8707_v0  ;;  %4947 = vmatpush.bf16.msrb.mxu1 %v8835_v24  ;;  %v8675_v0 = vor.u32 %v10296_v2, %v8674_v54  ;;  %v8803_v24 = vor.u32 %v10328_v39, %v8802_v26  ;;  %v10288_v54 = vld [vmem:[#allocation6 + $0xc34] sm:$0xf0]  ;;  %v8770_v2 = vld [vmem:[#allocation6 + $0xd28] sm:$0xf] }
 0x211   :  { %v10320_v26 = vld [vmem:[#allocation6 + $0xd34] sm:$0xf0]  ;;  %v8643_v7 = vor.u32 %v10288_v54, %v8642_v46  ;;  %v8754_v48 = vld [vmem:[#allocation6 + $0xd08] sm:$0xf] }
 0x212   :  { %4961 = vmatpush.bf16.msrb.mxu2 %v8963_v63  ;;  %4975 = vmatpush.bf16.msrb.mxu3 %v9091_v34  ;;  %v8914_v63 = vld [vmem:[#allocation6 + $0xe48] sm:$0xf]  ;;  %v10356_v34 = vld [vmem:[#allocation6 + $0xe54] sm:$0xf0]  ;;  %v4688_v35 = vpop.f32.mrf.mxu2  ;;  %v8771_v9 = vor.u32 %v10320_v26, %v8770_v2  ;;  %v9990_v26 = vld [vmem:[#allocation6 + $0x2ec] sm:$0xf] }
 0x213   :  { %v4689_v15 = vadd.f32 %v4688_v35, %v4675_v59  ;;  %v10284_v59 = vld [vmem:[#allocation6 + $0xc14] sm:$0xf0]  ;;  %v9926_v35 = vld [vmem:[#allocation6 + $0xec] sm:$0xf]  ;;  %v9010_v46 = vld [vmem:[#allocation6 + $0xf08] sm:$0xf] }
 0x214   :  { %4934 = vmatpush.bf16.msrb.mxu0 %v8691_v33  ;;  %4948 = vmatpush.bf16.msrb.mxu1 %v8819_v44  ;;  %v9042_v33 = vld [vmem:[#allocation6 + $0xf48] sm:$0xf]  ;;  %v10388_v44 = vld [vmem:[#allocation6 + $0xf54] sm:$0xf0] }
 0x215   :  { %v9043_v5 = vor.u32 %v10388_v44, %v9042_v33  ;;  %v8627_v33 = vor.u32 %v10284_v59, %v8626_v32  ;;  %v10348_v44 = vld [vmem:[#allocation6 + $0xe14] sm:$0xf0]  ;;  %v7444_v32 = vld [vmem:[#allocation6 + $0x2d8] sm:$0xf0]  ;;  %v11068_v59 = vpop.f32.mrf.mxu1 }
 0x216   :  { %4962 = vmatpush.bf16.msrb.mxu2 %v8947_v29  ;;  %4976 = vmatpush.bf16.msrb.mxu3 %v9075_v23  ;;  %v4702_v39 = vpop.f32.mrf.mxu3  ;;  %v8915_v23 = vor.u32 %v10356_v34, %v8914_v63  ;;  %v10380_v2 = vld [vmem:[#allocation6 + $0xf14] sm:$0xf0] }
 0x217   :  { %v11064_v29 = vadd.f32 %v4702_v39, %v4689_v15  ;;  %v7207_v15 = vor.u32 %v9926_v35, %v7204_v58  ;;  %v7460_v39 = vld [vmem:[#allocation6 + $0x2f8] sm:$0xf0]  ;;  %v10018_v35 = vld [vmem:[#allocation6 + $0x3cc] sm:$0xf] }
 0x218   :  { %4935 = vmatpush.bf16.msrb.mxu0 %v8675_v0  ;;  %4949 = vmatpush.bf16.msrb.mxu1 %v8803_v24  ;;  %v10352_v0 = vld [vmem:[#allocation6 + $0xe34] sm:$0xf0]  ;;  %v9026_v24 = vld [vmem:[#allocation6 + $0xf28] sm:$0xf]  ;;  %v7463_v58 = vor.u32 %v9990_v26, %v7460_v39  ;;  %v9946_v26 = vld [vmem:[#allocation6 + $0x18c] sm:$0xf] }
 0x219   :  { %v8899_v63 = vor.u32 %v10352_v0, %v8898_v13  ;;  %v9027_v34 = vor.u32 %v10384_v47, %v9026_v24  ;;  %v7316_v13 = vld [vmem:[#allocation6 + $0x1d8] sm:$0xf0]  ;;  %v11066_v0 = vpop.f32.mrf.mxu0  ;;  %v9986_v47 = vld [vmem:[#allocation6 + $0x2cc] sm:$0xf] }
 0x21a   :  { %4963 = vmatpush.bf16.msrb.mxu2 %v8931_v14  ;;  %4977 = vmatpush.bf16.msrb.mxu3 %v9059_v55  ;;  %v9958_v14 = vld [vmem:[#allocation6 + $0x1ec] sm:$0xf]  ;;  %v7332_v55 = vld [vmem:[#allocation6 + $0x1f8] sm:$0xf0] }
 0x21b   :  { %v7335_v54 = vor.u32 %v9958_v14, %v7332_v55  ;;  %v7572_v14 = vld [vmem:[#allocation6 + $0x3d8] sm:$0xf0]  ;;  %v9918_v55 = vld [vmem:[#allocation6 + $0xac] sm:$0xf] }
 0x21c   :  { %4936 = vmatpush.bf16.msrb.mxu0 %v8659_v40  ;;  %4950 = vmatpush.bf16.msrb.mxu1 %v8787_v4  ;;  %v8755_v40 = vor.u32 %v10316_v1, %v8754_v48  ;;  %v8882_v4 = vld [vmem:[#allocation6 + $0xe08] sm:$0xf]  ;;  %v7284_v39 = vld [vmem:[#allocation6 + $0x198] sm:$0xf0] }
 0x21d   :  { %v8883_v24 = vor.u32 %v10348_v44, %v8882_v4  ;;  %v7428_v4 = vld [vmem:[#allocation6 + $0x2b8] sm:$0xf0] }
 0x21e   :  { %4964 = vmatpush.bf16.msrb.mxu2 %v8915_v23  ;;  %4978 = vmatpush.bf16.msrb.mxu3 %v9043_v5  ;;  %v7188_v23 = vld [vmem:[#allocation6 + $0xd8] sm:$0xf0]  ;;  %v9954_v5 = vld [vmem:[#allocation6 + $0x1cc] sm:$0xf] }
 0x21f   :  { %v7191_v48 = vor.u32 %v9922_v28, %v7188_v23  ;;  %v7319_v1 = vor.u32 %v9954_v5, %v7316_v13 }
 0x220   :  { %4937 = vmatpush.bf16.msrb.mxu0 %v8643_v7  ;;  %4951 = vmatpush.bf16.msrb.mxu1 %v8771_v9  ;;  %v9011_v7 = vor.u32 %v10380_v2, %v9010_v46  ;;  %v7591_v9 = vor.u32 %v10022_v42, %v7588_v10  ;;  %v7447_v42 = vor.u32 %v9986_v47, %v7444_v32  ;;  %v10014_v46 = vld [vmem:[#allocation6 + $0x3ac] sm:$0xf]  ;;  %v7156_v2 = vld [vmem:[#allocation6 + $0x98] sm:$0xf0] }
 0x221   :  { %v7575_v10 = vor.u32 %v10018_v35, %v7572_v14  ;;  %v7540_v35 = vld [vmem:[#allocation6 + $0x398] sm:$0xf0]  ;;  %v9910_v14 = vld [vmem:[#allocation6 + $0x6c] sm:$0xf] }
 0x222   :  { %4965 = vmatpush.bf16.msrb.mxu2 %v8899_v63  ;;  %4979 = vmatpush.bf16.msrb.mxu3 %v9027_v34  ;;  %v7172_v63 = vld [vmem:[#allocation6 + $0xb8] sm:$0xf0]  ;;  %v9950_v34 = vld [vmem:[#allocation6 + $0x1ac] sm:$0xf] }
 0x223   :  { %v7175_v28 = vor.u32 %v9918_v55, %v7172_v63  ;;  %v7140_v63 = vld [vmem:[#allocation6 + $0x78] sm:$0xf0] }
 0x224   :  { %4938 = vmatpush.bf16.msrb.mxu0 %v8627_v33  ;;  %4952 = vmatpush.bf16.msrb.mxu1 %v8755_v40  ;;  %v7300_v33 = vld [vmem:[#allocation6 + $0x1b8] sm:$0xf0]  ;;  %v9982_v40 = vld [vmem:[#allocation6 + $0x2ac] sm:$0xf]  ;;  %v4716_v23 = vpop.f32.mrf.mxu0  ;;  %v4730_v47 = vpop.f32.mrf.mxu1 }
 0x225   :  { %v7303_v44 = vor.u32 %v9950_v34, %v7300_v33  ;;  %v4717_v5 = vadd.f32 %v4716_v23, %v11064_v29  ;;  %v7431_v13 = vor.u32 %v9982_v40, %v7428_v4  ;;  %v9942_v34 = vld [vmem:[#allocation6 + $0x16c] sm:$0xf]  ;;  %v7268_v33 = vld [vmem:[#allocation6 + $0x178] sm:$0xf0] }
 0x226   :  { %4966 = vmatpush.bf16.msrb.mxu2 %v8883_v24  ;;  %4980 = vmatpush.bf16.msrb.mxu3 %v9011_v7  ;;  %v9978_v7 = vld [vmem:[#allocation6 + $0x28c] sm:$0xf]  ;;  %v7396_v4 = vld [vmem:[#allocation6 + $0x278] sm:$0xf0] }
 0x227   :  { %4939 = vmatmul.bf16.vlgmr.msrb.gmra.mxu0 %v10952_v61  ;;  %4953 = vmatmul.bf16.vlgmr.msrb.gmra.mxu1 %v10954_v3  ;;  %v4731_v55 = vadd.f32 %v4730_v47, %v4717_v5  ;;  %v9974_v40 = vld [vmem:[#allocation6 + $0x26c] sm:$0xf] }
 0x228   :  { %4987 = vmatpush.bf16.msra.mxu0 %v7207_v15  ;;  %5001 = vmatpush.bf16.msra.mxu1 %v7335_v54  ;;  %v7556_v15 = vld [vmem:[#allocation6 + $0x3b8] sm:$0xf0]  ;;  %v9914_v54 = vld [vmem:[#allocation6 + $0x8c] sm:$0xf]  ;;  %v7399_v23 = vor.u32 %v9974_v40, %v7396_v4 }
 0x229   :  { %4967 = vmatmul.bf16.vlgmr.msrb.gmra.mxu2 %v10958_v45  ;;  %4981 = vmatmul.bf16.vlgmr.msrb.gmra.mxu3 %v10960_v49  ;;  %v7559_v24 = vor.u32 %v10014_v46, %v7556_v15  ;;  %v7159_v32 = vor.u32 %v9914_v54, %v7156_v2  ;;  %v10006_v46 = vld [vmem:[#allocation6 + $0x36c] sm:$0xf]  ;;  %v7524_v15 = vld [vmem:[#allocation6 + $0x378] sm:$0xf0] }
 0x22a   :  { %5015 = vmatpush.bf16.msra.mxu2 %v7463_v58  ;;  %5029 = vmatpush.bf16.msra.mxu3 %v7591_v9  ;;  %v7412_v58 = vld [vmem:[#allocation6 + $0x298] sm:$0xf0]  ;;  %v11075_v9 = vpop.f32.mrf.mxu2  ;;  %v9906_v54 = vld [vmem:[#allocation6 + $0x4c] sm:$0xf]  ;;  %v7527_v5 = vor.u32 %v10006_v46, %v7524_v15 }
 0x22b   :  { %v7415_v29 = vor.u32 %v9978_v7, %v7412_v58  ;;  %v7124_v2 = vld [vmem:[#allocation6 + $0x58] sm:$0xf0]  ;;  %v9966_v4 = vld [vmem:[#allocation6 + $0x22c] sm:$0xf] }
 0x22c   :  { %4988 = vmatpush.bf16.msra.mxu0 %v7191_v48  ;;  %5002 = vmatpush.bf16.msra.mxu1 %v7319_v1  ;;  %v7287_v48 = vor.u32 %v9946_v26, %v7284_v39  ;;  %v10010_v1 = vld [vmem:[#allocation6 + $0x38c] sm:$0xf]  ;;  %v7252_v39 = vld [vmem:[#allocation6 + $0x158] sm:$0xf0]  ;;  %v7127_v58 = vor.u32 %v9906_v54, %v7124_v2 }
 0x22d   :  { %v9938_v26 = vld [vmem:[#allocation6 + $0x14c] sm:$0xf]  ;;  %v7492_v54 = vld [vmem:[#allocation6 + $0x338] sm:$0xf0] }
 0x22e   :  { %5016 = vmatpush.bf16.msra.mxu2 %v7447_v42  ;;  %5030 = vmatpush.bf16.msra.mxu3 %v7575_v10  ;;  %v11077_v42 = vpop.f32.mrf.mxu3  ;;  %v7543_v10 = vor.u32 %v10010_v1, %v7540_v35  ;;  %v7255_v47 = vor.u32 %v9938_v26, %v7252_v39  ;;  %v9902_v1 = vld [vmem:[#allocation6 + $0x2c] sm:$0xf]  ;;  %v7220_v39 = vld [vmem:[#allocation6 + $0x118] sm:$0xf0] }
 0x22f   :  { %11305 = vst [vmem:[#allocation33_spill] sm:$0xff] %v11077_v42  ;;  %v9898_v2 = vld [vmem:[#allocation6 + $0xc] sm:$0xf]  ;;  %v7716_v42 = vld [vmem:[#allocation6 + $0x4f8] sm:$0xf0] }
 0x230   :  { %4989 = vmatpush.bf16.msra.mxu0 %v7175_v28  ;;  %5003 = vmatpush.bf16.msra.mxu1 %v7303_v44  ;;  %v7143_v28 = vor.u32 %v9910_v14, %v7140_v63  ;;  %v7271_v44 = vor.u32 %v9942_v34, %v7268_v33  ;;  %v7108_v14 = vld [vmem:[#allocation6 + $0x38] sm:$0xf0]  ;;  %v9934_v63 = vld [vmem:[#allocation6 + $0x12c] sm:$0xf] }
 0x231   :  { %v7236_v34 = vld [vmem:[#allocation6 + $0x138] sm:$0xf0]  ;;  %v7111_v46 = vor.u32 %v9902_v1, %v7108_v14  ;;  %v9930_v26 = vld [vmem:[#allocation6 + $0x10c] sm:$0xf] }
 0x232   :  { %5017 = vmatpush.bf16.msra.mxu2 %v7431_v13  ;;  %5031 = vmatpush.bf16.msra.mxu3 %v7559_v24  ;;  %v9970_v13 = vld [vmem:[#allocation6 + $0x24c] sm:$0xf]  ;;  %v7380_v24 = vld [vmem:[#allocation6 + $0x258] sm:$0xf0]  ;;  %v4744_v7 = vpop.f32.mrf.mxu2  ;;  %v7239_v15 = vor.u32 %v9934_v63, %v7236_v34 }
 0x233   :  { %v4745_v35 = vadd.f32 %v4744_v7, %v4731_v55  ;;  %v7092_v55 = vld [vmem:[#allocation6 + $0x18] sm:$0xf0]  ;;  %v10054_v7 = vld [vmem:[#allocation6 + $0x4ec] sm:$0xf] }
 0x234   :  { %4990 = vmatpush.bf16.msra.mxu0 %v7159_v32  ;;  %5004 = vmatpush.bf16.msra.mxu1 %v7287_v48  ;;  %v10002_v32 = vld [vmem:[#allocation6 + $0x34c] sm:$0xf]  ;;  %v7508_v48 = vld [vmem:[#allocation6 + $0x358] sm:$0xf0] }
 0x235   :  { %v7511_v40 = vor.u32 %v10002_v32, %v7508_v48  ;;  %v7095_v32 = vor.u32 %v9898_v2, %v7092_v55  ;;  %v7348_v48 = vld [vmem:[#allocation6 + $0x218] sm:$0xf0]  ;;  %v9994_v1 = vld [vmem:[#allocation6 + $0x30c] sm:$0xf] }
 0x236   :  { %5018 = vmatpush.bf16.msra.mxu2 %v7415_v29  ;;  %5032 = vmatpush.bf16.msra.mxu3 %v7543_v10  ;;  %v4758_v33 = vpop.f32.mrf.mxu3  ;;  %v7383_v10 = vor.u32 %v9970_v13, %v7380_v24  ;;  %v7476_v63 = vld [vmem:[#allocation6 + $0x318] sm:$0xf0]  ;;  %v10118_v34 = vld [vmem:[#allocation6 + $0x6ec] sm:$0xf] }
 0x237   :  { %v11079_v29 = vadd.f32 %v4758_v33, %v4745_v35  ;;  %v7719_v35 = vor.u32 %v10054_v7, %v7716_v42  ;;  %v7972_v33 = vld [vmem:[#allocation6 + $0x6f8] sm:$0xf0]  ;;  %v10050_v45 = vld [vmem:[#allocation6 + $0x4cc] sm:$0xf] }
 0x238   :  { %4991 = vmatpush.bf16.msra.mxu0 %v7143_v28  ;;  %5005 = vmatpush.bf16.msra.mxu1 %v7271_v44  ;;  %v7364_v28 = vld [vmem:[#allocation6 + $0x238] sm:$0xf0]  ;;  %v9998_v44 = vld [vmem:[#allocation6 + $0x32c] sm:$0xf] }
 0x239   :  { %11306 = vst [vmem:[#allocation34_spill] sm:$0xff] %v11079_v29  ;;  %v7367_v13 = vor.u32 %v9966_v4, %v7364_v28  ;;  %v7495_v24 = vor.u32 %v9998_v44, %v7492_v54  ;;  %v10150_v29 = vld [vmem:[#allocation6 + $0x7ec] sm:$0xf]  ;;  %v8100_v49 = vld [vmem:[#allocation6 + $0x7f8] sm:$0xf0]  ;;  %v7479_v44 = vor.u32 %v9994_v1, %v7476_v63 }
 0x23a   :  { %5019 = vmatpush.bf16.msra.mxu2 %v7399_v23  ;;  %5033 = vmatpush.bf16.msra.mxu3 %v7527_v5  ;;  %v10086_v23 = vld [vmem:[#allocation6 + $0x5ec] sm:$0xf]  ;;  %v7844_v5 = vld [vmem:[#allocation6 + $0x5f8] sm:$0xf0]  ;;  %v8103_v42 = vor.u32 %v10150_v29, %v8100_v49 }
 0x23b   :  { %v7847_v14 = vor.u32 %v10086_v23, %v7844_v5  ;;  %v7828_v4 = vld [vmem:[#allocation6 + $0x5d8] sm:$0xf0]  ;;  %v10046_v7 = vld [vmem:[#allocation6 + $0x4ac] sm:$0xf] }
 0x23c   :  { %4992 = vmatpush.bf16.msra.mxu0 %v7127_v58  ;;  %5006 = vmatpush.bf16.msra.mxu1 %v7255_v47  ;;  %v7223_v58 = vor.u32 %v9930_v26, %v7220_v39  ;;  %v9962_v47 = vld [vmem:[#allocation6 + $0x20c] sm:$0xf]  ;;  %v7956_v54 = vld [vmem:[#allocation6 + $0x6d8] sm:$0xf0] }
 0x23d   :  { %v7351_v28 = vor.u32 %v9962_v47, %v7348_v48  ;;  %v10146_v26 = vld [vmem:[#allocation6 + $0x7cc] sm:$0xf]  ;;  %v8084_v39 = vld [vmem:[#allocation6 + $0x7d8] sm:$0xf0] }
 0x23e   :  { %5020 = vmatpush.bf16.msra.mxu2 %v7383_v10  ;;  %5034 = vmatpush.bf16.msra.mxu3 %v7511_v40  ;;  %v7700_v10 = vld [vmem:[#allocation6 + $0x4d8] sm:$0xf0]  ;;  %v10082_v40 = vld [vmem:[#allocation6 + $0x5cc] sm:$0xf]  ;;  %v8087_v49 = vor.u32 %v10146_v26, %v8084_v39 }
 0x23f   :  { %v7703_v2 = vor.u32 %v10050_v45, %v7700_v10  ;;  %v7831_v55 = vor.u32 %v10082_v40, %v7828_v4  ;;  %v7684_v23 = vld [vmem:[#allocation6 + $0x4b8] sm:$0xf0]  ;;  %v10078_v5 = vld [vmem:[#allocation6 + $0x5ac] sm:$0xf] }
 0x240   :  { %4993 = vmatpush.bf16.msra.mxu0 %v7111_v46  ;;  %5007 = vmatpush.bf16.msra.mxu1 %v7239_v15  ;;  %v7975_v46 = vor.u32 %v10118_v34, %v7972_v33  ;;  %v10114_v15 = vld [vmem:[#allocation6 + $0x6cc] sm:$0xf]  ;;  %v7687_v45 = vor.u32 %v10046_v7, %v7684_v23  ;;  %v8068_v48 = vld [vmem:[#allocation6 + $0x7b8] sm:$0xf0] }
 0x241   :  { %v10110_v29 = vld [vmem:[#allocation6 + $0x6ac] sm:$0xf]  ;;  %v7924_v33 = vld [vmem:[#allocation6 + $0x698] sm:$0xf0] }
 0x242   :  { %5021 = vmatpush.bf16.msra.mxu2 %v7367_v13  ;;  %5035 = vmatpush.bf16.msra.mxu3 %v7495_v24  ;;  %v7812_v13 = vld [vmem:[#allocation6 + $0x5b8] sm:$0xf0]  ;;  %v7959_v24 = vor.u32 %v10114_v15, %v7956_v54  ;;  %v10142_v47 = vld [vmem:[#allocation6 + $0x7ac] sm:$0xf] }
 0x243   :  { %v10074_v1 = vld [vmem:[#allocation6 + $0x58c] sm:$0xf]  ;;  %v8071_v63 = vor.u32 %v10142_v47, %v8068_v48  ;;  %v8036_v7 = vld [vmem:[#allocation6 + $0x778] sm:$0xf0] }
 0x244   :  { %4994 = vmatpush.bf16.msra.mxu0 %v7095_v32  ;;  %5008 = vmatpush.bf16.msra.mxu1 %v7223_v58  ;;  %v7940_v32 = vld [vmem:[#allocation6 + $0x6b8] sm:$0xf0]  ;;  %v7815_v58 = vor.u32 %v10078_v5, %v7812_v13  ;;  %v10106_v34 = vld [vmem:[#allocation6 + $0x68c] sm:$0xf] }
 0x245   :  { %v10138_v4 = vld [vmem:[#allocation6 + $0x78c] sm:$0xf]  ;;  %v7636_v5 = vld [vmem:[#allocation6 + $0x458] sm:$0xf0] }
 0x246   :  { %5022 = vmatpush.bf16.msra.mxu2 %v7351_v28  ;;  %5036 = vmatpush.bf16.msra.mxu3 %v7479_v44  ;;  %v8052_v28 = vld [vmem:[#allocation6 + $0x798] sm:$0xf0]  ;;  %v10038_v44 = vld [vmem:[#allocation6 + $0x46c] sm:$0xf] }
 0x247   :  { %4995 = vmatmul.bf16.vlgmr.msra.gmra.mxu0 %v10902_v11  ;;  %5009 = vmatmul.bf16.vlgmr.msra.gmra.mxu1 %v10904_v17  ;;  %v10042_v11 = vld [vmem:[#allocation6 + $0x48c] sm:$0xf]  ;;  %v7668_v17 = vld [vmem:[#allocation6 + $0x498] sm:$0xf0]  ;;  %v8055_v15 = vor.u32 %v10138_v4, %v8052_v28 }
 0x248   :  { %5043 = vmatpush.bf16.msrb.mxu0 %v7719_v35  ;;  %5057 = vmatpush.bf16.msrb.mxu1 %v7847_v14  ;;  %v7796_v35 = vld [vmem:[#allocation6 + $0x598] sm:$0xf0]  ;;  %v7943_v14 = vor.u32 %v10110_v29, %v7940_v32  ;;  %v7671_v10 = vor.u32 %v10042_v11, %v7668_v17  ;;  %v10102_v54 = vld [vmem:[#allocation6 + $0x66c] sm:$0xf] }
 0x249   :  { %5023 = vmatmul.bf16.vlgmr.msra.gmra.mxu2 %v10908_v50  ;;  %5037 = vmatmul.bf16.vlgmr.msra.gmra.mxu3 %v10910_v53  ;;  %v7799_v40 = vor.u32 %v10074_v1, %v7796_v35  ;;  %v10070_v50 = vld [vmem:[#allocation6 + $0x56c] sm:$0xf]  ;;  %v7927_v53 = vor.u32 %v10106_v34, %v7924_v33  ;;  %v8020_v11 = vld [vmem:[#allocation6 + $0x758] sm:$0xf0] }
 0x24a   :  { %5071 = vmatpush.bf16.msrb.mxu2 %v7975_v46  ;;  %5085 = vmatpush.bf16.msrb.mxu3 %v8103_v42  ;;  %v7652_v46 = vld [vmem:[#allocation6 + $0x478] sm:$0xf0]  ;;  %v10134_v39 = vld [vmem:[#allocation6 + $0x76c] sm:$0xf] }
 0x24b   :  { %v7780_v42 = vld [vmem:[#allocation6 + $0x578] sm:$0xf0]  ;;  %v10034_v23 = vld [vmem:[#allocation6 + $0x44c] sm:$0xf]  ;;  %v8039_v29 = vor.u32 %v10134_v39, %v8036_v7 }
 0x24c   :  { %5044 = vmatpush.bf16.msrb.mxu0 %v7703_v2  ;;  %5058 = vmatpush.bf16.msrb.mxu1 %v7831_v55  ;;  %v7908_v2 = vld [vmem:[#allocation6 + $0x678] sm:$0xf0]  ;;  %v7655_v55 = vor.u32 %v10038_v44, %v7652_v46  ;;  %v7783_v26 = vor.u32 %v10070_v50, %v7780_v42  ;;  %v10066_v13 = vld [vmem:[#allocation6 + $0x54c] sm:$0xf] }
 0x24d   :  { %v10098_v32 = vld [vmem:[#allocation6 + $0x64c] sm:$0xf]  ;;  %v7620_v1 = vld [vmem:[#allocation6 + $0x438] sm:$0xf0] }
 0x24e   :  { %5072 = vmatpush.bf16.msrb.mxu2 %v7959_v24  ;;  %5086 = vmatpush.bf16.msrb.mxu3 %v8087_v49  ;;  %v7764_v24 = vld [vmem:[#allocation6 + $0x558] sm:$0xf0]  ;;  %v7911_v49 = vor.u32 %v10102_v54, %v7908_v2  ;;  %v10130_v48 = vld [vmem:[#allocation6 + $0x74c] sm:$0xf] }
 0x24f   :  { %v7767_v47 = vor.u32 %v10066_v13, %v7764_v24  ;;  %v10030_v17 = vld [vmem:[#allocation6 + $0x42c] sm:$0xf]  ;;  %v8023_v34 = vor.u32 %v10130_v48, %v8020_v11  ;;  %v8004_v44 = vld [vmem:[#allocation6 + $0x738] sm:$0xf0] }
 0x250   :  { %5045 = vmatpush.bf16.msrb.mxu0 %v7687_v45  ;;  %5059 = vmatpush.bf16.msrb.mxu1 %v7815_v58  ;;  %v7892_v45 = vld [vmem:[#allocation6 + $0x658] sm:$0xf0]  ;;  %v7639_v58 = vor.u32 %v10034_v23, %v7636_v5  ;;  %v10062_v35 = vld [vmem:[#allocation6 + $0x52c] sm:$0xf]  ;;  %v7623_v4 = vor.u32 %v10030_v17, %v7620_v1 }
 0x251   :  { %v10094_v33 = vld [vmem:[#allocation6 + $0x62c] sm:$0xf]  ;;  %v7604_v50 = vld [vmem:[#allocation6 + $0x418] sm:$0xf0] }
 0x252   :  { %5073 = vmatpush.bf16.msrb.mxu2 %v7943_v14  ;;  %5087 = vmatpush.bf16.msrb.mxu3 %v8071_v63  ;;  %v7748_v14 = vld [vmem:[#allocation6 + $0x538] sm:$0xf0]  ;;  %v7895_v63 = vor.u32 %v10098_v32, %v7892_v45  ;;  %v10026_v46 = vld [vmem:[#allocation6 + $0x40c] sm:$0xf] }
 0x253   :  { %v7751_v28 = vor.u32 %v10062_v35, %v7748_v14  ;;  %v10058_v42 = vld [vmem:[#allocation6 + $0x50c] sm:$0xf]  ;;  %v8228_v54 = vld [vmem:[#allocation6 + $0x8f8] sm:$0xf0]  ;;  %v7607_v7 = vor.u32 %v10026_v46, %v7604_v50 }
 0x254   :  { %5046 = vmatpush.bf16.msrb.mxu0 %v7671_v10  ;;  %5060 = vmatpush.bf16.msrb.mxu1 %v7799_v40  ;;  %v7876_v10 = vld [vmem:[#allocation6 + $0x638] sm:$0xf0]  ;;  %v10126_v40 = vld [vmem:[#allocation6 + $0x72c] sm:$0xf] }
 0x255   :  { %v10214_v2 = vld [vmem:[#allocation6 + $0x9ec] sm:$0xf]  ;;  %v8007_v39 = vor.u32 %v10126_v40, %v8004_v44  ;;  %v7860_v13 = vld [vmem:[#allocation6 + $0x618] sm:$0xf0] }
 0x256   :  { %5074 = vmatpush.bf16.msrb.mxu2 %v7927_v53  ;;  %5088 = vmatpush.bf16.msrb.mxu3 %v8055_v15  ;;  %v7732_v53 = vld [vmem:[#allocation6 + $0x518] sm:$0xf0]  ;;  %v10182_v15 = vld [vmem:[#allocation6 + $0x8ec] sm:$0xf] }
 0x257   :  { %v7735_v23 = vor.u32 %v10058_v42, %v7732_v53  ;;  %v10090_v5 = vld [vmem:[#allocation6 + $0x60c] sm:$0xf]  ;;  %v7988_v32 = vld [vmem:[#allocation6 + $0x718] sm:$0xf0] }
 0x258   :  { %5047 = vmatpush.bf16.msrb.mxu0 %v7655_v55  ;;  %5061 = vmatpush.bf16.msrb.mxu1 %v7783_v26  ;;  %v8356_v55 = vld [vmem:[#allocation6 + $0x9f8] sm:$0xf0]  ;;  %v7879_v26 = vor.u32 %v10094_v33, %v7876_v10  ;;  %v10122_v24 = vld [vmem:[#allocation6 + $0x70c] sm:$0xf]  ;;  %v7863_v14 = vor.u32 %v10090_v5, %v7860_v13 }
 0x259   :  { %v10246_v45 = vld [vmem:[#allocation6 + $0xaec] sm:$0xf]  ;;  %v8612_v48 = vld [vmem:[#allocation6 + $0xbf8] sm:$0xf0] }
 0x25a   :  { %5075 = vmatpush.bf16.msrb.mxu2 %v7911_v49  ;;  %5089 = vmatpush.bf16.msrb.mxu3 %v8039_v29  ;;  %v8231_v49 = vor.u32 %v10182_v15, %v8228_v54  ;;  %v8359_v29 = vor.u32 %v10214_v2, %v8356_v55  ;;  %v10178_v11 = vld [vmem:[#allocation6 + $0x8cc] sm:$0xf]  ;;  %v8212_v17 = vld [vmem:[#allocation6 + $0x8d8] sm:$0xf0]  ;;  %v11087_v54 = vpop.f32.mrf.mxu0 }
 0x25b   :  { %v10210_v1 = vld [vmem:[#allocation6 + $0x9cc] sm:$0xf]  ;;  %v8340_v35 = vld [vmem:[#allocation6 + $0x9d8] sm:$0xf0] }
 0x25c   :  { %5048 = vmatpush.bf16.msrb.mxu0 %v7639_v58  ;;  %5062 = vmatpush.bf16.msrb.mxu1 %v7767_v47  ;;  %v8484_v58 = vld [vmem:[#allocation6 + $0xaf8] sm:$0xf0]  ;;  %v10278_v47 = vld [vmem:[#allocation6 + $0xbec] sm:$0xf] }
 0x25d   :  { %v8615_v33 = vor.u32 %v10278_v47, %v8612_v48  ;;  %v10242_v10 = vld [vmem:[#allocation6 + $0xacc] sm:$0xf]  ;;  %v8468_v40 = vld [vmem:[#allocation6 + $0xad8] sm:$0xf0] }
 0x25e   :  { %5076 = vmatpush.bf16.msrb.mxu2 %v7895_v63  ;;  %5090 = vmatpush.bf16.msrb.mxu3 %v8023_v34  ;;  %v7991_v63 = vor.u32 %v10122_v24, %v7988_v32  ;;  %v8487_v34 = vor.u32 %v10246_v45, %v8484_v58  ;;  %v10274_v44 = vld [vmem:[#allocation6 + $0xbcc] sm:$0xf]  ;;  %v8596_v46 = vld [vmem:[#allocation6 + $0xbd8] sm:$0xf0]  ;;  %v8471_v2 = vor.u32 %v10242_v10, %v8468_v40 }
 0x25f   :  { %v10174_v50 = vld [vmem:[#allocation6 + $0x8ac] sm:$0xf]  ;;  %v8196_v42 = vld [vmem:[#allocation6 + $0x8b8] sm:$0xf0]  ;;  %v8599_v55 = vor.u32 %v10274_v44, %v8596_v46 }
 0x260   :  { %5049 = vmatpush.bf16.msrb.mxu0 %v7623_v4  ;;  %5063 = vmatpush.bf16.msrb.mxu1 %v7751_v28  ;;  %v8215_v4 = vor.u32 %v10178_v11, %v8212_v17  ;;  %v8343_v28 = vor.u32 %v10210_v1, %v8340_v35  ;;  %v10206_v53 = vld [vmem:[#allocation6 + $0x9ac] sm:$0xf]  ;;  %v8324_v15 = vld [vmem:[#allocation6 + $0x9b8] sm:$0xf0] }
 0x261   :  { %v8580_v5 = vld [vmem:[#allocation6 + $0xbb8] sm:$0xf0]  ;;  %v10202_v24 = vld [vmem:[#allocation6 + $0x98c] sm:$0xf] }
 0x262   :  { %5077 = vmatpush.bf16.msrb.mxu2 %v7879_v26  ;;  %5091 = vmatpush.bf16.msrb.mxu3 %v8007_v39  ;;  %v10238_v26 = vld [vmem:[#allocation6 + $0xaac] sm:$0xf]  ;;  %v8452_v39 = vld [vmem:[#allocation6 + $0xab8] sm:$0xf0] }
 0x263   :  { %v8180_v13 = vld [vmem:[#allocation6 + $0x898] sm:$0xf0]  ;;  %v10234_v45 = vld [vmem:[#allocation6 + $0xa8c] sm:$0xf] }
 0x264   :  { %5050 = vmatpush.bf16.msrb.mxu0 %v7607_v7  ;;  %5064 = vmatpush.bf16.msrb.mxu1 %v7735_v23  ;;  %v8199_v7 = vor.u32 %v10174_v50, %v8196_v42  ;;  %v8327_v23 = vor.u32 %v10206_v53, %v8324_v15  ;;  %v8436_v58 = vld [vmem:[#allocation6 + $0xa98] sm:$0xf0]  ;;  %v10266_v11 = vld [vmem:[#allocation6 + $0xb8c] sm:$0xf] }
 0x265   :  { %v8564_v17 = vld [vmem:[#allocation6 + $0xb98] sm:$0xf0]  ;;  %v10166_v1 = vld [vmem:[#allocation6 + $0x86c] sm:$0xf] }
 0x266   :  { %5078 = vmatpush.bf16.msrb.mxu2 %v7863_v14  ;;  %5092 = vmatpush.bf16.msrb.mxu3 %v7991_v63  ;;  %v8164_v35 = vld [vmem:[#allocation6 + $0x878] sm:$0xf0]  ;;  %v11093_v63 = vpop.f32.mrf.mxu0  ;;  %v10230_v10 = vld [vmem:[#allocation6 + $0xa6c] sm:$0xf] }
 0x267   :  { %5051 = vmatmul.bf16.vlgmr.msrb.gmra.mxu0 %v10918_v22  ;;  %5065 = vmatmul.bf16.vlgmr.msrb.gmra.mxu1 %v10920_v27  ;;  %v10270_v22 = vld [vmem:[#allocation6 + $0xbac] sm:$0xf]  ;;  %v8292_v14 = vld [vmem:[#allocation6 + $0x978] sm:$0xf0] }
 0x268   :  { %5099 = vmatpush.bf16.msra.mxu0 %v8231_v49  ;;  %5113 = vmatpush.bf16.msra.mxu1 %v8359_v29  ;;  %v10170_v27 = vld [vmem:[#allocation6 + $0x88c] sm:$0xf]  ;;  %v8308_v49 = vld [vmem:[#allocation6 + $0x998] sm:$0xf0]  ;;  %v8455_v29 = vor.u32 %v10238_v26, %v8452_v39  ;;  %v8583_v32 = vor.u32 %v10270_v22, %v8580_v5 }
 0x269   :  { %5079 = vmatmul.bf16.vlgmr.msrb.gmra.mxu2 %v10924_v60  ;;  %5093 = vmatmul.bf16.vlgmr.msrb.gmra.mxu3 %v10926_v62  ;;  %v8183_v47 = vor.u32 %v10170_v27, %v8180_v13  ;;  %v8311_v48 = vor.u32 %v10202_v24, %v8308_v49  ;;  %v10198_v60 = vld [vmem:[#allocation6 + $0x96c] sm:$0xf]  ;;  %v11091_v62 = vpop.f32.mrf.mxu1  ;;  %v8420_v40 = vld [vmem:[#allocation6 + $0xa78] sm:$0xf0] }
 0x26a   :  { %5127 = vmatpush.bf16.msra.mxu2 %v8487_v34  ;;  %5141 = vmatpush.bf16.msra.mxu3 %v8615_v33  ;;  %v8439_v34 = vor.u32 %v10234_v45, %v8436_v58  ;;  %v8567_v33 = vor.u32 %v10266_v11, %v8564_v17  ;;  %v10262_v44 = vld [vmem:[#allocation6 + $0xb6c] sm:$0xf]  ;;  %v8548_v46 = vld [vmem:[#allocation6 + $0xb78] sm:$0xf0]  ;;  %v8423_v26 = vor.u32 %v10230_v10, %v8420_v40 }
 0x26b   :  { %v10162_v50 = vld [vmem:[#allocation6 + $0x84c] sm:$0xf]  ;;  %v8148_v42 = vld [vmem:[#allocation6 + $0x858] sm:$0xf0]  ;;  %v8551_v39 = vor.u32 %v10262_v44, %v8548_v46 }
 0x26c   :  { %5100 = vmatpush.bf16.msra.mxu0 %v8215_v4  ;;  %5114 = vmatpush.bf16.msra.mxu1 %v8343_v28  ;;  %v8167_v4 = vor.u32 %v10166_v1, %v8164_v35  ;;  %v8295_v28 = vor.u32 %v10198_v60, %v8292_v14  ;;  %v10194_v53 = vld [vmem:[#allocation6 + $0x94c] sm:$0xf]  ;;  %v8276_v15 = vld [vmem:[#allocation6 + $0x958] sm:$0xf0]  ;;  %v8151_v22 = vor.u32 %v10162_v50, %v8148_v42 }
 0x26d   :  { %v8279_v5 = vor.u32 %v10194_v53, %v8276_v15  ;;  %v10258_v27 = vld [vmem:[#allocation6 + $0xb4c] sm:$0xf]  ;;  %v8532_v13 = vld [vmem:[#allocation6 + $0xb58] sm:$0xf0] }
 0x26e   :  { %5128 = vmatpush.bf16.msra.mxu2 %v8471_v2  ;;  %5142 = vmatpush.bf16.msra.mxu3 %v8599_v55  ;;  %v11095_v2 = vpop.f32.mrf.mxu2  ;;  %v11097_v55 = vpop.f32.mrf.mxu3  ;;  %v10158_v24 = vld [vmem:[#allocation6 + $0x82c] sm:$0xf]  ;;  %v8132_v49 = vld [vmem:[#allocation6 + $0x838] sm:$0xf0] }
 0x26f   :  { %v8388_v11 = vld [vmem:[#allocation6 + $0xa38] sm:$0xf0]  ;;  %v10254_v17 = vld [vmem:[#allocation6 + $0xb2c] sm:$0xf]  ;;  %v8135_v1 = vor.u32 %v10158_v24, %v8132_v49 }
 0x270   :  { %5101 = vmatpush.bf16.msra.mxu0 %v8199_v7  ;;  %5115 = vmatpush.bf16.msra.mxu1 %v8327_v23  ;;  %v10226_v7 = vld [vmem:[#allocation6 + $0xa4c] sm:$0xf]  ;;  %v8404_v23 = vld [vmem:[#allocation6 + $0xa58] sm:$0xf0] }
 0x271   :  { %v11099_v45 = vpop.f32.mrf.mxu1  ;;  %v8407_v58 = vor.u32 %v10226_v7, %v8404_v23  ;;  %v8516_v60 = vld [vmem:[#allocation6 + $0xb38] sm:$0xf0]  ;;  %v10154_v14 = vld [vmem:[#allocation6 + $0x80c] sm:$0xf] }
 0x272   :  { %5129 = vmatpush.bf16.msra.mxu2 %v8455_v29  ;;  %5143 = vmatpush.bf16.msra.mxu3 %v8583_v32  ;;  %v10190_v29 = vld [vmem:[#allocation6 + $0x92c] sm:$0xf]  ;;  %v8260_v32 = vld [vmem:[#allocation6 + $0x938] sm:$0xf0]  ;;  %v8519_v15 = vor.u32 %v10254_v17, %v8516_v60 }
 0x273   :  { %v8263_v35 = vor.u32 %v10190_v29, %v8260_v32  ;;  %v10186_v10 = vld [vmem:[#allocation6 + $0x90c] sm:$0xf]  ;;  %v8244_v40 = vld [vmem:[#allocation6 + $0x918] sm:$0xf0]  ;;  %v11307_v29 = vperm.slane %v10968_v31, 0 }
 0x274   :  { %5102 = vmatpush.bf16.msra.mxu0 %v8183_v47  ;;  %5116 = vmatpush.bf16.msra.mxu1 %v8311_v48  ;;  %v8535_v47 = vor.u32 %v10258_v27, %v8532_v13  ;;  %v10222_v48 = vld [vmem:[#allocation6 + $0xa2c] sm:$0xf]  ;;  %v8740_v46 = vld [vmem:[#allocation6 + $0xcf8] sm:$0xf0] }
 0x275   :  { %v10342_v50 = vld [vmem:[#allocation6 + $0xdec] sm:$0xf]  ;;  %v8868_v42 = vld [vmem:[#allocation6 + $0xdf8] sm:$0xf0]  ;;  %v8391_v53 = vor.u32 %v10222_v48, %v8388_v11  ;;  %v4327_v32 = vadd.f32 %v10979_v38, %v11307_v29 }
 0x276   :  { %5130 = vmatpush.bf16.msra.mxu2 %v8439_v34  ;;  %5144 = vmatpush.bf16.msra.mxu3 %v8567_v33  ;;  %v8116_v34 = vld [vmem:[#allocation6 + $0x818] sm:$0xf0]  ;;  %v11101_v33 = vpop.f32.mrf.mxu0  ;;  %v11105_v44 = vpop.f32.mrf.mxu3  ;;  %v10218_v7 = vld [vmem:[#allocation6 + $0xa0c] sm:$0xf]  ;;  %v8871_v27 = vor.u32 %v10342_v50, %v8868_v42 }
 0x277   :  { %v8372_v23 = vld [vmem:[#allocation6 + $0xa18] sm:$0xf0]  ;;  %v10374_v24 = vld [vmem:[#allocation6 + $0xeec] sm:$0xf] }
 0x278   :  { %5103 = vmatpush.bf16.msra.mxu0 %v8167_v4  ;;  %5117 = vmatpush.bf16.msra.mxu1 %v8295_v28  ;;  %v10310_v4 = vld [vmem:[#allocation6 + $0xcec] sm:$0xf]  ;;  %v11103_v28 = vpop.f32.mrf.mxu2  ;;  %v8500_v13 = vld [vmem:[#allocation6 + $0xb18] sm:$0xf0]  ;;  %v8375_v60 = vor.u32 %v10218_v7, %v8372_v23 }
 0x279   :  { %v8996_v49 = vld [vmem:[#allocation6 + $0xef8] sm:$0xf0]  ;;  %v10306_v48 = vld [vmem:[#allocation6 + $0xccc] sm:$0xf] }
 0x27a   :  { %5131 = vmatpush.bf16.msra.mxu2 %v8423_v26  ;;  %5145 = vmatpush.bf16.msra.mxu3 %v8551_v39  ;;  %v8119_v26 = vor.u32 %v10154_v14, %v8116_v34  ;;  %v8247_v39 = vor.u32 %v10186_v10, %v8244_v40  ;;  %v8724_v11 = vld [vmem:[#allocation6 + $0xcd8] sm:$0xf0]  ;;  %v10338_v17 = vld [vmem:[#allocation6 + $0xdcc] sm:$0xf]  ;;  %v8999_v31 = vor.u32 %v10374_v24, %v8996_v49 }
 0x27b   :  { %v10370_v10 = vld [vmem:[#allocation6 + $0xecc] sm:$0xf]  ;;  %v8980_v40 = vld [vmem:[#allocation6 + $0xed8] sm:$0xf0] }
 0x27c   :  { %5104 = vmatpush.bf16.msra.mxu0 %v8151_v22  ;;  %5118 = vmatpush.bf16.msra.mxu1 %v8279_v5  ;;  %v10250_v22 = vld [vmem:[#allocation6 + $0xb0c] sm:$0xf]  ;;  %v8743_v5 = vor.u32 %v10310_v4, %v8740_v46  ;;  %v4341_v4 = vadd.f32 %v10981_v52, %v4327_v32  ;;  %v8727_v46 = vor.u32 %v10306_v48, %v8724_v11  ;;  %v8708_v7 = vld [vmem:[#allocation6 + $0xcb8] sm:$0xf0] }
 0x27d   :  { %v8503_v14 = vor.u32 %v10250_v22, %v8500_v13  ;;  %v10402_v42 = vld [vmem:[#allocation6 + $0xfcc] sm:$0xf]  ;;  %v8836_v22 = vld [vmem:[#allocation6 + $0xdb8] sm:$0xf0]  ;;  %v10584_v13 = vld [vmem:[#allocation7] sm:$0xf] }
 0x27e   :  { %5132 = vmatpush.bf16.msra.mxu2 %v8407_v58  ;;  %5146 = vmatpush.bf16.msra.mxu3 %v8535_v47  ;;  %v10406_v58 = vld [vmem:[#allocation6 + $0xfec] sm:$0xf]  ;;  %v9124_v47 = vld [vmem:[#allocation6 + $0xff8] sm:$0xf0]  ;;  %v11112_v34 = vpop.f32.mrf.mxu0  ;;  %v11123_v52 = vpop.f32.mrf.mxu3  ;;  %v1749_v24 = vperm.slane %v10584_v13, 2 }
 0x27f   :  { %v9127_v38 = vor.u32 %v10406_v58, %v9124_v47  ;;  %v10334_v23 = vld [vmem:[#allocation6 + $0xdac] sm:$0xf]  ;;  %v8964_v49 = vld [vmem:[#allocation6 + $0xeb8] sm:$0xf0] }
 0x280   :  { %5105 = vmatpush.bf16.msra.mxu0 %v8135_v1  ;;  %5119 = vmatpush.bf16.msra.mxu1 %v8263_v35  ;;  %v8852_v1 = vld [vmem:[#allocation6 + $0xdd8] sm:$0xf0]  ;;  %v11110_v35 = vpop.f32.mrf.mxu1  ;;  %v8839_v29 = vor.u32 %v10334_v23, %v8836_v22  ;;  %v10398_v32 = vld [vmem:[#allocation6 + $0xfac] sm:$0xf] }
 0x281   :  { %v8855_v50 = vor.u32 %v10338_v17, %v8852_v1  ;;  %v10298_v58 = vld [vmem:[#allocation6 + $0xc8c] sm:$0xf]  ;;  %v8692_v48 = vld [vmem:[#allocation6 + $0xc98] sm:$0xf0] }
 0x282   :  { %5133 = vmatpush.bf16.msra.mxu2 %v8391_v53  ;;  %5147 = vmatpush.bf16.msra.mxu3 %v8519_v15  ;;  %v9108_v53 = vld [vmem:[#allocation6 + $0xfd8] sm:$0xf0]  ;;  %v10302_v15 = vld [vmem:[#allocation6 + $0xcac] sm:$0xf] }
 0x283   :  { %v10330_v11 = vld [vmem:[#allocation6 + $0xd8c] sm:$0xf]  ;;  %v8820_v17 = vld [vmem:[#allocation6 + $0xd98] sm:$0xf0] }
 0x284   :  { %5106 = vmatpush.bf16.msra.mxu0 %v8119_v26  ;;  %5120 = vmatpush.bf16.msra.mxu1 %v8247_v39  ;;  %v11308_v26 = vperm.slane %v11026_v20, 1  ;;  %v8983_v20 = vor.u32 %v10370_v10, %v8980_v40  ;;  %v10362_v10 = vld [vmem:[#allocation6 + $0xe8c] sm:$0xf]  ;;  %v8948_v40 = vld [vmem:[#allocation6 + $0xe98] sm:$0xf0] }
 0x285   :  { %v10358_v22 = vld [vmem:[#allocation6 + $0xe6c] sm:$0xf] }
 0x286   :  { %v4551_v39 = vadd.f32 %v11037_v51, %v11308_v26  ;;  %5134 = vmatpush.bf16.msra.mxu2 %v8375_v60  ;;  %5148 = vmatpush.bf16.msra.mxu3 %v8503_v14  ;;  %v9111_v51 = vor.u32 %v10402_v42, %v9108_v53  ;;  %v8676_v42 = vld [vmem:[#allocation6 + $0xc78] sm:$0xf0]  ;;  %v10326_v53 = vld [vmem:[#allocation6 + $0xd6c] sm:$0xf] }
 0x287   :  { %5107 = vmatmul.bf16.vlgmr.msra.gmra.mxu0 %v10936_v37  ;;  %5121 = vmatmul.bf16.vlgmr.msra.gmra.mxu1 %v10938_v43  ;;  %v10366_v37 = vld [vmem:[#allocation6 + $0xeac] sm:$0xf]  ;;  %v8711_v43 = vor.u32 %v10302_v15, %v8708_v7  ;;  %v8951_v7 = vor.u32 %v10362_v10, %v8948_v40  ;;  %v8644_v10 = vld [vmem:[#allocation6 + $0xc38] sm:$0xf0] }
 0x288   :  { %5155 = vmatpush.bf16.msrb.mxu0 %v8743_v5  ;;  %5169 = vmatpush.bf16.msrb.mxu1 %v8871_v27  ;;  %v4355_v5 = vadd.f32 %v10988_v41, %v4341_v4  ;;  %v11121_v27 = vpop.f32.mrf.mxu2  ;;  %v9092_v41 = vld [vmem:[#allocation6 + $0xfb8] sm:$0xf0]  ;;  %v4565_v47 = vadd.f32 %v11039_v12, %v4551_v39  ;;  %v11129_v60 = vpop.f32.mrf.mxu1  ;;  %v4773_v12 = vadd.f32 %v11093_v63, %v1749_v24  ;;  %v10394_v4 = vld [vmem:[#allocation6 + $0xf8c] sm:$0xf] }
 0x289   :  { %5135 = vmatmul.bf16.vlgmr.msra.gmra.mxu2 %v10942_v16  ;;  %5149 = vmatmul.bf16.vlgmr.msra.gmra.mxu3 %v10944_v19  ;;  %v8695_v16 = vor.u32 %v10298_v58, %v8692_v48  ;;  %v8823_v19 = vor.u32 %v10330_v11, %v8820_v17  ;;  %v11138_v39 = vpop.f32.mrf.mxu3  ;;  %v10354_v48 = vld [vmem:[#allocation6 + $0xe4c] sm:$0xf]  ;;  %v8916_v11 = vld [vmem:[#allocation6 + $0xe58] sm:$0xf0] }
 0x28a   :  { %5183 = vmatpush.bf16.msrb.mxu2 %v8999_v31  ;;  %5197 = vmatpush.bf16.msrb.mxu3 %v9127_v38  ;;  %v4369_v1 = vadd.f32 %v10990_v56, %v4355_v5  ;;  %v4579_v14 = vadd.f32 %v11045_v57, %v4565_v47  ;;  %v8967_v31 = vor.u32 %v10366_v37, %v8964_v49  ;;  %v11133_v56 = vpop.f32.mrf.mxu0  ;;  %v8804_v57 = vld [vmem:[#allocation6 + $0xd78] sm:$0xf0]  ;;  %v10390_v37 = vld [vmem:[#allocation6 + $0xf6c] sm:$0xf] }
 0x28b   :  { %v9095_v38 = vor.u32 %v10398_v32, %v9092_v41  ;;  %v8932_v5 = vld [vmem:[#allocation6 + $0xe78] sm:$0xf0]  ;;  %v4787_v13 = vadd.f32 %v11099_v45, %v4773_v12  ;;  %v10290_v49 = vld [vmem:[#allocation6 + $0xc4c] sm:$0xf] }
 0x28c   :  { %5156 = vmatpush.bf16.msrb.mxu0 %v8727_v46  ;;  %5170 = vmatpush.bf16.msrb.mxu1 %v8855_v50  ;;  %v9076_v46 = vld [vmem:[#allocation6 + $0xf98] sm:$0xf0]  ;;  %v10294_v50 = vld [vmem:[#allocation6 + $0xc6c] sm:$0xf]  ;;  %v4383_v15 = vadd.f32 %v10994_v6, %v4369_v1  ;;  %v4593_v63 = vadd.f32 %v11047_v25, %v4579_v14  ;;  %v8935_v47 = vor.u32 %v10358_v22, %v8932_v5 }
 0x28d   :  { %v9079_v23 = vor.u32 %v10394_v4, %v9076_v46  ;;  %v9060_v6 = vld [vmem:[#allocation6 + $0xf78] sm:$0xf0]  ;;  %v10322_v32 = vld [vmem:[#allocation6 + $0xd4c] sm:$0xf]  ;;  %v4801_v58 = vadd.f32 %v11103_v28, %v4787_v13  ;;  %v8919_v46 = vor.u32 %v10354_v48, %v8916_v11  ;;  %v9242_v13 = vld [vmem:[#allocation9 + $0xe0] sm:$0xf] }
 0x28e   :  { %5184 = vmatpush.bf16.msrb.mxu2 %v8983_v20  ;;  %5198 = vmatpush.bf16.msrb.mxu3 %v9111_v51  ;;  %v8679_v20 = vor.u32 %v10294_v50, %v8676_v42  ;;  %v8807_v51 = vor.u32 %v10326_v53, %v8804_v57  ;;  %v8788_v25 = vld [vmem:[#allocation6 + $0xd58] sm:$0xf0]  ;;  %v4607_v41 = vadd.f32 %v11051_v8, %v4593_v63  ;;  %v10386_v14 = vld [vmem:[#allocation6 + $0xf4c] sm:$0xf] }
 0x28f   :  { %v9063_v45 = vor.u32 %v10390_v37, %v9060_v6  ;;  %v4397_v17 = vadd.f32 %v10996_v18, %v4383_v15  ;;  %v10318_v40 = vld [vmem:[#allocation6 + $0xd2c] sm:$0xf]  ;;  %v8772_v12 = vld [vmem:[#allocation6 + $0xd38] sm:$0xf0]  ;;  %v10439_v37 = vld [vmem:[#allocation9 + $0xec] sm:$0xf0] }
 0x290   :  { %5157 = vmatpush.bf16.msrb.mxu0 %v8711_v43  ;;  %5171 = vmatpush.bf16.msrb.mxu1 %v8839_v29  ;;  %v11136_v26 = vpop.f32.mrf.mxu2  ;;  %v4775_v43 = vadd.f32 %v11101_v33, %v1749_v24  ;;  %v8660_v29 = vld [vmem:[#allocation6 + $0xc58] sm:$0xf0]  ;;  %v11146_v1 = vpop.f32.mrf.mxu1  ;;  %v8791_v24 = vor.u32 %v10322_v32, %v8788_v25  ;;  %v4621_v18 = vadd.f32 %v11053_v30, %v4607_v41  ;;  %v10350_v42 = vld [vmem:[#allocation6 + $0xe2c] sm:$0xf]  ;;  %v10471_v6 = vld [vmem:[#allocation9 + $0x1ec] sm:$0xf0] }
 0x291   :  { %v8663_v33 = vor.u32 %v10290_v49, %v8660_v29  ;;  %v8900_v53 = vld [vmem:[#allocation6 + $0xe38] sm:$0xf0]  ;;  %v11158_v63 = vpop.f32.mrf.mxu3  ;;  %v8775_v30 = vor.u32 %v10318_v40, %v8772_v12  ;;  %v10314_v22 = vld [vmem:[#allocation6 + $0xd0c] sm:$0xf]  ;;  %v9226_v40 = vld [vmem:[#allocation9 + $0xc0] sm:$0xf] }
 0x292   :  { %5185 = vmatpush.bf16.msrb.mxu2 %v8967_v31  ;;  %5199 = vmatpush.bf16.msrb.mxu3 %v9095_v38  ;;  %v9044_v31 = vld [vmem:[#allocation6 + $0xf58] sm:$0xf0]  ;;  %v10286_v38 = vld [vmem:[#allocation6 + $0xc2c] sm:$0xf]  ;;  %v4789_v8 = vadd.f32 %v11110_v35, %v4775_v43  ;;  %v11149_v28 = vpop.f32.mrf.mxu0  ;;  %v4635_v57 = vadd.f32 %v11060_v36, %v4621_v18  ;;  %v9370_v36 = vld [vmem:[#allocation9 + $0x1e0] sm:$0xf]  ;;  %v8903_v43 = vor.u32 %v10350_v42, %v8900_v53 }
 0x293   :  { %v9047_v50 = vor.u32 %v10386_v14, %v9044_v31  ;;  %v10382_v35 = vld [vmem:[#allocation6 + $0xf2c] sm:$0xf]  ;;  %v8756_v5 = vld [vmem:[#allocation6 + $0xd18] sm:$0xf0]  ;;  %v9498_v14 = vld [vmem:[#allocation9 + $0x2e0] sm:$0xf] }
 0x294   :  { %5158 = vmatpush.bf16.msrb.mxu0 %v8695_v16  ;;  %5172 = vmatpush.bf16.msrb.mxu1 %v8823_v19  ;;  %v4411_v16 = vadd.f32 %v11003_v21, %v4397_v17  ;;  %v4815_v19 = vadd.f32 %v11105_v44, %v4801_v58  ;;  %v4803_v4 = vadd.f32 %v11121_v27, %v4789_v8  ;;  %v9028_v44 = vld [vmem:[#allocation6 + $0xf38] sm:$0xf0]  ;;  %v11310_v32 = vld [vmem:[#allocation32_spill] sm:$0xff]  ;;  %v11311_v31 = vld [vmem:[#allocation23_spill] sm:$0xff] }
 0x295   :  { %v8647_v21 = vor.u32 %v10286_v38, %v8644_v10  ;;  %v8628_v27 = vld [vmem:[#allocation6 + $0xc18] sm:$0xf0]  ;;  %v9031_v29 = vor.u32 %v10382_v35, %v9028_v44  ;;  %v4649_v25 = vadd.f32 %v11310_v32, %v4635_v57  ;;  %v8759_v58 = vor.u32 %v10314_v22, %v8756_v5  ;;  %v10503_v10 = vld [vmem:[#allocation9 + $0x2ec] sm:$0xf0]  ;;  %v11312_v35 = vld [vmem:[#allocation24_spill] sm:$0xff] }
 0x296   :  { %5186 = vmatpush.bf16.msrb.mxu2 %v8951_v7  ;;  %5200 = vmatpush.bf16.msrb.mxu3 %v9079_v23  ;;  %v10282_v7 = vld [vmem:[#allocation6 + $0xc0c] sm:$0xf]  ;;  %v4829_v23 = vadd.f32 %v11112_v34, %v4815_v19  ;;  %v4817_v49 = vadd.f32 %v11123_v52, %v4803_v4  ;;  %v9243_v17 = vor.u32 %v10439_v37, %v9242_v13  ;;  %v10435_v12 = vld [vmem:[#allocation9 + $0xcc] sm:$0xf0]  ;;  %v9322_v32 = vld [vmem:[#allocation9 + $0x180] sm:$0xf] }
 0x297   :  { %v8631_v34 = vor.u32 %v10282_v7, %v8628_v27  ;;  %v9371_v52 = vor.u32 %v10471_v6, %v9370_v36  ;;  %v4663_v8 = vadd.f32 %v11066_v0, %v4649_v25  ;;  %v10467_v19 = vld [vmem:[#allocation9 + $0x1cc] sm:$0xf0]  ;;  %v9499_v42 = vor.u32 %v10503_v10, %v9498_v14  ;;  %v9210_v7 = vld [vmem:[#allocation9 + $0xa0] sm:$0xf] }
 0x298   :  { %5159 = vmatpush.bf16.msrb.mxu0 %v8679_v20  ;;  %5173 = vmatpush.bf16.msrb.mxu1 %v8807_v51  ;;  %v11156_v15 = vpop.f32.mrf.mxu2  ;;  %v11309_v20 = vld [vmem:[#allocation22_spill] sm:$0xff]  ;;  %v11164_v41 = vpop.f32.mrf.mxu1  ;;  %v4843_v48 = vadd.f32 %v11129_v60, %v4829_v23  ;;  %v4831_v11 = vadd.f32 %v11133_v56, %v4817_v49  ;;  %v9354_v60 = vld [vmem:[#allocation9 + $0x1c0] sm:$0xf]  ;;  %v9227_v53 = vor.u32 %v10435_v12, %v9226_v40  ;;  %v10499_v44 = vld [vmem:[#allocation9 + $0x2cc] sm:$0xf0] }
 0x299   :  { %v4425_v51 = vadd.f32 %v11309_v20, %v4411_v16  ;;  %v11173_v4 = vpop.f32.mrf.mxu3  ;;  %v10431_v27 = vld [vmem:[#allocation9 + $0xac] sm:$0xf0]  ;;  %v9466_v36 = vld [vmem:[#allocation9 + $0x2a0] sm:$0xf] }
 0x29a   :  { %5187 = vmatpush.bf16.msrb.mxu2 %v8935_v47  ;;  %5201 = vmatpush.bf16.msrb.mxu3 %v9063_v45  ;;  %v10346_v47 = vld [vmem:[#allocation6 + $0xe0c] sm:$0xf]  ;;  %v8884_v45 = vld [vmem:[#allocation6 + $0xe18] sm:$0xf0]  ;;  %v4857_v16 = vadd.f32 %v11136_v26, %v4843_v48  ;;  %v4886_v18 = vpop.f32.mrf.mxu0  ;;  %v4845_v0 = vadd.f32 %v11146_v1, %v4831_v11  ;;  %v9482_v26 = vld [vmem:[#allocation9 + $0x2c0] sm:$0xf] }
 0x29b   :  { %v4439_v38 = vadd.f32 %v11311_v31, %v4425_v51  ;;  %v9338_v1 = vld [vmem:[#allocation9 + $0x1a0] sm:$0xf]  ;;  %v10463_v5 = vld [vmem:[#allocation9 + $0x1ac] sm:$0xf0]  ;;  %v9483_v37 = vor.u32 %v10499_v44, %v9482_v26 }
 0x29c   :  { %5160 = vmatpush.bf16.msrb.mxu0 %v8663_v33  ;;  %5174 = vmatpush.bf16.msrb.mxu1 %v8791_v24  ;;  %v10378_v33 = vld [vmem:[#allocation6 + $0xf0c] sm:$0xf]  ;;  %v9012_v24 = vld [vmem:[#allocation6 + $0xf18] sm:$0xf0]  ;;  %v4871_v23 = vadd.f32 %v11138_v39, %v4857_v16  ;;  %v4859_v22 = vadd.f32 %v11156_v15, %v4845_v0  ;;  %v11313_v13 = vld [vmem:[#allocation25_spill] sm:$0xff]  ;;  %v9211_v39 = vor.u32 %v10431_v27, %v9210_v7 }
 0x29d   :  { %v4453_v57 = vadd.f32 %v11312_v35, %v4439_v38  ;;  %v10495_v15 = vld [vmem:[#allocation9 + $0x2ac] sm:$0xf0]  ;;  %v9178_v40 = vld [vmem:[#allocation9 + $0x60] sm:$0xf]  ;;  %v11319_v0 = vld [vmem:[#allocation28_spill] sm:$0xff] }
 0x29e   :  { %5188 = vmatpush.bf16.msrb.mxu2 %v8919_v46  ;;  %5202 = vmatpush.bf16.msrb.mxu3 %v9047_v50  ;;  %v8887_v46 = vor.u32 %v10346_v47, %v8884_v45  ;;  %v9015_v50 = vor.u32 %v10378_v33, %v9012_v24  ;;  %v10427_v49 = vld [vmem:[#allocation9 + $0x8c] sm:$0xf0]  ;;  %v9467_v48 = vor.u32 %v10495_v15, %v9466_v36  ;;  %v9450_v33 = vld [vmem:[#allocation9 + $0x280] sm:$0xf]  ;;  %v11320_v27 = vld [vmem:[#allocation30_spill] sm:$0xff] }
 0x29f   :  { %v4467_v20 = vadd.f32 %v11313_v13, %v4453_v57  ;;  %v10459_v25 = vld [vmem:[#allocation9 + $0x18c] sm:$0xf0]  ;;  %v9162_v57 = vld [vmem:[#allocation9 + $0x40] sm:$0xf] }
 0x2a0   :  { %5161 = vmatpush.bf16.msrb.mxu0 %v8647_v21  ;;  %5175 = vmatpush.bf16.msrb.mxu1 %v8775_v30  ;;  %v11171_v56 = vpop.f32.mrf.mxu2  ;;  %v4677_v21 = vadd.f32 %v11068_v59, %v4663_v8  ;;  %v9355_v30 = vor.u32 %v10467_v19, %v9354_v60  ;;  %v4885_v59 = vadd.f32 %v11149_v28, %v4871_v23  ;;  %v4900_v6 = vpop.f32.mrf.mxu1  ;;  %v11316_v28 = vld [vmem:[#allocation26_spill] sm:$0xff]  ;;  %v10491_v10 = vld [vmem:[#allocation9 + $0x28c] sm:$0xf0]  ;;  %v9306_v60 = vld [vmem:[#allocation9 + $0x160] sm:$0xf] }
 0x2a1   :  { %v4928_v38 = vpop.f32.mrf.mxu3  ;;  %v9323_v8 = vor.u32 %v10459_v25, %v9322_v32  ;;  %v10423_v12 = vld [vmem:[#allocation9 + $0x6c] sm:$0xf0]  ;;  %v9451_v19 = vor.u32 %v10491_v10, %v9450_v33  ;;  %v9290_v44 = vld [vmem:[#allocation9 + $0x140] sm:$0xf] }
 0x2a2   :  { %5189 = vmatpush.bf16.msrb.mxu2 %v8903_v43  ;;  %5203 = vmatpush.bf16.msrb.mxu3 %v9031_v29  ;;  %v4691_v51 = vadd.f32 %v11075_v9, %v4677_v21  ;;  %v4873_v43 = vadd.f32 %v11158_v63, %v4859_v22  ;;  %v11314_v29 = vld [vmem:[#allocation20_spill] sm:$0xff]  ;;  %v11315_v9 = vld [vmem:[#allocation21_spill] sm:$0xff]  ;;  %v4899_v11 = vadd.f32 %v11164_v41, %v4885_v59  ;;  %v11318_v63 = vld [vmem:[#allocation27_spill] sm:$0xff] }
 0x2a3   :  { %v10455_v41 = vld [vmem:[#allocation9 + $0x16c] sm:$0xf0]  ;;  %v9402_v25 = vld [vmem:[#allocation9 + $0x220] sm:$0xf] }
 0x2a4   :  { %5162 = vmatpush.bf16.msrb.mxu0 %v8631_v34  ;;  %5176 = vmatpush.bf16.msrb.mxu1 %v8759_v58  ;;  %v4481_v34 = vadd.f32 %v11316_v28, %v4467_v20  ;;  %v11317_v58 = vld [vmem:[#allocation33_spill] sm:$0xff]  ;;  %v4940_v45 = vpop.f32.mrf.mxu0  ;;  %v4913_v16 = vadd.f32 %v11171_v56, %v4899_v11  ;;  %v9307_v26 = vor.u32 %v10455_v41, %v9306_v60  ;;  %v9418_v20 = vld [vmem:[#allocation9 + $0x240] sm:$0xf]  ;;  %v10501_v41 = vld [vmem:[#allocation9 + $0x2e4] sm:$0xf] }
 0x2a5   :  { %v4705_v47 = vadd.f32 %v11317_v58, %v4691_v51  ;;  %v10487_v35 = vld [vmem:[#allocation9 + $0x26c] sm:$0xf0]  ;;  %v9130_v58 = vld [vmem:[#allocation9] sm:$0xf] }
 0x2a6   :  { %5190 = vmatpush.bf16.msrb.mxu2 %v8887_v46  ;;  %5204 = vmatpush.bf16.msrb.mxu3 %v9015_v50  ;;  %v4495_v24 = vadd.f32 %v11318_v63, %v4481_v34  ;;  %v9179_v46 = vor.u32 %v10423_v12, %v9178_v40  ;;  %v9434_v50 = vld [vmem:[#allocation9 + $0x260] sm:$0xf]  ;;  %v10419_v21 = vld [vmem:[#allocation9 + $0x4c] sm:$0xf0]  ;;  %v4927_v56 = vadd.f32 %v11173_v4, %v4913_v16 }
 0x2a7   :  { %5163 = vmatmul.bf16.vlgmr.msrb.gmra.mxu0 %v10952_v61  ;;  %5177 = vmatmul.bf16.vlgmr.msrb.gmra.mxu1 %v10954_v3  ;;  %v9339_v61 = vor.u32 %v10463_v5, %v9338_v1  ;;  %v9194_v3 = vld [vmem:[#allocation9 + $0x80] sm:$0xf]  ;;  %v4719_v14 = vadd.f32 %v11087_v54, %v4705_v47  ;;  %v10451_v7 = vld [vmem:[#allocation9 + $0x14c] sm:$0xf0]  ;;  %v9163_v13 = vor.u32 %v10419_v21, %v9162_v57  ;;  %v9356_v57 = vld [vmem:[#allocation9 + $0x1d0] sm:$0xf0] }
 0x2a8   :  { %6001 = vmatpush.bf16.msra.mxu0 %v9243_v17  ;;  %6015 = vmatpush.bf16.msra.mxu1 %v9371_v52  ;;  %v4887_v17 = vadd.f32 %v4886_v18, %v4873_v43  ;;  %v9195_v52 = vor.u32 %v10427_v49, %v9194_v3  ;;  %v4914_v31 = vpop.f32.mrf.mxu2  ;;  %v4941_v1 = vadd.f32 %v4940_v45, %v4927_v56  ;;  %v10483_v51 = vld [vmem:[#allocation9 + $0x24c] sm:$0xf0]  ;;  %v9146_v4 = vld [vmem:[#allocation9 + $0x20] sm:$0xf]  ;;  %v11323_v21 = vld [vmem:[#allocation34_spill] sm:$0xff] }
 0x2a9   :  { %5191 = vmatmul.bf16.vlgmr.msrb.gmra.mxu2 %v11314_v29  ;;  %5205 = vmatmul.bf16.vlgmr.msrb.gmra.mxu3 %v11315_v9  ;;  %v4733_v54 = vadd.f32 %v11091_v62, %v4719_v14  ;;  %v9435_v62 = vor.u32 %v10487_v35, %v9434_v50  ;;  %v10415_v36 = vld [vmem:[#allocation9 + $0x2c] sm:$0xf0]  ;;  %v11321_v3 = vld [vmem:[#allocation31_spill] sm:$0xff]  ;;  %v9419_v43 = vor.u32 %v10483_v51, %v9418_v20  ;;  %v9500_v50 = vld [vmem:[#allocation9 + $0x2f0] sm:$0xf0]  ;;  %v5212_v56 = vmax.f32 %v11323_v21, 0.0 }
 0x2aa   :  { %6029 = vmatpush.bf16.msra.mxu2 %v9499_v42  ;;  %v4901_v18 = vadd.f32 %v4900_v6, %v4887_v17  ;;  %v4509_v42 = vadd.f32 %v11319_v0, %v4495_v24  ;;  %v9274_v6 = vld [vmem:[#allocation9 + $0x120] sm:$0xf]  ;;  %v9147_v32 = vor.u32 %v10415_v36, %v9146_v4  ;;  %v10479_v28 = vld [vmem:[#allocation9 + $0x22c] sm:$0xf0]  ;;  %v10437_v17 = vld [vmem:[#allocation9 + $0xe4] sm:$0xf] }
 0x2ab   :  { %v4747_v22 = vadd.f32 %v11095_v2, %v4733_v54  ;;  %v10411_v47 = vld [vmem:[#allocation9 + $0xc] sm:$0xf0]  ;;  %v9258_v45 = vld [vmem:[#allocation9 + $0x100] sm:$0xf]  ;;  %v9372_v24 = vld [vmem:[#allocation9 + $0x1f0] sm:$0xf0] }
 0x2ac   :  { %6002 = vmatpush.bf16.msra.mxu0 %v9227_v53  ;;  %6016 = vmatpush.bf16.msra.mxu1 %v9355_v30  ;;  %v4954_v53 = vpop.f32.mrf.mxu1  ;;  %v4915_v30 = vadd.f32 %v4914_v31, %v4901_v18  ;;  %v4523_v23 = vadd.f32 %v11320_v27, %v4509_v42  ;;  %v4942_v5 = vpop.f32.mrf.mxu0  ;;  %v10443_v11 = vld [vmem:[#allocation9 + $0x10c] sm:$0xf0]  ;;  %v9386_v16 = vld [vmem:[#allocation9 + $0x200] sm:$0xf]  ;;  %v10433_v0 = vld [vmem:[#allocation9 + $0xc4] sm:$0xf]  ;;  %v9503_v27 = vor.u32 %v10501_v41, %v9500_v50 }
 0x2ad   :  { %v4761_v2 = vadd.f32 %v11097_v55, %v4747_v22  ;;  %v4955_v29 = vadd.f32 %v4954_v53, %v4941_v1  ;;  %v10469_v55 = vld [vmem:[#allocation9 + $0x1e4] sm:$0xf]  ;;  %v9259_v40 = vor.u32 %v10443_v11, %v9258_v45  ;;  %v10475_v60 = vld [vmem:[#allocation9 + $0x20c] sm:$0xf0]  ;;  %v9228_v42 = vld [vmem:[#allocation9 + $0xd0] sm:$0xf0] }
 0x2ae   :  { %6030 = vmatpush.bf16.msra.mxu2 %v9483_v37  ;;  %v4982_v37 = vpop.f32.mrf.mxu3  ;;  %v4929_v15 = vadd.f32 %v4928_v38, %v4915_v30  ;;  %v4537_v49 = vadd.f32 %v11321_v3, %v4523_v23  ;;  %v9403_v38 = vor.u32 %v10479_v28, %v9402_v25  ;;  %v11322_v54 = vld [vmem:[#allocation29_spill] sm:$0xff]  ;;  %v10465_v35 = vld [vmem:[#allocation9 + $0x1c4] sm:$0xf]  ;;  %v9231_v23 = vor.u32 %v10433_v0, %v9228_v42  ;;  %v10440_v21 = vld [vmem:[#allocation9 + $0xf4] sm:$0xf0] }
 0x2af   :  { %v5216_v14 = vmax.f32 %v4761_v2, 0.0  ;;  %v5211_v53 = vmax.f32 %v11322_v54, 0.0  ;;  %v10497_v22 = vld [vmem:[#allocation9 + $0x2c4] sm:$0xf]  ;;  %v9484_v1 = vld [vmem:[#allocation9 + $0x2d0] sm:$0xf0]  ;;  %v9359_v20 = vor.u32 %v10465_v35, %v9356_v57 }
 0x2b0   :  { %6003 = vmatpush.bf16.msra.mxu0 %v9211_v39  ;;  %6017 = vmatpush.bf16.msra.mxu1 %v9339_v61  ;;  %v4968_v59 = vpop.f32.mrf.mxu2  ;;  %v9291_v39 = vor.u32 %v10451_v7, %v9290_v44  ;;  %v10447_v61 = vld [vmem:[#allocation9 + $0x12c] sm:$0xf0]  ;;  %v4943_v9 = vadd.f32 %v4942_v5, %v4929_v15  ;;  %v5215_v33 = vmax.f32 %v4537_v49, 0.0  ;;  %v9387_v44 = vor.u32 %v10475_v60, %v9386_v16  ;;  %v10429_v51 = vld [vmem:[#allocation9 + $0xa4] sm:$0xf] }
 0x2b1   :  { %v9275_v34 = vor.u32 %v10447_v61, %v9274_v6  ;;  %v11205_v5 = vpack.c.bf16 %v5216_v14, %v5212_v56  ;;  %v9487_v36 = vor.u32 %v10497_v22, %v9484_v1  ;;  %v10493_v6 = vld [vmem:[#allocation9 + $0x2a4] sm:$0xf]  ;;  %v9468_v3 = vld [vmem:[#allocation9 + $0x2b0] sm:$0xf0]  ;;  %v9250_v57 = vld [vmem:[#allocation9 + $0xe8] sm:$0xf] }
 0x2b2   :  { %6031 = vmatpush.bf16.msra.mxu2 %v9467_v48  ;;  %v4969_v48 = vadd.f32 %v4968_v59, %v4955_v29  ;;  %v11203_v7 = vpack.c.bf16 %v5215_v33, %v5211_v53  ;;  %v9212_v59 = vld [vmem:[#allocation9 + $0xb0] sm:$0xf0]  ;;  %v10425_v49 = vld [vmem:[#allocation9 + $0x84] sm:$0xf]  ;;  %v9378_v56 = vld [vmem:[#allocation9 + $0x1e8] sm:$0xf]  ;;  %v9251_v22 = vor.u32 %v10440_v21, %v9250_v57 }
 0x2b3   :  { %v9215_v15 = vor.u32 %v10429_v51, %v9212_v59  ;;  %v9196_v2 = vld [vmem:[#allocation9 + $0x90] sm:$0xf0]  ;;  %v10489_v25 = vld [vmem:[#allocation9 + $0x284] sm:$0xf]  ;;  %v10504_v51 = vld [vmem:[#allocation9 + $0x2f4] sm:$0xf0] }
 0x2b4   :  { %6004 = vmatpush.bf16.msra.mxu0 %v9195_v52  ;;  %6018 = vmatpush.bf16.msra.mxu1 %v9323_v8  ;;  %v9244_v52 = vld [vmem:[#allocation9 + $0xf0] sm:$0xf0]  ;;  %v4956_v63 = vpop.f32.mrf.mxu1  ;;  %v9131_v8 = vor.u32 %v10411_v47, %v9130_v58  ;;  %v4983_v18 = vadd.f32 %v4982_v37, %v4969_v48  ;;  %v10461_v37 = vld [vmem:[#allocation9 + $0x1a4] sm:$0xf]  ;;  %v9234_v59 = vld [vmem:[#allocation9 + $0xc8] sm:$0xf] }
 0x2b5   :  { %v4957_v31 = vadd.f32 %v4956_v63, %v4943_v9  ;;  %v9247_v12 = vor.u32 %v10437_v17, %v9244_v52  ;;  %v9324_v29 = vld [vmem:[#allocation9 + $0x190] sm:$0xf0]  ;;  %v9471_v9 = vor.u32 %v10493_v6, %v9468_v3  ;;  %v10421_v58 = vld [vmem:[#allocation9 + $0x64] sm:$0xf]  ;;  %v9490_v3 = vld [vmem:[#allocation9 + $0x2c8] sm:$0xf] }
 0x2b6   :  { %6032 = vmatpush.bf16.msra.mxu2 %v9451_v19  ;;  %v9180_v47 = vld [vmem:[#allocation9 + $0x70] sm:$0xf0]  ;;  %v10453_v45 = vld [vmem:[#allocation9 + $0x164] sm:$0xf]  ;;  %v9298_v21 = vld [vmem:[#allocation9 + $0x148] sm:$0xf] }
 0x2b7   :  { %v9308_v48 = vld [vmem:[#allocation9 + $0x170] sm:$0xf0]  ;;  %v9183_v17 = vor.u32 %v10421_v58, %v9180_v47  ;;  %v10485_v52 = vld [vmem:[#allocation9 + $0x264] sm:$0xf]  ;;  %v9474_v47 = vld [vmem:[#allocation9 + $0x2a8] sm:$0xf] }
 0x2b8   :  { %6005 = vmatpush.bf16.msra.mxu0 %v9179_v46  ;;  %6019 = vmatpush.bf16.msra.mxu1 %v9307_v26  ;;  %v4970_v10 = vpop.f32.mrf.mxu2  ;;  %v9375_v46 = vor.u32 %v10469_v55, %v9372_v24  ;;  %v4984_v26 = vpop.f32.mrf.mxu3  ;;  %v9311_v33 = vor.u32 %v10453_v45, %v9308_v48  ;;  %v9436_v63 = vld [vmem:[#allocation9 + $0x270] sm:$0xf0]  ;;  %v10417_v55 = vld [vmem:[#allocation9 + $0x44] sm:$0xf] }
 0x2b9   :  { %v4971_v19 = vadd.f32 %v4970_v10, %v4957_v31  ;;  %v9164_v24 = vld [vmem:[#allocation9 + $0x50] sm:$0xf0]  ;;  %v10449_v14 = vld [vmem:[#allocation9 + $0x144] sm:$0xf] }
 0x2ba   :  { %6033 = vmatpush.bf16.msra.mxu2 %v9435_v62  ;;  %v5213_v62 = vmax.f32 %v4983_v18, 0.0  ;;  %v9292_v31 = vld [vmem:[#allocation9 + $0x150] sm:$0xf0]  ;;  %v10481_v10 = vld [vmem:[#allocation9 + $0x244] sm:$0xf] }
 0x2bb   :  { %v4985_v30 = vadd.f32 %v4984_v26, %v4971_v19  ;;  %v10413_v16 = vld [vmem:[#allocation9 + $0x24] sm:$0xf]  ;;  %v9148_v60 = vld [vmem:[#allocation9 + $0x30] sm:$0xf0] }
 0x2bc   :  { %6006 = vmatpush.bf16.msra.mxu0 %v9163_v13  ;;  %6020 = vmatpush.bf16.msra.mxu1 %v9291_v39  ;;  %v9340_v39 = vld [vmem:[#allocation9 + $0x1b0] sm:$0xf0]  ;;  %v10445_v41 = vld [vmem:[#allocation9 + $0x124] sm:$0xf] }
 0x2bd   :  { %v5217_v13 = vmax.f32 %v4985_v30, 0.0  ;;  %v9343_v61 = vor.u32 %v10461_v37, %v9340_v39  ;;  %v9276_v18 = vld [vmem:[#allocation9 + $0x130] sm:$0xf0]  ;;  %v10477_v50 = vld [vmem:[#allocation9 + $0x224] sm:$0xf] }
 0x2be   :  { %6034 = vmatpush.bf16.msra.mxu2 %v9419_v43  ;;  %v10457_v43 = vld [vmem:[#allocation9 + $0x184] sm:$0xf]  ;;  %v9404_v0 = vld [vmem:[#allocation9 + $0x230] sm:$0xf0]  ;;  %v9279_v42 = vor.u32 %v10445_v41, %v9276_v18  ;;  %v10472_v30 = vld [vmem:[#allocation9 + $0x1f4] sm:$0xf0] }
 0x2bf   :  { %v11208_v4 = vpack.c.bf16 %v5217_v13, %v5213_v62  ;;  %v9327_v28 = vor.u32 %v10457_v43, %v9324_v29  ;;  %v10409_v54 = vld [vmem:[#allocation9 + $0x4] sm:$0xf]  ;;  %v9132_v53 = vld [vmem:[#allocation9 + $0x10] sm:$0xf0]  ;;  %v9506_v13 = vld [vmem:[#allocation9 + $0x2e8] sm:$0xf] }
 0x2c0   :  { %6007 = vmatpush.bf16.msra.mxu0 %v9147_v32  ;;  %6021 = vmatpush.bf16.msra.mxu1 %v9275_v34  ;;  %v9199_v32 = vor.u32 %v10425_v49, %v9196_v2  ;;  %v9452_v34 = vld [vmem:[#allocation9 + $0x290] sm:$0xf0]  ;;  %v10441_v26 = vld [vmem:[#allocation9 + $0x104] sm:$0xf]  ;;  %v10436_v37 = vld [vmem:[#allocation9 + $0xd4] sm:$0xf0]  ;;  %v9507_v6 = vor.u32 %v10504_v51, %v9506_v13 }
 0x2c1   :  { %v9455_v11 = vor.u32 %v10489_v25, %v9452_v34  ;;  %v9260_v35 = vld [vmem:[#allocation9 + $0x110] sm:$0xf0]  ;;  %v10473_v1 = vld [vmem:[#allocation9 + $0x204] sm:$0xf]  ;;  %v9362_v39 = vld [vmem:[#allocation9 + $0x1c8] sm:$0xf] }
 0x2c2   :  { %6035 = vmatpush.bf16.msra.mxu2 %v9403_v38  ;;  %v9439_v38 = vor.u32 %v10485_v52, %v9436_v63  ;;  %v9388_v62 = vld [vmem:[#allocation9 + $0x210] sm:$0xf0]  ;;  %v10500_v2 = vld [vmem:[#allocation9 + $0x2d4] sm:$0xf0]  ;;  %v9218_v43 = vld [vmem:[#allocation9 + $0xa8] sm:$0xf] }
 0x2c3   :  { %v10432_v29 = vld [vmem:[#allocation9 + $0xb4] sm:$0xf0]  ;;  %v9626_v25 = vld [vmem:[#allocation9 + $0x3e0] sm:$0xf]  ;;  %v9491_v34 = vor.u32 %v10500_v2, %v9490_v3 }
 0x2c4   :  { %6008 = vmatpush.bf16.msra.mxu0 %v9131_v8  ;;  %6022 = vmatpush.bf16.msra.mxu1 %v9259_v40  ;;  %v9167_v8 = vor.u32 %v10417_v55, %v9164_v24  ;;  %v9295_v40 = vor.u32 %v10449_v14, %v9292_v31  ;;  %v9219_v58 = vor.u32 %v10432_v29, %v9218_v43  ;;  %v10428_v52 = vld [vmem:[#allocation9 + $0x94] sm:$0xf0]  ;;  %v9610_v55 = vld [vmem:[#allocation9 + $0x3c0] sm:$0xf]  ;;  %v10531_v24 = vld [vmem:[#allocation9 + $0x3cc] sm:$0xf0]  ;;  %v11215_v57 = vpop.f32.mrf.mxu0  ;;  %v11217_v43 = vpop.f32.mrf.mxu1 }
 0x2c5   :  { %v10460_v63 = vld [vmem:[#allocation9 + $0x194] sm:$0xf0]  ;;  %v9594_v18 = vld [vmem:[#allocation9 + $0x3a0] sm:$0xf] }
 0x2c6   :  { %6036 = vmatpush.bf16.msra.mxu2 %v9387_v44  ;;  %v9407_v44 = vor.u32 %v10477_v50, %v9404_v0  ;;  %v10456_v41 = vld [vmem:[#allocation9 + $0x174] sm:$0xf0]  ;;  %v9442_v0 = vld [vmem:[#allocation9 + $0x268] sm:$0xf] }
 0x2c7   :  { %6009 = vmatmul.bf16.vlgmr.msra.gmra.mxu0 %v11203_v7  ;;  %6023 = vmatmul.bf16.vlgmr.msra.gmra.mxu1 %v11205_v5  ;;  %v10484_v13 = vld [vmem:[#allocation9 + $0x254] sm:$0xf0] }
 0x2c8   :  { %6057 = vmatpush.bf16.msrb.mxu0 %v9247_v12  ;;  %6071 = vmatpush.bf16.msrb.mxu1 %v9375_v46  ;;  %v9420_v12 = vld [vmem:[#allocation9 + $0x250] sm:$0xf0]  ;;  %v9151_v46 = vor.u32 %v10413_v16, %v9148_v60  ;;  %v10424_v16 = vld [vmem:[#allocation9 + $0x74] sm:$0xf0]  ;;  %v9314_v60 = vld [vmem:[#allocation9 + $0x168] sm:$0xf] }
 0x2c9   :  { %6037 = vmatmul.bf16.vlgmr.msra.gmra.mxu2 %v11208_v4  ;;  %v9423_v19 = vor.u32 %v10481_v10, %v9420_v12  ;;  %v9186_v12 = vld [vmem:[#allocation9 + $0x68] sm:$0xf]  ;;  %v10416_v51 = vld [vmem:[#allocation9 + $0x34] sm:$0xf0] }
 0x2ca   :  { %6085 = vmatpush.bf16.msrb.mxu2 %v9503_v27  ;;  %v9135_v27 = vor.u32 %v10409_v54, %v9132_v53  ;;  %v9187_v50 = vor.u32 %v10424_v16, %v9186_v12  ;;  %v9315_v54 = vor.u32 %v10456_v41, %v9314_v60  ;;  %v10488_v53 = vld [vmem:[#allocation9 + $0x274] sm:$0xf0]  ;;  %v10434_v12 = vld [vmem:[#allocation9 + $0xcc] sm:$0xf]  ;;  %v9236_v16 = vld [vmem:[#allocation9 + $0xd8] sm:$0xf0] }
 0x2cb   :  { %v10480_v3 = vld [vmem:[#allocation9 + $0x234] sm:$0xf0]  ;;  %v10466_v60 = vld [vmem:[#allocation9 + $0x1cc] sm:$0xf]  ;;  %v9364_v41 = vld [vmem:[#allocation9 + $0x1d8] sm:$0xf0] }
 0x2cc   :  { %6058 = vmatpush.bf16.msrb.mxu0 %v9231_v23  ;;  %6072 = vmatpush.bf16.msrb.mxu1 %v9359_v20  ;;  %v9263_v23 = vor.u32 %v10441_v26, %v9260_v35  ;;  %v9379_v20 = vor.u32 %v10472_v30, %v9378_v56  ;;  %v9170_v26 = vld [vmem:[#allocation9 + $0x48] sm:$0xf]  ;;  %v10420_v35 = vld [vmem:[#allocation9 + $0x54] sm:$0xf0]  ;;  %v9578_v30 = vld [vmem:[#allocation9 + $0x380] sm:$0xf] }
 0x2cd   :  { %v10452_v56 = vld [vmem:[#allocation9 + $0x154] sm:$0xf0] }
 0x2ce   :  { %6086 = vmatpush.bf16.msrb.mxu2 %v9487_v36  ;;  %v10468_v36 = vld [vmem:[#allocation9 + $0x1d4] sm:$0xf0] }
 0x2cf   :  { %v9363_v49 = vor.u32 %v10468_v36, %v9362_v39  ;;  %v9562_v39 = vld [vmem:[#allocation9 + $0x360] sm:$0xf]  ;;  %v10519_v36 = vld [vmem:[#allocation9 + $0x36c] sm:$0xf0] }
 0x2d0   :  { %6059 = vmatpush.bf16.msrb.mxu0 %v9215_v15  ;;  %6073 = vmatpush.bf16.msrb.mxu1 %v9343_v61  ;;  %v9391_v15 = vor.u32 %v10473_v1, %v9388_v62  ;;  %v9235_v61 = vor.u32 %v10436_v37, %v9234_v59  ;;  %v9299_v62 = vor.u32 %v10452_v56, %v9298_v21  ;;  %v9282_v59 = vld [vmem:[#allocation9 + $0x128] sm:$0xf]  ;;  %v10448_v37 = vld [vmem:[#allocation9 + $0x134] sm:$0xf0]  ;;  %v9220_v21 = vld [vmem:[#allocation9 + $0xb8] sm:$0xf0] }
 0x2d1   :  { %v9563_v2 = vor.u32 %v10519_v36, %v9562_v39  ;;  %v9283_v29 = vor.u32 %v10448_v37, %v9282_v59  ;;  %v10462_v56 = vld [vmem:[#allocation9 + $0x1ac] sm:$0xf]  ;;  %v9476_v36 = vld [vmem:[#allocation9 + $0x2b8] sm:$0xf0] }
 0x2d2   :  { %6087 = vmatpush.bf16.msrb.mxu2 %v9471_v9  ;;  %v9346_v9 = vld [vmem:[#allocation9 + $0x1a8] sm:$0xf]  ;;  %v10494_v59 = vld [vmem:[#allocation9 + $0x2ac] sm:$0xf] }
 0x2d4   :  { %6060 = vmatpush.bf16.msrb.mxu0 %v9199_v32  ;;  %6074 = vmatpush.bf16.msrb.mxu1 %v9327_v28  ;;  %v10464_v32 = vld [vmem:[#allocation9 + $0x1b4] sm:$0xf0]  ;;  %v10535_v28 = vld [vmem:[#allocation9 + $0x3ec] sm:$0xf0] }
 0x2d5   :  { %v9627_v45 = vor.u32 %v10535_v28, %v9626_v25  ;;  %v9347_v48 = vor.u32 %v10464_v32, %v9346_v9  ;;  %v10412_v9 = vld [vmem:[#allocation9 + $0x14] sm:$0xf0]  ;;  %v9266_v32 = vld [vmem:[#allocation9 + $0x108] sm:$0xf]  ;;  %v10438_v28 = vld [vmem:[#allocation9 + $0xec] sm:$0xf] }
 0x2d6   :  { %6088 = vmatpush.bf16.msrb.mxu2 %v9455_v11  ;;  %v10496_v11 = vld [vmem:[#allocation9 + $0x2b4] sm:$0xf0] }
 0x2d7   :  { %6043 = vmatpush.bf16.msra.mxu3 %v9627_v45  ;;  %v9475_v14 = vor.u32 %v10496_v11, %v9474_v47  ;;  %v10444_v25 = vld [vmem:[#allocation9 + $0x114] sm:$0xf0]  ;;  %v9380_v47 = vld [vmem:[#allocation9 + $0x1f8] sm:$0xf0]  ;;  %v9546_v45 = vld [vmem:[#allocation9 + $0x340] sm:$0xf]  ;;  %v11219_v11 = vpop.f32.mrf.mxu0 }
 0x2d8   :  { %6061 = vmatpush.bf16.msrb.mxu0 %v9183_v17  ;;  %6075 = vmatpush.bf16.msrb.mxu1 %v9311_v33  ;;  %v9202_v17 = vld [vmem:[#allocation9 + $0x88] sm:$0xf] }
 0x2d9   :  { %v9330_v33 = vld [vmem:[#allocation9 + $0x188] sm:$0xf]  ;;  %v9203_v31 = vor.u32 %v10428_v52, %v9202_v17 }
 0x2da   :  { %6089 = vmatpush.bf16.msrb.mxu2 %v9439_v38  ;;  %v9458_v38 = vld [vmem:[#allocation9 + $0x288] sm:$0xf]  ;;  %v9331_v10 = vor.u32 %v10460_v63, %v9330_v33 }
 0x2db   :  { %v9394_v33 = vld [vmem:[#allocation9 + $0x208] sm:$0xf] }
 0x2dc   :  { %6062 = vmatpush.bf16.msrb.mxu0 %v9167_v8  ;;  %6076 = vmatpush.bf16.msrb.mxu1 %v9295_v40  ;;  %v9611_v8 = vor.u32 %v10531_v24, %v9610_v55  ;;  %v10492_v40 = vld [vmem:[#allocation9 + $0x294] sm:$0xf0]  ;;  %v11221_v55 = vpop.f32.mrf.mxu2  ;;  %v11223_v24 = vpop.f32.mrf.mxu3 }
 0x2de   :  { %6090 = vmatpush.bf16.msrb.mxu2 %v9423_v19  ;;  %6044 = vmatpush.bf16.msra.mxu3 %v9611_v8  ;;  %v10527_v19 = vld [vmem:[#allocation9 + $0x3ac] sm:$0xf0]  ;;  %v10502_v8 = vld [vmem:[#allocation9 + $0x2ec] sm:$0xf] }
 0x2e0   :  { %6063 = vmatpush.bf16.msrb.mxu0 %v9151_v46  ;;  %6077 = vmatpush.bf16.msrb.mxu1 %v9279_v42  ;;  %v9459_v46 = vor.u32 %v10492_v40, %v9458_v38  ;;  %v9595_v42 = vor.u32 %v10527_v19, %v9594_v18  ;;  %v10476_v38 = vld [vmem:[#allocation9 + $0x214] sm:$0xf0]  ;;  %v9530_v18 = vld [vmem:[#allocation9 + $0x320] sm:$0xf]  ;;  %v10511_v19 = vld [vmem:[#allocation9 + $0x32c] sm:$0xf0] }
 0x2e2   :  { %6091 = vmatpush.bf16.msrb.mxu2 %v9407_v44  ;;  %6045 = vmatpush.bf16.msra.mxu3 %v9595_v42  ;;  %v10523_v44 = vld [vmem:[#allocation9 + $0x38c] sm:$0xf0]  ;;  %v9239_v42 = vor.u32 %v10434_v12, %v9236_v16 }
 0x2e3   :  { %v9579_v1 = vor.u32 %v10523_v44, %v9578_v30  ;;  %v11225_v30 = vpop.f32.mrf.mxu1  ;;  %v9348_v44 = vld [vmem:[#allocation9 + $0x1b8] sm:$0xf0] }
 0x2e4   :  { %6064 = vmatpush.bf16.msrb.mxu0 %v9135_v27  ;;  %6078 = vmatpush.bf16.msrb.mxu1 %v9263_v23  ;;  %v9443_v27 = vor.u32 %v10488_v53, %v9442_v0  ;;  %v9171_v23 = vor.u32 %v10420_v35, %v9170_v26  ;;  %v9492_v53 = vld [vmem:[#allocation9 + $0x2d8] sm:$0xf0]  ;;  %v9367_v26 = vor.u32 %v10466_v60, %v9364_v41  ;;  %v10430_v35 = vld [vmem:[#allocation9 + $0xac] sm:$0xf] }
 0x2e5   :  { %v9351_v39 = vor.u32 %v10462_v56, %v9348_v44 }
 0x2e6   :  { %6092 = vmatpush.bf16.msrb.mxu2 %v9391_v15  ;;  %6046 = vmatpush.bf16.msra.mxu3 %v9579_v1 }
 0x2e7   :  { %6065 = vmatmul.bf16.vlgmr.msrb.gmra.mxu0 %v11203_v7  ;;  %6079 = vmatmul.bf16.vlgmr.msrb.gmra.mxu1 %v11205_v5 }
 0x2e8   :  { %6113 = vmatpush.bf16.msra.mxu0 %v9251_v22  ;;  %6127 = vmatpush.bf16.msra.mxu1 %v9379_v20  ;;  %v9426_v22 = vld [vmem:[#allocation9 + $0x248] sm:$0xf] }
 0x2e9   :  { %6093 = vmatmul.bf16.vlgmr.msrb.gmra.mxu2 %v11208_v4  ;;  %v9154_v20 = vld [vmem:[#allocation9 + $0x28] sm:$0xf]  ;;  %v9427_v15 = vor.u32 %v10484_v13, %v9426_v22  ;;  %v11228_v22 = vpop.f32.mrf.mxu0  ;;  %v9628_v13 = vld [vmem:[#allocation9 + $0x3f0] sm:$0xf0] }
 0x2ea   :  { %6141 = vmatpush.bf16.msra.mxu2 %v9507_v6  ;;  %v9155_v6 = vor.u32 %v10416_v51, %v9154_v20  ;;  %6047 = vmatpush.bf16.msra.mxu3 %v9563_v2  ;;  %v9223_v51 = vor.u32 %v10430_v35, %v9220_v21  ;;  %v9332_v2 = vld [vmem:[#allocation9 + $0x198] sm:$0xf0]  ;;  %v10482_v21 = vld [vmem:[#allocation9 + $0x24c] sm:$0xf] }
 0x2ec   :  { %6114 = vmatpush.bf16.msra.mxu0 %v9235_v61  ;;  %6128 = vmatpush.bf16.msra.mxu1 %v9363_v49  ;;  %v9410_v61 = vld [vmem:[#allocation9 + $0x228] sm:$0xf] }
 0x2ed   :  { %v9138_v49 = vld [vmem:[#allocation9 + $0x8] sm:$0xf]  ;;  %v9411_v17 = vor.u32 %v10480_v3, %v9410_v61  ;;  %v11231_v61 = vpop.f32.mrf.mxu2  ;;  %v11233_v3 = vpop.f32.mrf.mxu3 }
 0x2ee   :  { %6142 = vmatpush.bf16.msra.mxu2 %v9491_v34  ;;  %v9252_v34 = vld [vmem:[#allocation9 + $0xf8] sm:$0xf0]  ;;  %v9139_v52 = vor.u32 %v10412_v9, %v9138_v49  ;;  %v10458_v49 = vld [vmem:[#allocation9 + $0x18c] sm:$0xf]  ;;  %v9612_v9 = vld [vmem:[#allocation9 + $0x3d0] sm:$0xf0] }
 0x2f0   :  { %6115 = vmatpush.bf16.msra.mxu0 %v9219_v58  ;;  %6129 = vmatpush.bf16.msra.mxu1 %v9347_v48  ;;  %v10470_v58 = vld [vmem:[#allocation9 + $0x1ec] sm:$0xf]  ;;  %v10515_v48 = vld [vmem:[#allocation9 + $0x34c] sm:$0xf0] }
 0x2f1   :  { %v9547_v63 = vor.u32 %v10515_v48, %v9546_v45  ;;  %v9383_v40 = vor.u32 %v10470_v58, %v9380_v47  ;;  %v10490_v58 = vld [vmem:[#allocation9 + $0x28c] sm:$0xf]  ;;  %v9335_v45 = vor.u32 %v10458_v49, %v9332_v2  ;;  %v9460_v48 = vld [vmem:[#allocation9 + $0x298] sm:$0xf0]  ;;  %v11239_v60 = vpop.f32.mrf.mxu0 }
 0x2f2   :  { %6143 = vmatpush.bf16.msra.mxu2 %v9475_v14  ;;  %v9267_v14 = vor.u32 %v10444_v25, %v9266_v32  ;;  %v10585_v32 = vld [vmem:[#allocation7] sm:$0xf] }
 0x2f3   :  { %6048 = vmatpush.bf16.msra.mxu3 %v9547_v63  ;;  %v1750_v25 = vperm.slane %v10585_v32, 3  ;;  %v10454_v63 = vld [vmem:[#allocation9 + $0x16c] sm:$0xf] }
 0x2f4   :  { %6116 = vmatpush.bf16.msra.mxu0 %v9203_v31  ;;  %6130 = vmatpush.bf16.msra.mxu1 %v9331_v10  ;;  %v9255_v31 = vor.u32 %v10438_v28, %v9252_v34  ;;  %v9508_v10 = vld [vmem:[#allocation9 + $0x2f8] sm:$0xf0]  ;;  %v9479_v28 = vor.u32 %v10494_v59, %v9476_v36  ;;  %v10410_v32 = vld [vmem:[#allocation9 + $0xc] sm:$0xf] }
 0x2f5   :  { %v9511_v0 = vor.u32 %v10502_v8, %v9508_v10  ;;  %v9463_v8 = vor.u32 %v10490_v58, %v9460_v48  ;;  %v4997_v16 = vadd.f32 %v11215_v57, %v1750_v25 }
 0x2f6   :  { %6144 = vmatpush.bf16.msra.mxu2 %v9459_v46  ;;  %v9395_v46 = vor.u32 %v10476_v38, %v9394_v33  ;;  %v11236_v33 = vpop.f32.mrf.mxu1  ;;  %v9596_v38 = vld [vmem:[#allocation9 + $0x3b0] sm:$0xf0] }
 0x2f7   :  { %v5011_v44 = vadd.f32 %v11217_v43, %v4997_v16  ;;  %v10478_v43 = vld [vmem:[#allocation9 + $0x22c] sm:$0xf] }
 0x2f8   :  { %6117 = vmatpush.bf16.msra.mxu0 %v9187_v50  ;;  %6131 = vmatpush.bf16.msra.mxu1 %v9315_v54  ;;  %v9531_v50 = vor.u32 %v10511_v19, %v9530_v18  ;;  %v10498_v54 = vld [vmem:[#allocation9 + $0x2cc] sm:$0xf]  ;;  %v9444_v18 = vld [vmem:[#allocation9 + $0x278] sm:$0xf0] }
 0x2f9   :  { %v9495_v20 = vor.u32 %v10498_v54, %v9492_v53  ;;  %v10418_v19 = vld [vmem:[#allocation9 + $0x4c] sm:$0xf]  ;;  %v9300_v54 = vld [vmem:[#allocation9 + $0x158] sm:$0xf0]  ;;  %v10521_v53 = vld [vmem:[#allocation9 + $0x384] sm:$0xf]  ;;  %v5025_v59 = vadd.f32 %v11221_v55, %v5011_v44 }
 0x2fa   :  { %6145 = vmatpush.bf16.msra.mxu2 %v9443_v27  ;;  %6049 = vmatpush.bf16.msra.mxu3 %v9531_v50  ;;  %v9514_v27 = vld [vmem:[#allocation9 + $0x300] sm:$0xf]  ;;  %v11241_v50 = vpop.f32.mrf.mxu2 }
 0x2fb   :  { %v5039_v55 = vadd.f32 %v11223_v24, %v5025_v59 }
 0x2fc   :  { %6118 = vmatpush.bf16.msra.mxu0 %v9171_v23  ;;  %6132 = vmatpush.bf16.msra.mxu1 %v9299_v62  ;;  %v10507_v23 = vld [vmem:[#allocation9 + $0x30c] sm:$0xf0]  ;;  %v10533_v62 = vld [vmem:[#allocation9 + $0x3e4] sm:$0xf] }
 0x2fd   :  { %v9515_v1 = vor.u32 %v10507_v23, %v9514_v27  ;;  %v9631_v37 = vor.u32 %v10533_v62, %v9628_v13  ;;  %v4999_v27 = vadd.f32 %v11219_v11, %v1750_v25  ;;  %v10414_v62 = vld [vmem:[#allocation9 + $0x2c] sm:$0xf]  ;;  %v9156_v13 = vld [vmem:[#allocation9 + $0x38] sm:$0xf0] }
 0x2fe   :  { %6146 = vmatpush.bf16.msra.mxu2 %v9427_v15  ;;  %v10426_v15 = vld [vmem:[#allocation9 + $0x8c] sm:$0xf]  ;;  %v5068_v36 = vpop.f32.mrf.mxu1  ;;  %v9140_v25 = vld [vmem:[#allocation9 + $0x18] sm:$0xf0] }
 0x2ff   :  { %6050 = vmatpush.bf16.msra.mxu3 %v9515_v1  ;;  %v9428_v1 = vld [vmem:[#allocation9 + $0x258] sm:$0xf0]  ;;  %v5013_v11 = vadd.f32 %v11225_v30, %v4999_v27 }
 0x300   :  { %6119 = vmatpush.bf16.msra.mxu0 %v9155_v6  ;;  %6133 = vmatpush.bf16.msra.mxu1 %v9283_v29  ;;  %v9204_v6 = vld [vmem:[#allocation9 + $0x98] sm:$0xf0]  ;;  %v10529_v29 = vld [vmem:[#allocation9 + $0x3c4] sm:$0xf] }
 0x301   :  { %v9207_v34 = vor.u32 %v10426_v15, %v9204_v6  ;;  %v9615_v47 = vor.u32 %v10529_v29, %v9612_v9  ;;  %v9431_v15 = vor.u32 %v10482_v21, %v9428_v1  ;;  %v9159_v6 = vor.u32 %v10414_v62, %v9156_v13  ;;  %v9412_v9 = vld [vmem:[#allocation9 + $0x238] sm:$0xf0] }
 0x302   :  { %6147 = vmatpush.bf16.msra.mxu2 %v9411_v17  ;;  %v10422_v17 = vld [vmem:[#allocation9 + $0x6c] sm:$0xf]  ;;  %v5027_v58 = vadd.f32 %v11231_v61, %v5013_v11  ;;  %v5082_v48 = vpop.f32.mrf.mxu2  ;;  %v9415_v30 = vor.u32 %v10478_v43, %v9412_v9  ;;  %v9532_v61 = vld [vmem:[#allocation9 + $0x330] sm:$0xf0]  ;;  %v9634_v9 = vld [vmem:[#allocation9 + $0x3e8] sm:$0xf] }
 0x303   :  { %6099 = vmatpush.bf16.msrb.mxu3 %v9631_v37  ;;  %v10517_v37 = vld [vmem:[#allocation9 + $0x364] sm:$0xf] }
 0x304   :  { %6120 = vmatpush.bf16.msra.mxu0 %v9139_v52  ;;  %6134 = vmatpush.bf16.msra.mxu1 %v9267_v14  ;;  %v9188_v52 = vld [vmem:[#allocation9 + $0x78] sm:$0xf0]  ;;  %v5108_v2 = vpop.f32.mrf.mxu0  ;;  %v5041_v24 = vadd.f32 %v11233_v3, %v5027_v58  ;;  %v9516_v3 = vld [vmem:[#allocation9 + $0x310] sm:$0xf0]  ;;  %v9618_v58 = vld [vmem:[#allocation9 + $0x3c8] sm:$0xf] }
 0x305   :  { %v9316_v14 = vld [vmem:[#allocation9 + $0x178] sm:$0xf0]  ;;  %v9191_v10 = vor.u32 %v10422_v17, %v9188_v52  ;;  %v9143_v52 = vor.u32 %v10410_v32, %v9140_v25  ;;  %v10536_v32 = vld [vmem:[#allocation9 + $0x3f4] sm:$0xf0] }
 0x306   :  { %6148 = vmatpush.bf16.msra.mxu2 %v9395_v46  ;;  %v9319_v41 = vor.u32 %v10454_v63, %v9316_v14  ;;  %v9172_v46 = vld [vmem:[#allocation9 + $0x58] sm:$0xf0]  ;;  %v5053_v14 = vadd.f32 %v11228_v22, %v5039_v55 }
 0x307   :  { %6121 = vmatmul.bf16.vlgmr.msra.gmra.mxu0 %v11203_v7  ;;  %6135 = vmatmul.bf16.vlgmr.msra.gmra.mxu1 %v11205_v5  ;;  %v9175_v57 = vor.u32 %v10418_v19, %v9172_v46  ;;  %v10505_v46 = vld [vmem:[#allocation9 + $0x304] sm:$0xf] }
 0x308   :  { %6169 = vmatpush.bf16.msrb.mxu0 %v9255_v31  ;;  %6183 = vmatpush.bf16.msrb.mxu1 %v9383_v40  ;;  %v10525_v31 = vld [vmem:[#allocation9 + $0x3a4] sm:$0xf]  ;;  %v10486_v40 = vld [vmem:[#allocation9 + $0x26c] sm:$0xf] }
 0x309   :  { %6149 = vmatmul.bf16.vlgmr.msra.gmra.mxu2 %v11208_v4  ;;  %6100 = vmatpush.bf16.msrb.mxu3 %v9615_v47  ;;  %v9599_v12 = vor.u32 %v10525_v31, %v9596_v38  ;;  %v9447_v35 = vor.u32 %v10486_v40, %v9444_v18  ;;  %v10513_v47 = vld [vmem:[#allocation9 + $0x344] sm:$0xf]  ;;  %v10474_v38 = vld [vmem:[#allocation9 + $0x20c] sm:$0xf]  ;;  %v5122_v40 = vpop.f32.mrf.mxu1  ;;  %v5055_v18 = vadd.f32 %v11239_v60, %v5041_v24  ;;  %v9554_v24 = vld [vmem:[#allocation9 + $0x348] sm:$0xf] }
 0x30a   :  { %6197 = vmatpush.bf16.msrb.mxu2 %v9511_v0  ;;  %v11243_v0 = vpop.f32.mrf.mxu3 }
 0x30c   :  { %6170 = vmatpush.bf16.msrb.mxu0 %v9239_v42  ;;  %6184 = vmatpush.bf16.msrb.mxu1 %v9367_v26  ;;  %v10450_v42 = vld [vmem:[#allocation9 + $0x14c] sm:$0xf]  ;;  %v9580_v26 = vld [vmem:[#allocation9 + $0x390] sm:$0xf0]  ;;  %v5110_v19 = vpop.f32.mrf.mxu0 }
 0x30d   :  { %6101 = vmatpush.bf16.msrb.mxu3 %v9599_v12  ;;  %v9583_v56 = vor.u32 %v10521_v53, %v9580_v26  ;;  %v9303_v23 = vor.u32 %v10450_v42, %v9300_v54  ;;  %v5136_v42 = vpop.f32.mrf.mxu2  ;;  %v9519_v53 = vor.u32 %v10505_v46, %v9516_v3  ;;  %v5069_v26 = vadd.f32 %v5068_v36, %v5055_v18  ;;  %v10508_v18 = vld [vmem:[#allocation9 + $0x314] sm:$0xf0] }
 0x30e   :  { %6198 = vmatpush.bf16.msrb.mxu2 %v9495_v20  ;;  %v10446_v20 = vld [vmem:[#allocation9 + $0x12c] sm:$0xf] }
 0x30f   :  { %v5083_v60 = vadd.f32 %v5082_v48, %v5069_v26  ;;  %v9602_v48 = vld [vmem:[#allocation9 + $0x3a8] sm:$0xf]  ;;  %v10526_v26 = vld [vmem:[#allocation9 + $0x3ac] sm:$0xf] }
 0x310   :  { %6171 = vmatpush.bf16.msrb.mxu0 %v9223_v51  ;;  %6185 = vmatpush.bf16.msrb.mxu1 %v9351_v39  ;;  %v9284_v51 = vld [vmem:[#allocation9 + $0x138] sm:$0xf0]  ;;  %v9564_v39 = vld [vmem:[#allocation9 + $0x370] sm:$0xf0] }
 0x311   :  { %6102 = vmatpush.bf16.msrb.mxu3 %v9583_v56  ;;  %v9567_v49 = vor.u32 %v10517_v37, %v9564_v39  ;;  %v9287_v29 = vor.u32 %v10446_v20, %v9284_v51 }
 0x312   :  { %6199 = vmatpush.bf16.msrb.mxu2 %v9479_v28  ;;  %v10442_v28 = vld [vmem:[#allocation9 + $0x10c] sm:$0xf]  ;;  %v5096_v17 = vpop.f32.mrf.mxu3 }
 0x314   :  { %6172 = vmatpush.bf16.msrb.mxu0 %v9207_v34  ;;  %6186 = vmatpush.bf16.msrb.mxu1 %v9335_v45  ;;  %v9268_v34 = vld [vmem:[#allocation9 + $0x118] sm:$0xf0]  ;;  %v9548_v45 = vld [vmem:[#allocation9 + $0x350] sm:$0xf0] }
 0x315   :  { %6103 = vmatpush.bf16.msrb.mxu3 %v9567_v49  ;;  %v9551_v63 = vor.u32 %v10513_v47, %v9548_v45  ;;  %v9271_v31 = vor.u32 %v10442_v28, %v9268_v34  ;;  %v5138_v44 = vpop.f32.mrf.mxu2  ;;  %v9635_v34 = vor.u32 %v10536_v32, %v9634_v9  ;;  %v10532_v47 = vld [vmem:[#allocation9 + $0x3d4] sm:$0xf0]  ;;  %v10560_v9 = vld [vmem:[#allocation12 + $0xb8] sm:$0xff] }
 0x316   :  { %6200 = vmatpush.bf16.msrb.mxu2 %v9463_v8  ;;  %v9396_v8 = vld [vmem:[#allocation9 + $0x218] sm:$0xf0]  ;;  %v9619_v45 = vor.u32 %v10532_v47, %v9618_v58  ;;  %v10546_v58 = vld [vmem:[#allocation12 + $0x48] sm:$0xff] }
 0x317   :  { %v9399_v12 = vor.u32 %v10474_v38, %v9396_v8  ;;  %v10520_v38 = vld [vmem:[#allocation9 + $0x374] sm:$0xf0]  ;;  %v10558_v47 = vld [vmem:[#allocation12 + $0xa8] sm:$0xff] }
 0x318   :  { %6173 = vmatpush.bf16.msrb.mxu0 %v9191_v10  ;;  %6187 = vmatpush.bf16.msrb.mxu1 %v9319_v41  ;;  %v10509_v10 = vld [vmem:[#allocation9 + $0x324] sm:$0xf]  ;;  %v5067_v41 = vadd.f32 %v11236_v33, %v5053_v14 }
 0x319   :  { %6104 = vmatpush.bf16.msrb.mxu3 %v9551_v63  ;;  %v9535_v16 = vor.u32 %v10509_v10, %v9532_v61  ;;  %v10524_v63 = vld [vmem:[#allocation9 + $0x394] sm:$0xf0] }
 0x31a   :  { %6201 = vmatpush.bf16.msrb.mxu2 %v9447_v35  ;;  %v5081_v22 = vadd.f32 %v11241_v50, %v5067_v41  ;;  %v5150_v54 = vpop.f32.mrf.mxu3  ;;  %v5124_v50 = vpop.f32.mrf.mxu1  ;;  %v10516_v10 = vld [vmem:[#allocation9 + $0x354] sm:$0xf0]  ;;  %v9522_v41 = vld [vmem:[#allocation9 + $0x308] sm:$0xf] }
 0x31b   :  { %v9555_v61 = vor.u32 %v10516_v10, %v9554_v24  ;;  %v9523_v46 = vor.u32 %v10508_v18, %v9522_v41 }
 0x31c   :  { %6174 = vmatpush.bf16.msrb.mxu0 %v9175_v57  ;;  %6188 = vmatpush.bf16.msrb.mxu1 %v9303_v23  ;;  %v5095_v33 = vadd.f32 %v11243_v0, %v5081_v22  ;;  %v5097_v57 = vadd.f32 %v5096_v17, %v5083_v60  ;;  %v10528_v17 = vld [vmem:[#allocation9 + $0x3b4] sm:$0xf0]  ;;  %v10534_v22 = vld [vmem:[#allocation9 + $0x3ec] sm:$0xf] }
 0x31d   :  { %6105 = vmatpush.bf16.msrb.mxu3 %v9535_v16 }
 0x31e   :  { %6202 = vmatpush.bf16.msrb.mxu2 %v9431_v15  ;;  %v5109_v35 = vadd.f32 %v5108_v2, %v5095_v33  ;;  %v5111_v56 = vadd.f32 %v5110_v19, %v5097_v57  ;;  %v9636_v19 = vld [vmem:[#allocation9 + $0x3f8] sm:$0xf0] }
 0x31f   :  { %v9639_v3 = vor.u32 %v10534_v22, %v9636_v19  ;;  %v9604_v33 = vld [vmem:[#allocation9 + $0x3b8] sm:$0xf0]  ;;  %v10554_v19 = vld [vmem:[#allocation12 + $0x88] sm:$0xff] }
 0x320   :  { %6175 = vmatpush.bf16.msrb.mxu0 %v9159_v6  ;;  %6189 = vmatpush.bf16.msrb.mxu1 %v9287_v29  ;;  %v5125_v1 = vadd.f32 %v5124_v50, %v5111_v56  ;;  %v9607_v60 = vor.u32 %v10526_v26, %v9604_v33  ;;  %v9588_v50 = vld [vmem:[#allocation9 + $0x398] sm:$0xf0]  ;;  %v10553_v33 = vld [vmem:[#allocation12 + $0x80] sm:$0xff] }
 0x321   :  { %6106 = vmatpush.bf16.msrb.mxu3 %v9519_v53 }
 0x322   :  { %6203 = vmatpush.bf16.msrb.mxu2 %v9415_v30  ;;  %v5152_v27 = vpop.f32.mrf.mxu3  ;;  %v5139_v13 = vadd.f32 %v5138_v44, %v5125_v1  ;;  %v9603_v30 = vor.u32 %v10528_v17, %v9602_v48  ;;  %v10514_v44 = vld [vmem:[#allocation9 + $0x34c] sm:$0xf] }
 0x323   :  { %v10510_v1 = vld [vmem:[#allocation9 + $0x32c] sm:$0xf] }
 0x324   :  { %6176 = vmatpush.bf16.msrb.mxu0 %v9143_v52  ;;  %6190 = vmatpush.bf16.msrb.mxu1 %v9271_v31  ;;  %v5164_v21 = vpop.f32.mrf.mxu0  ;;  %v5153_v37 = vadd.f32 %v5152_v27, %v5139_v13  ;;  %v9586_v52 = vld [vmem:[#allocation9 + $0x388] sm:$0xf]  ;;  %v9556_v27 = vld [vmem:[#allocation9 + $0x358] sm:$0xf0]  ;;  %v10506_v13 = vld [vmem:[#allocation9 + $0x30c] sm:$0xf] }
 0x325   :  { %v9587_v14 = vor.u32 %v10524_v63, %v9586_v52  ;;  %v9570_v31 = vld [vmem:[#allocation9 + $0x368] sm:$0xf] }
 0x326   :  { %6204 = vmatpush.bf16.msrb.mxu2 %v9399_v12  ;;  %v9571_v8 = vor.u32 %v10520_v38, %v9570_v31  ;;  %v10512_v12 = vld [vmem:[#allocation9 + $0x334] sm:$0xf0]  ;;  %v10557_v52 = vld [vmem:[#allocation12 + $0xa0] sm:$0xff]  ;;  %v10556_v31 = vld [vmem:[#allocation12 + $0x98] sm:$0xff] }
 0x327   :  { %6177 = vmatmul.bf16.vlgmr.msrb.gmra.mxu0 %v11203_v7  ;;  %6191 = vmatmul.bf16.vlgmr.msrb.gmra.mxu1 %v11205_v5  ;;  %v5123_v7 = vadd.f32 %v5122_v40, %v5109_v35  ;;  %v5178_v5 = vpop.f32.mrf.mxu1  ;;  %v9538_v40 = vld [vmem:[#allocation9 + $0x328] sm:$0xf]  ;;  %v10522_v35 = vld [vmem:[#allocation9 + $0x38c] sm:$0xf] }
 0x328   :  { %v9539_v16 = vor.u32 %v10512_v12, %v9538_v40  ;;  %v9591_v57 = vor.u32 %v10522_v35, %v9588_v50  ;;  %v10555_v40 = vld [vmem:[#allocation12 + $0x90] sm:$0xff] }
 0x329   :  { %6205 = vmatmul.bf16.vlgmr.msrb.gmra.mxu2 %v11208_v4  ;;  %v5137_v23 = vadd.f32 %v5136_v42, %v5123_v7  ;;  %v10530_v42 = vld [vmem:[#allocation9 + $0x3cc] sm:$0xf]  ;;  %v9572_v7 = vld [vmem:[#allocation9 + $0x378] sm:$0xf0] }
 0x32a   :  { %6525 = vmatpush.bf16.msra.mxu2 %v10560_v9 }
 0x32b   :  { %v5151_v62 = vadd.f32 %v5150_v54, %v5137_v23  ;;  %v9620_v54 = vld [vmem:[#allocation9 + $0x3d8] sm:$0xf0]  ;;  %v9559_v23 = vor.u32 %v10514_v44, %v9556_v27  ;;  %v10566_v44 = vld [vmem:[#allocation12 + $0xe8] sm:$0xff] }
 0x32c   :  { %v5166_v51 = vpop.f32.mrf.mxu0  ;;  %v5192_v59 = vpop.f32.mrf.mxu2  ;;  %v9623_v53 = vor.u32 %v10530_v42, %v9620_v54 }
 0x32d   :  { %v5165_v20 = vadd.f32 %v5164_v21, %v5151_v62  ;;  %v5206_v0 = vpop.f32.mrf.mxu3  ;;  %v5167_v4 = vadd.f32 %v5166_v51, %v5153_v37  ;;  %v10518_v21 = vld [vmem:[#allocation9 + $0x36c] sm:$0xf] }
 0x32e   :  { %v9575_v56 = vor.u32 %v10518_v21, %v9572_v7  ;;  %v10542_v37 = vld [vmem:[#allocation12 + $0x28] sm:$0xff]  ;;  %v10567_v21 = vld [vmem:[#allocation12 + $0xf0] sm:$0xff] }
 0x32f   :  { %v5179_v39 = vadd.f32 %v5178_v5, %v5165_v20  ;;  %v5180_v15 = vpop.f32.mrf.mxu1  ;;  %v9540_v5 = vld [vmem:[#allocation9 + $0x338] sm:$0xf0] }
 0x330   :  { %v5181_v6 = vadd.f32 %v5180_v15, %v5167_v4  ;;  %v9543_v62 = vor.u32 %v10510_v1, %v9540_v5  ;;  %v9524_v20 = vld [vmem:[#allocation9 + $0x318] sm:$0xf0]  ;;  %v10539_v15 = vld [vmem:[#allocation12 + $0x10] sm:$0xff] }
 0x331   :  { %v5193_v36 = vadd.f32 %v5192_v59, %v5179_v39  ;;  %v9527_v51 = vor.u32 %v10506_v13, %v9524_v20  ;;  %v10544_v59 = vld [vmem:[#allocation12 + $0x38] sm:$0xff]  ;;  %v10541_v39 = vld [vmem:[#allocation12 + $0x20] sm:$0xff] }
 0x332   :  { %6497 = vmatpush.bf16.msra.mxu0 %v10544_v59  ;;  %v10540_v4 = vld [vmem:[#allocation12 + $0x18] sm:$0xff]  ;;  %v10565_v20 = vld [vmem:[#allocation12 + $0xe0] sm:$0xff] }
 0x333   :  { %v5207_v49 = vadd.f32 %v5206_v0, %v5193_v36  ;;  %v10543_v0 = vld [vmem:[#allocation12 + $0x30] sm:$0xff]  ;;  %v10552_v36 = vld [vmem:[#allocation12 + $0x78] sm:$0xff] }
 0x334   :  { %v5194_v43 = vpop.f32.mrf.mxu2  ;;  %6511 = vmatpush.bf16.msra.mxu1 %v10552_v36 }
 0x335   :  { %v5195_v11 = vadd.f32 %v5194_v43, %v5181_v6  ;;  %v5208_v2 = vpop.f32.mrf.mxu3  ;;  %v5214_v25 = vmax.f32 %v5207_v49, 0.0  ;;  %v10551_v6 = vld [vmem:[#allocation12 + $0x70] sm:$0xff]  ;;  %v10538_v43 = vld [vmem:[#allocation12 + $0x8] sm:$0xff] }
 0x336   :  { %6498 = vmatpush.bf16.msra.mxu0 %v10543_v0  ;;  %v10550_v49 = vld [vmem:[#allocation12 + $0x68] sm:$0xff] }
 0x337   :  { %v5209_v29 = vadd.f32 %v5208_v2, %v5195_v11  ;;  %v10537_v11 = vld [vmem:[#allocation12] sm:$0xff] }
 0x338   :  { %6512 = vmatpush.bf16.msra.mxu1 %v10551_v6  ;;  %v10549_v2 = vld [vmem:[#allocation12 + $0x60] sm:$0xff] }
 0x339   :  { %v5218_v28 = vmax.f32 %v5209_v29, 0.0  ;;  %v10548_v29 = vld [vmem:[#allocation12 + $0x58] sm:$0xff] }
 0x33a   :  { %6499 = vmatpush.bf16.msra.mxu0 %v10542_v37 }
 0x33b   :  { %v11260_v55 = vpack.c.bf16 %v5218_v28, %v5214_v25  ;;  %v10547_v25 = vld [vmem:[#allocation12 + $0x50] sm:$0xff] }
 0x33c   :  { %6513 = vmatpush.bf16.msra.mxu1 %v10550_v49  ;;  %v10559_v28 = vld [vmem:[#allocation12 + $0xb0] sm:$0xff] }
 0x33d   :  { %6051 = vmatmul.bf16.vlgmr.msra.gmra.mxu3 %v11260_v55  ;;  %6526 = vmatpush.bf16.msra.mxu2 %v10559_v28  ;;  %v10562_v28 = vld [vmem:[#allocation12 + $0xc8] sm:$0xff] }
 0x33e   :  { %6155 = vmatpush.bf16.msra.mxu3 %v9635_v34  ;;  %6500 = vmatpush.bf16.msra.mxu0 %v10541_v39 }
 0x340   :  { %6514 = vmatpush.bf16.msra.mxu1 %v10549_v2 }
 0x341   :  { %6527 = vmatpush.bf16.msra.mxu2 %v10558_v47 }
 0x342   :  { %6156 = vmatpush.bf16.msra.mxu3 %v9619_v45  ;;  %6501 = vmatpush.bf16.msra.mxu0 %v10540_v4  ;;  %v11266_v45 = vld [vmem:[#allocation10] sm:$0xf] }
 0x343   :  { %v5353_v17 = vperm.slane %v11266_v45, 0  ;;  %v5354_v54 = vperm.slane %v11266_v45, 1  ;;  %v5355_v36 = vperm.slane %v11266_v45, 2 }
 0x344   :  { %v6010_v32 = vpop.f32.mrf.mxu0  ;;  %6515 = vmatpush.bf16.msra.mxu1 %v10548_v29  ;;  %v6024_v34 = vpop.f32.mrf.mxu1  ;;  %v10563_v29 = vld [vmem:[#allocation12 + $0xd0] sm:$0xff] }
 0x345   :  { %6528 = vmatpush.bf16.msra.mxu2 %v10557_v52  ;;  %v6011_v63 = vadd.f32 %v6010_v32, %v5353_v17 }
 0x346   :  { %6157 = vmatpush.bf16.msra.mxu3 %v9603_v30  ;;  %6502 = vmatpush.bf16.msra.mxu0 %v10539_v15  ;;  %v10545_v30 = vld [vmem:[#allocation12 + $0x40] sm:$0xff] }
 0x348   :  { %6516 = vmatpush.bf16.msra.mxu1 %v10547_v25 }
 0x349   :  { %6529 = vmatpush.bf16.msra.mxu2 %v10556_v31 }
 0x34a   :  { %6158 = vmatpush.bf16.msra.mxu3 %v9587_v14  ;;  %6503 = vmatpush.bf16.msra.mxu0 %v10538_v43  ;;  %v10564_v43 = vld [vmem:[#allocation12 + $0xd8] sm:$0xff] }
 0x34c   :  { %6517 = vmatpush.bf16.msra.mxu1 %v10546_v58  ;;  %v6012_v48 = vpop.f32.mrf.mxu0  ;;  %v6026_v14 = vpop.f32.mrf.mxu1 }
 0x34d   :  { %6107 = vmatmul.bf16.vlgmr.msrb.gmra.mxu3 %v11260_v55  ;;  %v6013_v24 = vadd.f32 %v6012_v48, %v5353_v17  ;;  %6530 = vmatpush.bf16.msra.mxu2 %v10555_v40 }
 0x34e   :  { %6159 = vmatpush.bf16.msra.mxu3 %v9571_v8  ;;  %6504 = vmatpush.bf16.msra.mxu0 %v10537_v11 }
 0x34f   :  { %v6027_v12 = vadd.f32 %v6026_v14, %v6013_v24 }
 0x350   :  { %6518 = vmatpush.bf16.msra.mxu1 %v10545_v30  ;;  %v10561_v30 = vld [vmem:[#allocation12 + $0xc0] sm:$0xff] }
 0x351   :  { %6531 = vmatpush.bf16.msra.mxu2 %v10554_v19 }
 0x352   :  { %6160 = vmatpush.bf16.msra.mxu3 %v9555_v61  ;;  %v6025_v61 = vadd.f32 %v6024_v34, %v6011_v63 }
 0x355   :  { %6532 = vmatpush.bf16.msra.mxu2 %v10553_v33 }
 0x356   :  { %6161 = vmatpush.bf16.msra.mxu3 %v9539_v16 }
 0x35a   :  { %6162 = vmatpush.bf16.msra.mxu3 %v9523_v46 }
 0x35d   :  { %6163 = vmatmul.bf16.vlgmr.msra.gmra.mxu3 %v11260_v55 }
 0x35e   :  { %6211 = vmatpush.bf16.msrb.mxu3 %v9639_v3 }
 0x362   :  { %6212 = vmatpush.bf16.msrb.mxu3 %v9623_v53 }
 0x364   :  { %v6066_v10 = vpop.f32.mrf.mxu0  ;;  %v6080_v18 = vpop.f32.mrf.mxu1 }
 0x366   :  { %6213 = vmatpush.bf16.msrb.mxu3 %v9607_v60  ;;  %v10568_v60 = vld [vmem:[#allocation12 + $0xf8] sm:$0xff] }
 0x36a   :  { %6214 = vmatpush.bf16.msrb.mxu3 %v9591_v57  ;;  %v6067_v57 = vadd.f32 %v6066_v10, %v5354_v54 }
 0x36c   :  { %v6068_v35 = vpop.f32.mrf.mxu0  ;;  %v6082_v27 = vpop.f32.mrf.mxu1  ;;  %v6081_v1 = vadd.f32 %v6080_v18, %v6067_v57  ;;  %v10582_v57 = vld [vmem:[#allocation13] ss:$0 sm:$0xff] }
 0x36e   :  { %6215 = vmatpush.bf16.msrb.mxu3 %v9575_v56  ;;  %v6069_v56 = vadd.f32 %v6068_v35, %v5354_v54 }
 0x372   :  { %6216 = vmatpush.bf16.msrb.mxu3 %v9559_v23 }
 0x376   :  { %6217 = vmatpush.bf16.msrb.mxu3 %v9543_v62  ;;  %v6083_v62 = vadd.f32 %v6082_v27, %v6069_v56 }
 0x37a   :  { %6218 = vmatpush.bf16.msrb.mxu3 %v9527_v51 }
 0x37d   :  { %6219 = vmatmul.bf16.vlgmr.msrb.gmra.mxu3 %v11260_v55  ;;  %v6038_v55 = vpop.f32.mrf.mxu2 }
 0x37e   :  { %v6039_v16 = vadd.f32 %v6038_v55, %v6025_v61  ;;  %6539 = vmatpush.bf16.msra.mxu3 %v10568_v60  ;;  %v5356_v61 = vperm.slane %v11266_v45, 3 }
 0x382   :  { %6540 = vmatpush.bf16.msra.mxu3 %v10567_v21 }
 0x384   :  { %v6122_v5 = vpop.f32.mrf.mxu0  ;;  %v6136_v39 = vpop.f32.mrf.mxu1 }
 0x385   :  { %v6040_v38 = vpop.f32.mrf.mxu2  ;;  %v6123_v2 = vadd.f32 %v6122_v5, %v5355_v36 }
 0x386   :  { %v6041_v41 = vadd.f32 %v6040_v38, %v6027_v12  ;;  %6541 = vmatpush.bf16.msra.mxu3 %v10566_v44 }
 0x387   :  { %v6137_v25 = vadd.f32 %v6136_v39, %v6123_v2 }
 0x38a   :  { %6542 = vmatpush.bf16.msra.mxu3 %v10565_v20 }
 0x38c   :  { %v6124_v11 = vpop.f32.mrf.mxu0  ;;  %v6138_v34 = vpop.f32.mrf.mxu1 }
 0x38d   :  { %v6094_v46 = vpop.f32.mrf.mxu2  ;;  %v6125_v32 = vadd.f32 %v6124_v11, %v5355_v36 }
 0x38e   :  { %v6095_v13 = vadd.f32 %v6094_v46, %v6081_v1  ;;  %6543 = vmatpush.bf16.msra.mxu3 %v10564_v43 }
 0x38f   :  { %v6139_v58 = vadd.f32 %v6138_v34, %v6125_v32 }
 0x392   :  { %6544 = vmatpush.bf16.msra.mxu3 %v10563_v29 }
 0x395   :  { %v6096_v23 = vpop.f32.mrf.mxu2 }
 0x396   :  { %v6097_v51 = vadd.f32 %v6096_v23, %v6083_v62  ;;  %6545 = vmatpush.bf16.msra.mxu3 %v10562_v28 }
 0x39a   :  { %6546 = vmatpush.bf16.msra.mxu3 %v10561_v30 }
 0x39d   :  { %v6150_v4 = vpop.f32.mrf.mxu2 }
 0x39e   :  { %v6151_v47 = vadd.f32 %v6150_v4, %v6137_v25 }
 0x3a4   :  { %v6192_v24 = vpop.f32.mrf.mxu1 }
 0x3a5   :  { %v6152_v55 = vpop.f32.mrf.mxu2 }
 0x3a6   :  { %v6153_v48 = vadd.f32 %v6152_v55, %v6139_v58 }
 0x3ad   :  { %v6206_v10 = vpop.f32.mrf.mxu2 }
 0x3b5   :  { %v6208_v19 = vpop.f32.mrf.mxu2 }
 0x3c0   :  { %v6052_v8 = vpop.f32.mrf.mxu3 }
 0x3c1   :  { %v6053_v22 = vadd.f32 %v6052_v8, %v6039_v16  ;;  %v6178_v8 = vpop.f32.mrf.mxu0 }
 0x3c2   :  { %v6179_v12 = vadd.f32 %v6178_v8, %v5356_v61 }
 0x3c3   :  { %v6225_v53 = vmax.f32 %v6053_v22, 0.0  ;;  %v6194_v22 = vpop.f32.mrf.mxu1 }
 0x3c4   :  { %v6193_v18 = vadd.f32 %v6192_v24, %v6179_v12 }
 0x3c8   :  { %v6054_v3 = vpop.f32.mrf.mxu3 }
 0x3c9   :  { %v6055_v42 = vadd.f32 %v6054_v3, %v6041_v41  ;;  %v6180_v40 = vpop.f32.mrf.mxu0  ;;  %v6207_v3 = vadd.f32 %v6206_v10, %v6193_v18 }
 0x3ca   :  { %v6181_v41 = vadd.f32 %v6180_v40, %v5356_v61 }
 0x3cb   :  { %v6229_v26 = vmax.f32 %v6055_v42, 0.0 }
 0x3cc   :  { %v6195_v46 = vadd.f32 %v6194_v22, %v6181_v41 }
 0x3cd   :  { %v6233_v50 = vpack.c.bf16 %v6229_v26, %v6225_v53 }
 0x3ce   :  { %v6209_v42 = vadd.f32 %v6208_v19, %v6195_v46 }
 0x3cf   :  { %6505 = vmatmul.bf16.vlgmr.msra.gmra.mxu0 %v6233_v50 }
 0x3d0   :  { %v6108_v7 = vpop.f32.mrf.mxu3 }
 0x3d1   :  { %v6109_v59 = vadd.f32 %v6108_v7, %v6095_v13 }
 0x3d3   :  { %v6226_v15 = vmax.f32 %v6109_v59, 0.0 }
 0x3d8   :  { %v6110_v0 = vpop.f32.mrf.mxu3 }
 0x3d9   :  { %v6111_v37 = vadd.f32 %v6110_v0, %v6097_v51 }
 0x3db   :  { %v6230_v6 = vmax.f32 %v6111_v37, 0.0 }
 0x3dd   :  { %v6234_v49 = vpack.c.bf16 %v6230_v6, %v6226_v15 }
 0x3df   :  { %6519 = vmatmul.bf16.vlgmr.msra.gmra.mxu1 %v6234_v49 }
 0x3e0   :  { %v6164_v9 = vpop.f32.mrf.mxu3 }
 0x3e1   :  { %v6165_v17 = vadd.f32 %v6164_v9, %v6151_v47 }
 0x3e3   :  { %v6227_v14 = vmax.f32 %v6165_v17, 0.0 }
 0x3e8   :  { %v6166_v52 = vpop.f32.mrf.mxu3 }
 0x3e9   :  { %v6167_v63 = vadd.f32 %v6166_v52, %v6153_v48 }
 0x3eb   :  { %v6231_v31 = vmax.f32 %v6167_v63, 0.0 }
 0x3ed   :  { %v6235_v38 = vpack.c.bf16 %v6231_v31, %v6227_v14 }
 0x3ef   :  { %6533 = vmatmul.bf16.vlgmr.msra.gmra.mxu2 %v6235_v38 }
 0x400   :  { %v6220_v16 = vpop.f32.mrf.mxu3 }
 0x401   :  { %v6221_v54 = vadd.f32 %v6220_v16, %v6207_v3 }
 0x403   :  { %v6228_v33 = vmax.f32 %v6221_v54, 0.0 }
 0x408   :  { %v6222_v53 = vpop.f32.mrf.mxu3 }
 0x409   :  { %v6223_v26 = vadd.f32 %v6222_v53, %v6209_v42 }
 0x40b   :  { %v6232_v60 = vmax.f32 %v6223_v26, 0.0 }
 0x40d   :  { %v6236_v35 = vpack.c.bf16 %v6232_v60, %v6228_v33 }
 0x40f   :  { %6547 = vmatmul.bf16.vlgmr.msra.gmra.mxu3 %v6236_v35 }
 0x44c   :  { %v6506_v50 = vpop.f32.mrf.mxu0 }
 0x44d   :  { %v6507_v7 = vadd.f32 %v10582_v57, %v6506_v50 }
 0x454   :  { %v6508_v27 = vpop.f32.mrf.mxu0 }
 0x455   :  { %v6509_v62 = vadd.f32 %v10582_v57, %v6508_v27 }
 0x45c   :  { %v6520_v45 = vpop.f32.mrf.mxu1 }
 0x45d   :  { %v6521_v56 = vadd.f32 %v6520_v45, %v6507_v7 }
 0x464   :  { %v6522_v5 = vpop.f32.mrf.mxu1 }
 0x465   :  { %v6523_v20 = vadd.f32 %v6522_v5, %v6509_v62 }
 0x472   :  { %v6534_v21 = vpop.f32.mrf.mxu2 }
 0x473   :  { %v6535_v44 = vadd.f32 %v6534_v21, %v6521_v56 }
 0x47a   :  { %v6536_v13 = vpop.f32.mrf.mxu2 }
 0x47b   :  { %v6537_v51 = vadd.f32 %v6536_v13, %v6523_v20 }
 0x492   :  { %v6548_v23 = vpop.f32.mrf.mxu3 }
 0x493   :  { %v6549_v1 = vadd.f32 %v6548_v23, %v6535_v44 }
 0x495   :  { %6553 = vst [vmem:[%s11287_s9] sm:$0xff] %v6549_v1 }
 0x49a   :  { %v6550_v59 = vpop.f32.mrf.mxu3 }
 0x49b   :  { %v6551_v0 = vadd.f32 %v6550_v59, %v6537_v51 }
 0x49d   :  { %6554 = vst [vmem:[%s11287_s9 + $0x8] sm:$0xff] %v6551_v0 }
 0x49e   :  { %6559 = vsyncpa [#allocation3], 1 }
 0x49f   :  { %6560 = vsyncpa [#allocation5], 1 }
 0x4a0   :  { %6561 = vsyncpa [#allocation8], 1 }
 0x4a1   :  { %6562 = vsyncpa [#allocation11], 1 }
 0x4a2   :  { %6563 = vsyncpa [#allocation14], 1 }

</bundles_post_ra>
